<compile_context>
chip_gen: v5e
topology: v5e:2x2
jax: 0.10.0
libtpu: 0.0.40
codegen_flags: <defaults>
</compile_context>

<pallas_src>
import jax
import jax.numpy as jnp
from jax import lax
from jax.experimental import pallas as pl
from jax.experimental.pallas import tpu as pltpu


# ----------------------------------------------------------------------------
# Kernel 1: fused bidirectional LSTM layer (one model per grid step).
# ----------------------------------------------------------------------------
def _bilstm_kernel(x_ref, wih_ref, whh_ref, b_ref, out_ref,
                   xproj_ref, hf_ref, hb_ref):
    """Bidirectional LSTM over a whole time-major padded sequence.

    x_ref:    [T, B, In]  f32   activations (time-major)
    wih_ref:  [In, 8H]    bf16  [W_ih_fwd^T | W_ih_bwd^T]
    whh_ref:  [2H, 8H]    bf16  blockdiag(W_hh_fwd^T, W_hh_bwd^T)
    b_ref:    [1, 8H]     f32   [b_fwd | b_bwd] (b_ih + b_hh)
    out_ref:  [T, B, 2H]  f32   [h_fwd | h_bwd]
    scratch:  xproj_ref [T, B, 8H] f32, hf_ref / hb_ref [T, B, H] f32
    """
    T, B, In = x_ref.shape
    H2, G2 = whh_ref.shape                  # 2H, 8H
    H = H2 // 2
    G = G2 // 2                             # 4H = one direction's gate width

    # Hoisted input projection (+ bias) for all timesteps and both directions:
    # one big MXU matmul instead of T tiny latency-bound ones in the loop.
    x_flat = x_ref[...].reshape(T * B, In).astype(jnp.bfloat16)
    xproj = jnp.dot(x_flat, wih_ref[...],
                    preferred_element_type=jnp.float32) + b_ref[...]
    xproj_ref[...] = xproj.reshape(T, B, G2)

    whh = whh_ref[...]                      # hoisted weight load (loop-invariant)

    def cell(gates, c):                     # gate order (i, f, g, o); f32 math
        i = jax.nn.sigmoid(gates[:, 0:H])
        f = jax.nn.sigmoid(gates[:, H:2 * H])
        g = jnp.tanh(gates[:, 2 * H:3 * H])
        o = jax.nn.sigmoid(gates[:, 3 * H:4 * H])
        c_new = f * c + i * g
        return o * jnp.tanh(c_new), c_new

    def step(s, carry):
        h_both, c_f, c_b = carry            # h_both: [B, 2H] = [h_fwd | h_bwd]
        tf = s                              # forward-direction time index
        tb = T - 1 - s                      # backward-direction time index
        rec = jnp.dot(h_both.astype(jnp.bfloat16), whh,
                      preferred_element_type=jnp.float32)        # [B, 8H]
        gates_f = xproj_ref[tf][:, 0:G] + rec[:, 0:G]
        gates_b = xproj_ref[tb][:, G:G2] + rec[:, G:G2]
        h_f, c_f = cell(gates_f, c_f)
        h_b, c_b = cell(gates_b, c_b)
        hf_ref[tf] = h_f
        hb_ref[tb] = h_b
        return jnp.concatenate([h_f, h_b], axis=-1), c_f, c_b

    h0 = jnp.zeros((B, H2), jnp.float32)
    c0 = jnp.zeros((B, H), jnp.float32)
    lax.fori_loop(0, T, step, (h0, c0, c0), unroll=True)

    # Single lane-dense write of [fwd | bwd]; no wrapper-level concatenate.
    out_ref[...] = jnp.concatenate([hf_ref[...], hb_ref[...]], axis=-1)
    # TODO(synk): backward direction includes pad positions (no
    # pack_padded_sequence-style length-aware reversal).


def bilstm_layer(x, wih_t, whh_blk, bias):
    """x: [M, T, B, In] f32  ->  [M, T, B, 2H] f32   (grid over models)."""
    M, T, B, In = x.shape
    H2 = whh_blk.shape[1]                   # 2H
    G2 = wih_t.shape[2]                     # 8H
    H = H2 // 2
    return pl.pallas_call(
        _bilstm_kernel,
        out_shape=jax.ShapeDtypeStruct((M, T, B, H2), jnp.float32),
        grid=(M,),
        in_specs=[
            pl.BlockSpec((None, T, B, In), lambda m: (m, 0, 0, 0)),
            pl.BlockSpec((None, In, G2), lambda m: (m, 0, 0)),
            pl.BlockSpec((None, H2, G2), lambda m: (m, 0, 0)),
            pl.BlockSpec((None, 1, G2), lambda m: (m, 0, 0)),
        ],
        out_specs=pl.BlockSpec((None, T, B, H2), lambda m: (m, 0, 0, 0)),
        scratch_shapes=[
            pltpu.VMEM((T, B, G2), jnp.float32),   # hoisted input projection
            pltpu.VMEM((T, B, H), jnp.float32),    # forward hidden states
            pltpu.VMEM((T, B, H), jnp.float32),    # backward hidden states
        ],
        compiler_params=pltpu.CompilerParams(
            dimension_semantics=("parallel",)),    # model axis -> 2 TCs on v7x
    )(x, wih_t, whh_blk, bias)


# ----------------------------------------------------------------------------
# Kernel 2: FeedForward(2H -> H -> 2) fused with masked CE loss + argmax.
# ----------------------------------------------------------------------------
def _ffn_loss_kernel(h_ref, w1t_ref, b1_ref, w2t_ref, b2_ref,
                     gold_ref, wts_ref, loss_ref, pred_ref):
    """h_ref: [T, B, 2H] f32   w1t: [2H, H] bf16  b1: [1, H] f32
       w2t: [H, 2] bf16  b2: [1, 2] f32
       gold: [T*B, 1] i32      wts:  [T*B, 1] f32 (= valid_mask / (len * B))
       loss_ref: [1, 1] f32 (per-model mean loss)  pred_ref: [T*B, 1] f32."""
    T, B, F = h_ref.shape
    x = h_ref[...].reshape(T * B, F).astype(jnp.bfloat16)
    hmid = jnp.dot(x, w1t_ref[...],
                   preferred_element_type=jnp.float32) + b1_ref[...]
    hmid = jnp.maximum(hmid, 0.0)
    # TODO(synk): dropout omitted (inference / eval semantics).
    logits = jnp.dot(hmid.astype(jnp.bfloat16), w2t_ref[...],
                     preferred_element_type=jnp.float32) + b2_ref[...]  # [T*B, 2]
    l0 = logits[:, 0:1]
    l1 = logits[:, 1:2]

    m = jnp.maximum(l0, l1)
    lse = m + jnp.log(jnp.exp(l0 - m) + jnp.exp(l1 - m))
    logp_gold = jnp.where(gold_ref[...] == 1, l1, l0) - lse
    # Weighted sum == mean-over-tokens per sentence, then mean over sentences,
    # matching per-sentence CrossEntropyLoss + torch.mean of the reference.
    loss_ref[...] = jnp.sum(-logp_gold * wts_ref[...], keepdims=True)
    pred_ref[...] = (l1 > l0).astype(jnp.float32)        # argmax(-1); ties -> 0


def ffn_loss_argmax(h, w1t, b1, w2t, b2, gold_flat, wts_flat):
    """h: [M, T, B, 2H] -> (losses [M,1,1], preds [M, T*B, 1])."""
    M, T, B, F = h.shape
    H = w1t.shape[2]
    TB = T * B
    return pl.pallas_call(
        _ffn_loss_kernel,
        out_shape=(jax.ShapeDtypeStruct((M, 1, 1), jnp.float32),
                   jax.ShapeDtypeStruct((M, TB, 1), jnp.float32)),
        grid=(M,),
        in_specs=[
            pl.BlockSpec((None, T, B, F), lambda m: (m, 0, 0, 0)),
            pl.BlockSpec((None, F, H), lambda m: (m, 0, 0)),
            pl.BlockSpec((None, 1, H), lambda m: (m, 0, 0)),
            pl.BlockSpec((None, H, 2), lambda m: (m, 0, 0)),
            pl.BlockSpec((None, 1, 2), lambda m: (m, 0, 0)),
            pl.BlockSpec((TB, 1), lambda m: (0, 0)),       # gold (shared)
            pl.BlockSpec((TB, 1), lambda m: (0, 0)),       # token weights (shared)
        ],
        out_specs=(pl.BlockSpec((None, 1, 1), lambda m: (m, 0, 0)),
                   pl.BlockSpec((None, TB, 1), lambda m: (m, 0, 0))),
        compiler_params=pltpu.CompilerParams(
            dimension_semantics=("parallel",)),
    )(h, w1t, b1, w2t, b2, gold_flat, wts_flat)


# ----------------------------------------------------------------------------
# Parameter construction: pre-transposed, direction-fused, bf16 matmul operands.
# ----------------------------------------------------------------------------
def _init_lstm_dir(key, in_dim, hidden, scale=0.1):
    k1, k2, k3 = jax.random.split(key, 3)
    w_ih = scale * jax.random.normal(k1, (4 * hidden, in_dim), jnp.float32)
    w_hh = scale * jax.random.normal(k2, (4 * hidden, hidden), jnp.float32)
    b = scale * jax.random.normal(k3, (4 * hidden,), jnp.float32)  # b_ih + b_hh
    return w_ih, w_hh, b


def _init_bilstm_fused(key, in_dim, hidden):
    kf, kb = jax.random.split(key)
    wif, whf, bf = _init_lstm_dir(kf, in_dim, hidden)
    wib, whb, bb = _init_lstm_dir(kb, in_dim, hidden)
    G = 4 * hidden
    wih_t = jnp.concatenate([wif.T, wib.T], axis=1)             # [In, 8H]
    whh_blk = jnp.zeros((2 * hidden, 2 * G), jnp.float32)       # block-diagonal
    whh_blk = whh_blk.at[:hidden, :G].set(whf.T)
    whh_blk = whh_blk.at[hidden:, G:].set(whb.T)
    bias = jnp.concatenate([bf, bb]).reshape(1, 2 * G)
    return wih_t, whh_blk, bias


def _init_model(key, vocab, embed, hidden, scale=0.1):
    k_emb, k_l1, k_l2, k_f1, k_f2 = jax.random.split(key, 5)
    emb_tbl = scale * jax.random.normal(k_emb, (vocab, embed), jnp.float32)
    l1 = _init_bilstm_fused(k_l1, embed, hidden)
    l2 = _init_bilstm_fused(k_l2, 2 * hidden, hidden)
    w1 = scale * jax.random.normal(k_f1, (hidden, 2 * hidden), jnp.float32)
    w2 = scale * jax.random.normal(k_f2, (2, hidden), jnp.float32)
    ffn = (w1.T, jnp.zeros((1, hidden), jnp.float32),
           w2.T, jnp.zeros((1, 2), jnp.float32))
    return emb_tbl, l1, l2, ffn


def init_ensemble_params(key, n_models, vocab, embed, hidden):
    per = [_init_model(jax.random.fold_in(key, m), vocab, embed, hidden)
           for m in range(n_models)]
    stack = lambda xs: jnp.stack(xs, axis=0)

    def stack_lstm(idx):
        wih = stack([p[idx][0] for p in per]).astype(jnp.bfloat16)  # MXU operand
        whh = stack([p[idx][1] for p in per]).astype(jnp.bfloat16)  # MXU operand
        b = stack([p[idx][2] for p in per])                         # bias stays f32
        return wih, whh, b

    w1t = stack([p[3][0] for p in per]).astype(jnp.bfloat16)
    b1 = stack([p[3][1] for p in per])
    w2t = stack([p[3][2] for p in per]).astype(jnp.bfloat16)
    b2 = stack([p[3][3] for p in per])

    return {
        "embed": stack([p[0] for p in per]),            # [M, V, E] f32
        "lstm_embd": stack_lstm(1),
        "lstm_out": stack_lstm(2),
        "ffn": (w1t, b1, w2t, b2),
    }


# ----------------------------------------------------------------------------
# Ensemble forward
# ----------------------------------------------------------------------------
def ensemble_forward(params, tokens, sent_len, gold):
    M = params["embed"].shape[0]
    B, T = tokens.shape

    # Per-model embedding lookup (glue gather), time-major layout [M, T, B, E].
    # TODO(synk): pretrained TextEmbedder replaced by a plain embedding table.
    emb = jnp.take(params["embed"], tokens, axis=1)         # [M, B, T, E]
    emb = jnp.transpose(emb, (0, 2, 1, 3))                  # [M, T, B, E]

    h1 = bilstm_layer(emb, *params["lstm_embd"])            # [M, T, B, 2H]
    h2 = bilstm_layer(h1, *params["lstm_out"])              # [M, T, B, 2H]

    # Shared (model-independent) gold labels and per-token CE weights.
    gold_flat = jnp.transpose(gold).reshape(T * B, 1).astype(jnp.int32)
    pos = jnp.arange(T, dtype=jnp.int32)[:, None]                       # [T, 1]
    mask = (pos < sent_len[None, :]).astype(jnp.float32)                # [T, B]
    denom = jnp.maximum(sent_len.astype(jnp.float32), 1.0) * B          # 0-len guard
    wts_flat = (mask / denom[None, :]).reshape(T * B, 1)

    losses, preds = ffn_loss_argmax(h2, *params["ffn"], gold_flat, wts_flat)

    loss = jnp.mean(losses)                                   # mean over models
    edu = jnp.round(jnp.mean(preds.reshape(M, T, B), axis=0))  # ensemble vote
    return {"loss": loss, "edu_splits": jnp.transpose(edu)}    # [B, T] padded


# ----------------------------------------------------------------------------
if __name__ == "__main__":
    B, T = 2, 8              # sentences per batch, padded token length
    VOCAB, EMBED, HIDDEN = 50, 32, 32
    N_MODELS = 3

    key = jax.random.PRNGKey(0)
    k_tok, k_gold = jax.random.split(key)
    tokens = jax.random.randint(k_tok, (B, T), 0, VOCAB, dtype=jnp.int32)
    gold = jax.random.bernoulli(k_gold, 0.3, (B, T)).astype(jnp.int32)  # starts_edu
    sent_len = jnp.array([T, T - 2], dtype=jnp.int32)                   # sents_len

    params = init_ensemble_params(key, N_MODELS, VOCAB, EMBED, HIDDEN)

    out = jax.jit(ensemble_forward)(params, tokens, sent_len, gold)
    jax.block_until_ready(out["loss"])
    jax.block_until_ready(out["edu_splits"])
    print("KERNEL_OK")
</pallas_src>

<mosaic_0001>
module attributes {stable_mosaic.version = 11 : i64} {
  func.func @_bilstm_kernel(%arg0: i32, %arg1: memref<1x8x2x32xf32, #tpu.memory_space<vmem>>, %arg2: memref<1x32x256xbf16, #tpu.memory_space<vmem>>, %arg3: memref<1x64x256xbf16, #tpu.memory_space<vmem>>, %arg4: memref<1x1x256xf32, #tpu.memory_space<vmem>>, %arg5: memref<1x8x2x64xf32, #tpu.memory_space<vmem>>, %arg6: memref<8x2x256xf32, #tpu.memory_space<vmem>>, %arg7: memref<8x2x32xf32, #tpu.memory_space<vmem>>, %arg8: memref<8x2x32xf32, #tpu.memory_space<vmem>>) attributes {dimension_semantics = [#tpu.dimension_semantics<parallel>], iteration_bounds = array<i64: 3>, scalar_prefetch = 0 : i64, scratch_operands = 3 : i64, tpu.core_type = #tpu.core_type<tc>, window_params = [{transform_indices = @transform_0, window_bounds = array<i64: 1, 8, 2, 32>}, {transform_indices = @transform_1, window_bounds = array<i64: 1, 32, 256>}, {transform_indices = @transform_2, window_bounds = array<i64: 1, 64, 256>}, {transform_indices = @transform_3, window_bounds = array<i64: 1, 1, 256>}, {transform_indices = @transform_4, window_bounds = array<i64: 1, 8, 2, 64>}]} {
    %c0 = arith.constant 0 : index
    %c0_0 = arith.constant 0 : index
    %c0_1 = arith.constant 0 : index
    %c0_2 = arith.constant 0 : index
    %0 = vector.load %arg1[%c0, %c0_0, %c0_1, %c0_2] : memref<1x8x2x32xf32, #tpu.memory_space<vmem>>, vector<1x8x2x32xf32>
    %1 = vector.shape_cast %0 : vector<1x8x2x32xf32> to vector<8x2x32xf32>
    %2 = vector.shape_cast %1 : vector<8x2x32xf32> to vector<16x32xf32>
    %3 = arith.truncf %2 : vector<16x32xf32> to vector<16x32xbf16>
    %c0_3 = arith.constant 0 : index
    %c0_4 = arith.constant 0 : index
    %c0_5 = arith.constant 0 : index
    %4 = vector.load %arg2[%c0_3, %c0_4, %c0_5] : memref<1x32x256xbf16, #tpu.memory_space<vmem>>, vector<1x32x256xbf16>
    %5 = vector.shape_cast %4 : vector<1x32x256xbf16> to vector<32x256xbf16>
    %cst = arith.constant dense<0.000000e+00> : vector<16x256xf32>
    %6 = tpu.matmul %3, %5, %cst {dimension_numbers = #tpu.dot_dimension_numbers<[1], [0], [0], [1], [0, 0, 1, 1], [], []>} : vector<16x32xbf16>, vector<32x256xbf16>, vector<16x256xf32> -> vector<16x256xf32>
    %c0_6 = arith.constant 0 : index
    %c0_7 = arith.constant 0 : index
    %c0_8 = arith.constant 0 : index
    %7 = vector.load %arg4[%c0_6, %c0_7, %c0_8] : memref<1x1x256xf32, #tpu.memory_space<vmem>>, vector<1x1x256xf32>
    %8 = vector.shape_cast %7 : vector<1x1x256xf32> to vector<1x256xf32>
    %9 = vector.broadcast %8 : vector<1x256xf32> to vector<16x256xf32>
    %10 = arith.addf %6, %9 : vector<16x256xf32>
    %11 = vector.shape_cast %10 : vector<16x256xf32> to vector<8x2x256xf32>
    %c0_9 = arith.constant 0 : index
    %c0_10 = arith.constant 0 : index
    %c0_11 = arith.constant 0 : index
    %12 = vector.load %arg6[%c0_9, %c0_10, %c0_11] : memref<8x2x256xf32, #tpu.memory_space<vmem>>, vector<8x2x256xf32>
    tpu.vector_store %arg6[%c0_9, %c0_10, %c0_11], %11 {strides = array<i32>} : memref<8x2x256xf32, #tpu.memory_space<vmem>>, vector<8x2x256xf32>,
    %c0_12 = arith.constant 0 : index
    %c0_13 = arith.constant 0 : index
    %c0_14 = arith.constant 0 : index
    %13 = vector.load %arg3[%c0_12, %c0_13, %c0_14] : memref<1x64x256xbf16, #tpu.memory_space<vmem>>, vector<1x64x256xbf16>
    %14 = vector.shape_cast %13 : vector<1x64x256xbf16> to vector<64x256xbf16>
    %cst_15 = arith.constant 0.000000e+00 : f32
    %15 = vector.broadcast %cst_15 : f32 to vector<2x64xf32>
    %cst_16 = arith.constant 0.000000e+00 : f32
    %16 = vector.broadcast %cst_16 : f32 to vector<2x32xf32>
    %c0_i32 = arith.constant 0 : i32
    %c7_i32 = arith.constant 7 : i32
    %17 = arith.subi %c7_i32, %c0_i32 : i32
    %18 = arith.truncf %15 : vector<2x64xf32> to vector<2x64xbf16>
    %cst_17 = arith.constant dense<0.000000e+00> : vector<2x256xf32>
    %19 = tpu.matmul %18, %14, %cst_17 {dimension_numbers = #tpu.dot_dimension_numbers<[1], [0], [0], [1], [0, 0, 1, 1], [], []>} : vector<2x64xbf16>, vector<64x256xbf16>, vector<2x256xf32> -> vector<2x256xf32>
    %20 = arith.index_cast %c0_i32 : i32 to index
    %c0_18 = arith.constant 0 : index
    %c0_19 = arith.constant 0 : index
    %21 = vector.load %arg6[%20, %c0_18, %c0_19] : memref<8x2x256xf32, #tpu.memory_space<vmem>>, vector<1x2x256xf32>
    %22 = vector.shape_cast %21 : vector<1x2x256xf32> to vector<2x256xf32>
    %23 = vector.extract_strided_slice %22 {offsets = [0, 0], sizes = [2, 128], strides = [1, 1]} : vector<2x256xf32> to vector<2x128xf32>
    %24 = vector.extract_strided_slice %19 {offsets = [0, 0], sizes = [2, 128], strides = [1, 1]} : vector<2x256xf32> to vector<2x128xf32>
    %25 = arith.addf %23, %24 : vector<2x128xf32>
    %26 = arith.index_cast %17 : i32 to index
    %c0_20 = arith.constant 0 : index
    %c0_21 = arith.constant 0 : index
    %27 = vector.load %arg6[%26, %c0_20, %c0_21] : memref<8x2x256xf32, #tpu.memory_space<vmem>>, vector<1x2x256xf32>
    %28 = vector.shape_cast %27 : vector<1x2x256xf32> to vector<2x256xf32>
    %29 = vector.extract_strided_slice %28 {offsets = [0, 128], sizes = [2, 128], strides = [1, 1]} : vector<2x256xf32> to vector<2x128xf32>
    %30 = vector.extract_strided_slice %19 {offsets = [0, 128], sizes = [2, 128], strides = [1, 1]} : vector<2x256xf32> to vector<2x128xf32>
    %31 = arith.addf %29, %30 : vector<2x128xf32>
    %32 = vector.extract_strided_slice %25 {offsets = [0, 0], sizes = [2, 32], strides = [1, 1]} : vector<2x128xf32> to vector<2x32xf32>
    %33 = arith.negf %32 : vector<2x32xf32>
    %34 = math.exp %33 : vector<2x32xf32>
    %cst_22 = arith.constant 1.000000e+00 : f32
    %35 = vector.broadcast %cst_22 : f32 to vector<2x32xf32>
    %36 = arith.addf %35, %34 : vector<2x32xf32>
    %37 = arith.divf %35, %36 : vector<2x32xf32>
    %38 = vector.extract_strided_slice %25 {offsets = [0, 32], sizes = [2, 32], strides = [1, 1]} : vector<2x128xf32> to vector<2x32xf32>
    %39 = arith.negf %38 : vector<2x32xf32>
    %40 = math.exp %39 : vector<2x32xf32>
    %cst_23 = arith.constant 1.000000e+00 : f32
    %41 = vector.broadcast %cst_23 : f32 to vector<2x32xf32>
    %42 = arith.addf %41, %40 : vector<2x32xf32>
    %43 = arith.divf %41, %42 : vector<2x32xf32>
    %44 = vector.extract_strided_slice %25 {offsets = [0, 64], sizes = [2, 32], strides = [1, 1]} : vector<2x128xf32> to vector<2x32xf32>
    %45 = math.tanh %44 : vector<2x32xf32>
    %46 = vector.extract_strided_slice %25 {offsets = [0, 96], sizes = [2, 32], strides = [1, 1]} : vector<2x128xf32> to vector<2x32xf32>
    %47 = arith.negf %46 : vector<2x32xf32>
    %48 = math.exp %47 : vector<2x32xf32>
    %cst_24 = arith.constant 1.000000e+00 : f32
    %49 = vector.broadcast %cst_24 : f32 to vector<2x32xf32>
    %50 = arith.addf %49, %48 : vector<2x32xf32>
    %51 = arith.divf %49, %50 : vector<2x32xf32>
    %52 = arith.mulf %43, %16 : vector<2x32xf32>
    %53 = arith.mulf %37, %45 : vector<2x32xf32>
    %54 = arith.addf %52, %53 : vector<2x32xf32>
    %55 = math.tanh %54 : vector<2x32xf32>
    %56 = arith.mulf %51, %55 : vector<2x32xf32>
    %57 = vector.extract_strided_slice %31 {offsets = [0, 0], sizes = [2, 32], strides = [1, 1]} : vector<2x128xf32> to vector<2x32xf32>
    %58 = arith.negf %57 : vector<2x32xf32>
    %59 = math.exp %58 : vector<2x32xf32>
    %cst_25 = arith.constant 1.000000e+00 : f32
    %60 = vector.broadcast %cst_25 : f32 to vector<2x32xf32>
    %61 = arith.addf %60, %59 : vector<2x32xf32>
    %62 = arith.divf %60, %61 : vector<2x32xf32>
    %63 = vector.extract_strided_slice %31 {offsets = [0, 32], sizes = [2, 32], strides = [1, 1]} : vector<2x128xf32> to vector<2x32xf32>
    %64 = arith.negf %63 : vector<2x32xf32>
    %65 = math.exp %64 : vector<2x32xf32>
    %cst_26 = arith.constant 1.000000e+00 : f32
    %66 = vector.broadcast %cst_26 : f32 to vector<2x32xf32>
    %67 = arith.addf %66, %65 : vector<2x32xf32>
    %68 = arith.divf %66, %67 : vector<2x32xf32>
    %69 = vector.extract_strided_slice %31 {offsets = [0, 64], sizes = [2, 32], strides = [1, 1]} : vector<2x128xf32> to vector<2x32xf32>
    %70 = math.tanh %69 : vector<2x32xf32>
    %71 = vector.extract_strided_slice %31 {offsets = [0, 96], sizes = [2, 32], strides = [1, 1]} : vector<2x128xf32> to vector<2x32xf32>
    %72 = arith.negf %71 : vector<2x32xf32>
    %73 = math.exp %72 : vector<2x32xf32>
    %cst_27 = arith.constant 1.000000e+00 : f32
    %74 = vector.broadcast %cst_27 : f32 to vector<2x32xf32>
    %75 = arith.addf %74, %73 : vector<2x32xf32>
    %76 = arith.divf %74, %75 : vector<2x32xf32>
    %77 = arith.mulf %68, %16 : vector<2x32xf32>
    %78 = arith.mulf %62, %70 : vector<2x32xf32>
    %79 = arith.addf %77, %78 : vector<2x32xf32>
    %80 = math.tanh %79 : vector<2x32xf32>
    %81 = arith.mulf %76, %80 : vector<2x32xf32>
    %82 = arith.index_cast %c0_i32 : i32 to index
    %c0_28 = arith.constant 0 : index
    %c0_29 = arith.constant 0 : index
    %83 = vector.load %arg7[%82, %c0_28, %c0_29] : memref<8x2x32xf32, #tpu.memory_space<vmem>>, vector<1x2x32xf32>
    %84 = vector.shape_cast %83 : vector<1x2x32xf32> to vector<2x32xf32>
    %85 = vector.shape_cast %56 : vector<2x32xf32> to vector<1x2x32xf32>
    tpu.vector_store %arg7[%82, %c0_28, %c0_29], %85 {strides = array<i32>} : memref<8x2x32xf32, #tpu.memory_space<vmem>>, vector<1x2x32xf32>,
    %86 = arith.index_cast %17 : i32 to index
    %c0_30 = arith.constant 0 : index
    %c0_31 = arith.constant 0 : index
    %87 = vector.load %arg8[%86, %c0_30, %c0_31] : memref<8x2x32xf32, #tpu.memory_space<vmem>>, vector<1x2x32xf32>
    %88 = vector.shape_cast %87 : vector<1x2x32xf32> to vector<2x32xf32>
    %89 = vector.shape_cast %81 : vector<2x32xf32> to vector<1x2x32xf32>
    tpu.vector_store %arg8[%86, %c0_30, %c0_31], %89 {strides = array<i32>} : memref<8x2x32xf32, #tpu.memory_space<vmem>>, vector<1x2x32xf32>,
    %90 = tpu.concatenate %56, %81 in 1 : vector<2x32xf32>, vector<2x32xf32> -> vector<2x64xf32>
    %c1_i32 = arith.constant 1 : i32
    %c7_i32_32 = arith.constant 7 : i32
    %91 = arith.subi %c7_i32_32, %c1_i32 : i32
    %92 = arith.truncf %90 : vector<2x64xf32> to vector<2x64xbf16>
    %cst_33 = arith.constant dense<0.000000e+00> : vector<2x256xf32>
    %93 = tpu.matmul %92, %14, %cst_33 {dimension_numbers = #tpu.dot_dimension_numbers<[1], [0], [0], [1], [0, 0, 1, 1], [], []>} : vector<2x64xbf16>, vector<64x256xbf16>, vector<2x256xf32> -> vector<2x256xf32>
    %94 = arith.index_cast %c1_i32 : i32 to index
    %c0_34 = arith.constant 0 : index
    %c0_35 = arith.constant 0 : index
    %95 = vector.load %arg6[%94, %c0_34, %c0_35] : memref<8x2x256xf32, #tpu.memory_space<vmem>>, vector<1x2x256xf32>
    %96 = vector.shape_cast %95 : vector<1x2x256xf32> to vector<2x256xf32>
    %97 = vector.extract_strided_slice %96 {offsets = [0, 0], sizes = [2, 128], strides = [1, 1]} : vector<2x256xf32> to vector<2x128xf32>
    %98 = vector.extract_strided_slice %93 {offsets = [0, 0], sizes = [2, 128], strides = [1, 1]} : vector<2x256xf32> to vector<2x128xf32>
    %99 = arith.addf %97, %98 : vector<2x128xf32>
    %100 = arith.index_cast %91 : i32 to index
    %c0_36 = arith.constant 0 : index
    %c0_37 = arith.constant 0 : index
    %101 = vector.load %arg6[%100, %c0_36, %c0_37] : memref<8x2x256xf32, #tpu.memory_space<vmem>>, vector<1x2x256xf32>
    %102 = vector.shape_cast %101 : vector<1x2x256xf32> to vector<2x256xf32>
    %103 = vector.extract_strided_slice %102 {offsets = [0, 128], sizes = [2, 128], strides = [1, 1]} : vector<2x256xf32> to vector<2x128xf32>
    %104 = vector.extract_strided_slice %93 {offsets = [0, 128], sizes = [2, 128], strides = [1, 1]} : vector<2x256xf32> to vector<2x128xf32>
    %105 = arith.addf %103, %104 : vector<2x128xf32>
    %106 = vector.extract_strided_slice %99 {offsets = [0, 0], sizes = [2, 32], strides = [1, 1]} : vector<2x128xf32> to vector<2x32xf32>
    %107 = arith.negf %106 : vector<2x32xf32>
    %108 = math.exp %107 : vector<2x32xf32>
    %cst_38 = arith.constant 1.000000e+00 : f32
    %109 = vector.broadcast %cst_38 : f32 to vector<2x32xf32>
    %110 = arith.addf %109, %108 : vector<2x32xf32>
    %111 = arith.divf %109, %110 : vector<2x32xf32>
    %112 = vector.extract_strided_slice %99 {offsets = [0, 32], sizes = [2, 32], strides = [1, 1]} : vector<2x128xf32> to vector<2x32xf32>
    %113 = arith.negf %112 : vector<2x32xf32>
    %114 = math.exp %113 : vector<2x32xf32>
    %cst_39 = arith.constant 1.000000e+00 : f32
    %115 = vector.broadcast %cst_39 : f32 to vector<2x32xf32>
    %116 = arith.addf %115, %114 : vector<2x32xf32>
    %117 = arith.divf %115, %116 : vector<2x32xf32>
    %118 = vector.extract_strided_slice %99 {offsets = [0, 64], sizes = [2, 32], strides = [1, 1]} : vector<2x128xf32> to vector<2x32xf32>
    %119 = math.tanh %118 : vector<2x32xf32>
    %120 = vector.extract_strided_slice %99 {offsets = [0, 96], sizes = [2, 32], strides = [1, 1]} : vector<2x128xf32> to vector<2x32xf32>
    %121 = arith.negf %120 : vector<2x32xf32>
    %122 = math.exp %121 : vector<2x32xf32>
    %cst_40 = arith.constant 1.000000e+00 : f32
    %123 = vector.broadcast %cst_40 : f32 to vector<2x32xf32>
    %124 = arith.addf %123, %122 : vector<2x32xf32>
    %125 = arith.divf %123, %124 : vector<2x32xf32>
    %126 = arith.mulf %117, %54 : vector<2x32xf32>
    %127 = arith.mulf %111, %119 : vector<2x32xf32>
    %128 = arith.addf %126, %127 : vector<2x32xf32>
    %129 = math.tanh %128 : vector<2x32xf32>
    %130 = arith.mulf %125, %129 : vector<2x32xf32>
    %131 = vector.extract_strided_slice %105 {offsets = [0, 0], sizes = [2, 32], strides = [1, 1]} : vector<2x128xf32> to vector<2x32xf32>
    %132 = arith.negf %131 : vector<2x32xf32>
    %133 = math.exp %132 : vector<2x32xf32>
    %cst_41 = arith.constant 1.000000e+00 : f32
    %134 = vector.broadcast %cst_41 : f32 to vector<2x32xf32>
    %135 = arith.addf %134, %133 : vector<2x32xf32>
    %136 = arith.divf %134, %135 : vector<2x32xf32>
    %137 = vector.extract_strided_slice %105 {offsets = [0, 32], sizes = [2, 32], strides = [1, 1]} : vector<2x128xf32> to vector<2x32xf32>
    %138 = arith.negf %137 : vector<2x32xf32>
    %139 = math.exp %138 : vector<2x32xf32>
    %cst_42 = arith.constant 1.000000e+00 : f32
    %140 = vector.broadcast %cst_42 : f32 to vector<2x32xf32>
    %141 = arith.addf %140, %139 : vector<2x32xf32>
    %142 = arith.divf %140, %141 : vector<2x32xf32>
    %143 = vector.extract_strided_slice %105 {offsets = [0, 64], sizes = [2, 32], strides = [1, 1]} : vector<2x128xf32> to vector<2x32xf32>
    %144 = math.tanh %143 : vector<2x32xf32>
    %145 = vector.extract_strided_slice %105 {offsets = [0, 96], sizes = [2, 32], strides = [1, 1]} : vector<2x128xf32> to vector<2x32xf32>
    %146 = arith.negf %145 : vector<2x32xf32>
    %147 = math.exp %146 : vector<2x32xf32>
    %cst_43 = arith.constant 1.000000e+00 : f32
    %148 = vector.broadcast %cst_43 : f32 to vector<2x32xf32>
    %149 = arith.addf %148, %147 : vector<2x32xf32>
    %150 = arith.divf %148, %149 : vector<2x32xf32>
    %151 = arith.mulf %142, %79 : vector<2x32xf32>
    %152 = arith.mulf %136, %144 : vector<2x32xf32>
    %153 = arith.addf %151, %152 : vector<2x32xf32>
    %154 = math.tanh %153 : vector<2x32xf32>
    %155 = arith.mulf %150, %154 : vector<2x32xf32>
    %156 = arith.index_cast %c1_i32 : i32 to index
    %c0_44 = arith.constant 0 : index
    %c0_45 = arith.constant 0 : index
    %157 = vector.load %arg7[%156, %c0_44, %c0_45] : memref<8x2x32xf32, #tpu.memory_space<vmem>>, vector<1x2x32xf32>
    %158 = vector.shape_cast %157 : vector<1x2x32xf32> to vector<2x32xf32>
    %159 = vector.shape_cast %130 : vector<2x32xf32> to vector<1x2x32xf32>
    tpu.vector_store %arg7[%156, %c0_44, %c0_45], %159 {strides = array<i32>} : memref<8x2x32xf32, #tpu.memory_space<vmem>>, vector<1x2x32xf32>,
    %160 = arith.index_cast %91 : i32 to index
    %c0_46 = arith.constant 0 : index
    %c0_47 = arith.constant 0 : index
    %161 = vector.load %arg8[%160, %c0_46, %c0_47] : memref<8x2x32xf32, #tpu.memory_space<vmem>>, vector<1x2x32xf32>
    %162 = vector.shape_cast %161 : vector<1x2x32xf32> to vector<2x32xf32>
    %163 = vector.shape_cast %155 : vector<2x32xf32> to vector<1x2x32xf32>
    tpu.vector_store %arg8[%160, %c0_46, %c0_47], %163 {strides = array<i32>} : memref<8x2x32xf32, #tpu.memory_space<vmem>>, vector<1x2x32xf32>,
    %164 = tpu.concatenate %130, %155 in 1 : vector<2x32xf32>, vector<2x32xf32> -> vector<2x64xf32>
    %c2_i32 = arith.constant 2 : i32
    %c7_i32_48 = arith.constant 7 : i32
    %165 = arith.subi %c7_i32_48, %c2_i32 : i32
    %166 = arith.truncf %164 : vector<2x64xf32> to vector<2x64xbf16>
    %cst_49 = arith.constant dense<0.000000e+00> : vector<2x256xf32>
    %167 = tpu.matmul %166, %14, %cst_49 {dimension_numbers = #tpu.dot_dimension_numbers<[1], [0], [0], [1], [0, 0, 1, 1], [], []>} : vector<2x64xbf16>, vector<64x256xbf16>, vector<2x256xf32> -> vector<2x256xf32>
    %168 = arith.index_cast %c2_i32 : i32 to index
    %c0_50 = arith.constant 0 : index
    %c0_51 = arith.constant 0 : index
    %169 = vector.load %arg6[%168, %c0_50, %c0_51] : memref<8x2x256xf32, #tpu.memory_space<vmem>>, vector<1x2x256xf32>
    %170 = vector.shape_cast %169 : vector<1x2x256xf32> to vector<2x256xf32>
    %171 = vector.extract_strided_slice %170 {offsets = [0, 0], sizes = [2, 128], strides = [1, 1]} : vector<2x256xf32> to vector<2x128xf32>
    %172 = vector.extract_strided_slice %167 {offsets = [0, 0], sizes = [2, 128], strides = [1, 1]} : vector<2x256xf32> to vector<2x128xf32>
    %173 = arith.addf %171, %172 : vector<2x128xf32>
    %174 = arith.index_cast %165 : i32 to index
    %c0_52 = arith.constant 0 : index
    %c0_53 = arith.constant 0 : index
    %175 = vector.load %arg6[%174, %c0_52, %c0_53] : memref<8x2x256xf32, #tpu.memory_space<vmem>>, vector<1x2x256xf32>
    %176 = vector.shape_cast %175 : vector<1x2x256xf32> to vector<2x256xf32>
    %177 = vector.extract_strided_slice %176 {offsets = [0, 128], sizes = [2, 128], strides = [1, 1]} : vector<2x256xf32> to vector<2x128xf32>
    %178 = vector.extract_strided_slice %167 {offsets = [0, 128], sizes = [2, 128], strides = [1, 1]} : vector<2x256xf32> to vector<2x128xf32>
    %179 = arith.addf %177, %178 : vector<2x128xf32>
    %180 = vector.extract_strided_slice %173 {offsets = [0, 0], sizes = [2, 32], strides = [1, 1]} : vector<2x128xf32> to vector<2x32xf32>
    %181 = arith.negf %180 : vector<2x32xf32>
    %182 = math.exp %181 : vector<2x32xf32>
    %cst_54 = arith.constant 1.000000e+00 : f32
    %183 = vector.broadcast %cst_54 : f32 to vector<2x32xf32>
    %184 = arith.addf %183, %182 : vector<2x32xf32>
    %185 = arith.divf %183, %184 : vector<2x32xf32>
    %186 = vector.extract_strided_slice %173 {offsets = [0, 32], sizes = [2, 32], strides = [1, 1]} : vector<2x128xf32> to vector<2x32xf32>
    %187 = arith.negf %186 : vector<2x32xf32>
    %188 = math.exp %187 : vector<2x32xf32>
    %cst_55 = arith.constant 1.000000e+00 : f32
    %189 = vector.broadcast %cst_55 : f32 to vector<2x32xf32>
    %190 = arith.addf %189, %188 : vector<2x32xf32>
    %191 = arith.divf %189, %190 : vector<2x32xf32>
    %192 = vector.extract_strided_slice %173 {offsets = [0, 64], sizes = [2, 32], strides = [1, 1]} : vector<2x128xf32> to vector<2x32xf32>
    %193 = math.tanh %192 : vector<2x32xf32>
    %194 = vector.extract_strided_slice %173 {offsets = [0, 96], sizes = [2, 32], strides = [1, 1]} : vector<2x128xf32> to vector<2x32xf32>
    %195 = arith.negf %194 : vector<2x32xf32>
    %196 = math.exp %195 : vector<2x32xf32>
    %cst_56 = arith.constant 1.000000e+00 : f32
    %197 = vector.broadcast %cst_56 : f32 to vector<2x32xf32>
    %198 = arith.addf %197, %196 : vector<2x32xf32>
    %199 = arith.divf %197, %198 : vector<2x32xf32>
    %200 = arith.mulf %191, %128 : vector<2x32xf32>
    %201 = arith.mulf %185, %193 : vector<2x32xf32>
    %202 = arith.addf %200, %201 : vector<2x32xf32>
    %203 = math.tanh %202 : vector<2x32xf32>
    %204 = arith.mulf %199, %203 : vector<2x32xf32>
    %205 = vector.extract_strided_slice %179 {offsets = [0, 0], sizes = [2, 32], strides = [1, 1]} : vector<2x128xf32> to vector<2x32xf32>
    %206 = arith.negf %205 : vector<2x32xf32>
    %207 = math.exp %206 : vector<2x32xf32>
    %cst_57 = arith.constant 1.000000e+00 : f32
    %208 = vector.broadcast %cst_57 : f32 to vector<2x32xf32>
    %209 = arith.addf %208, %207 : vector<2x32xf32>
    %210 = arith.divf %208, %209 : vector<2x32xf32>
    %211 = vector.extract_strided_slice %179 {offsets = [0, 32], sizes = [2, 32], strides = [1, 1]} : vector<2x128xf32> to vector<2x32xf32>
    %212 = arith.negf %211 : vector<2x32xf32>
    %213 = math.exp %212 : vector<2x32xf32>
    %cst_58 = arith.constant 1.000000e+00 : f32
    %214 = vector.broadcast %cst_58 : f32 to vector<2x32xf32>
    %215 = arith.addf %214, %213 : vector<2x32xf32>
    %216 = arith.divf %214, %215 : vector<2x32xf32>
    %217 = vector.extract_strided_slice %179 {offsets = [0, 64], sizes = [2, 32], strides = [1, 1]} : vector<2x128xf32> to vector<2x32xf32>
    %218 = math.tanh %217 : vector<2x32xf32>
    %219 = vector.extract_strided_slice %179 {offsets = [0, 96], sizes = [2, 32], strides = [1, 1]} : vector<2x128xf32> to vector<2x32xf32>
    %220 = arith.negf %219 : vector<2x32xf32>
    %221 = math.exp %220 : vector<2x32xf32>
    %cst_59 = arith.constant 1.000000e+00 : f32
    %222 = vector.broadcast %cst_59 : f32 to vector<2x32xf32>
    %223 = arith.addf %222, %221 : vector<2x32xf32>
    %224 = arith.divf %222, %223 : vector<2x32xf32>
    %225 = arith.mulf %216, %153 : vector<2x32xf32>
    %226 = arith.mulf %210, %218 : vector<2x32xf32>
    %227 = arith.addf %225, %226 : vector<2x32xf32>
    %228 = math.tanh %227 : vector<2x32xf32>
    %229 = arith.mulf %224, %228 : vector<2x32xf32>
    %230 = arith.index_cast %c2_i32 : i32 to index
    %c0_60 = arith.constant 0 : index
    %c0_61 = arith.constant 0 : index
    %231 = vector.load %arg7[%230, %c0_60, %c0_61] : memref<8x2x32xf32, #tpu.memory_space<vmem>>, vector<1x2x32xf32>
    %232 = vector.shape_cast %231 : vector<1x2x32xf32> to vector<2x32xf32>
    %233 = vector.shape_cast %204 : vector<2x32xf32> to vector<1x2x32xf32>
    tpu.vector_store %arg7[%230, %c0_60, %c0_61], %233 {strides = array<i32>} : memref<8x2x32xf32, #tpu.memory_space<vmem>>, vector<1x2x32xf32>,
    %234 = arith.index_cast %165 : i32 to index
    %c0_62 = arith.constant 0 : index
    %c0_63 = arith.constant 0 : index
    %235 = vector.load %arg8[%234, %c0_62, %c0_63] : memref<8x2x32xf32, #tpu.memory_space<vmem>>, vector<1x2x32xf32>
    %236 = vector.shape_cast %235 : vector<1x2x32xf32> to vector<2x32xf32>
    %237 = vector.shape_cast %229 : vector<2x32xf32> to vector<1x2x32xf32>
    tpu.vector_store %arg8[%234, %c0_62, %c0_63], %237 {strides = array<i32>} : memref<8x2x32xf32, #tpu.memory_space<vmem>>, vector<1x2x32xf32>,
    %238 = tpu.concatenate %204, %229 in 1 : vector<2x32xf32>, vector<2x32xf32> -> vector<2x64xf32>
    %c3_i32 = arith.constant 3 : i32
    %c7_i32_64 = arith.constant 7 : i32
    %239 = arith.subi %c7_i32_64, %c3_i32 : i32
    %240 = arith.truncf %238 : vector<2x64xf32> to vector<2x64xbf16>
    %cst_65 = arith.constant dense<0.000000e+00> : vector<2x256xf32>
    %241 = tpu.matmul %240, %14, %cst_65 {dimension_numbers = #tpu.dot_dimension_numbers<[1], [0], [0], [1], [0, 0, 1, 1], [], []>} : vector<2x64xbf16>, vector<64x256xbf16>, vector<2x256xf32> -> vector<2x256xf32>
    %242 = arith.index_cast %c3_i32 : i32 to index
    %c0_66 = arith.constant 0 : index
    %c0_67 = arith.constant 0 : index
    %243 = vector.load %arg6[%242, %c0_66, %c0_67] : memref<8x2x256xf32, #tpu.memory_space<vmem>>, vector<1x2x256xf32>
    %244 = vector.shape_cast %243 : vector<1x2x256xf32> to vector<2x256xf32>
    %245 = vector.extract_strided_slice %244 {offsets = [0, 0], sizes = [2, 128], strides = [1, 1]} : vector<2x256xf32> to vector<2x128xf32>
    %246 = vector.extract_strided_slice %241 {offsets = [0, 0], sizes = [2, 128], strides = [1, 1]} : vector<2x256xf32> to vector<2x128xf32>
    %247 = arith.addf %245, %246 : vector<2x128xf32>
    %248 = arith.index_cast %239 : i32 to index
    %c0_68 = arith.constant 0 : index
    %c0_69 = arith.constant 0 : index
    %249 = vector.load %arg6[%248, %c0_68, %c0_69] : memref<8x2x256xf32, #tpu.memory_space<vmem>>, vector<1x2x256xf32>
    %250 = vector.shape_cast %249 : vector<1x2x256xf32> to vector<2x256xf32>
    %251 = vector.extract_strided_slice %250 {offsets = [0, 128], sizes = [2, 128], strides = [1, 1]} : vector<2x256xf32> to vector<2x128xf32>
    %252 = vector.extract_strided_slice %241 {offsets = [0, 128], sizes = [2, 128], strides = [1, 1]} : vector<2x256xf32> to vector<2x128xf32>
    %253 = arith.addf %251, %252 : vector<2x128xf32>
    %254 = vector.extract_strided_slice %247 {offsets = [0, 0], sizes = [2, 32], strides = [1, 1]} : vector<2x128xf32> to vector<2x32xf32>
    %255 = arith.negf %254 : vector<2x32xf32>
    %256 = math.exp %255 : vector<2x32xf32>
    %cst_70 = arith.constant 1.000000e+00 : f32
    %257 = vector.broadcast %cst_70 : f32 to vector<2x32xf32>
    %258 = arith.addf %257, %256 : vector<2x32xf32>
    %259 = arith.divf %257, %258 : vector<2x32xf32>
    %260 = vector.extract_strided_slice %247 {offsets = [0, 32], sizes = [2, 32], strides = [1, 1]} : vector<2x128xf32> to vector<2x32xf32>
    %261 = arith.negf %260 : vector<2x32xf32>
    %262 = math.exp %261 : vector<2x32xf32>
    %cst_71 = arith.constant 1.000000e+00 : f32
    %263 = vector.broadcast %cst_71 : f32 to vector<2x32xf32>
    %264 = arith.addf %263, %262 : vector<2x32xf32>
    %265 = arith.divf %263, %264 : vector<2x32xf32>
    %266 = vector.extract_strided_slice %247 {offsets = [0, 64], sizes = [2, 32], strides = [1, 1]} : vector<2x128xf32> to vector<2x32xf32>
    %267 = math.tanh %266 : vector<2x32xf32>
    %268 = vector.extract_strided_slice %247 {offsets = [0, 96], sizes = [2, 32], strides = [1, 1]} : vector<2x128xf32> to vector<2x32xf32>
    %269 = arith.negf %268 : vector<2x32xf32>
    %270 = math.exp %269 : vector<2x32xf32>
    %cst_72 = arith.constant 1.000000e+00 : f32
    %271 = vector.broadcast %cst_72 : f32 to vector<2x32xf32>
    %272 = arith.addf %271, %270 : vector<2x32xf32>
    %273 = arith.divf %271, %272 : vector<2x32xf32>
    %274 = arith.mulf %265, %202 : vector<2x32xf32>
    %275 = arith.mulf %259, %267 : vector<2x32xf32>
    %276 = arith.addf %274, %275 : vector<2x32xf32>
    %277 = math.tanh %276 : vector<2x32xf32>
    %278 = arith.mulf %273, %277 : vector<2x32xf32>
    %279 = vector.extract_strided_slice %253 {offsets = [0, 0], sizes = [2, 32], strides = [1, 1]} : vector<2x128xf32> to vector<2x32xf32>
    %280 = arith.negf %279 : vector<2x32xf32>
    %281 = math.exp %280 : vector<2x32xf32>
    %cst_73 = arith.constant 1.000000e+00 : f32
    %282 = vector.broadcast %cst_73 : f32 to vector<2x32xf32>
    %283 = arith.addf %282, %281 : vector<2x32xf32>
    %284 = arith.divf %282, %283 : vector<2x32xf32>
    %285 = vector.extract_strided_slice %253 {offsets = [0, 32], sizes = [2, 32], strides = [1, 1]} : vector<2x128xf32> to vector<2x32xf32>
    %286 = arith.negf %285 : vector<2x32xf32>
    %287 = math.exp %286 : vector<2x32xf32>
    %cst_74 = arith.constant 1.000000e+00 : f32
    %288 = vector.broadcast %cst_74 : f32 to vector<2x32xf32>
    %289 = arith.addf %288, %287 : vector<2x32xf32>
    %290 = arith.divf %288, %289 : vector<2x32xf32>
    %291 = vector.extract_strided_slice %253 {offsets = [0, 64], sizes = [2, 32], strides = [1, 1]} : vector<2x128xf32> to vector<2x32xf32>
    %292 = math.tanh %291 : vector<2x32xf32>
    %293 = vector.extract_strided_slice %253 {offsets = [0, 96], sizes = [2, 32], strides = [1, 1]} : vector<2x128xf32> to vector<2x32xf32>
    %294 = arith.negf %293 : vector<2x32xf32>
    %295 = math.exp %294 : vector<2x32xf32>
    %cst_75 = arith.constant 1.000000e+00 : f32
    %296 = vector.broadcast %cst_75 : f32 to vector<2x32xf32>
    %297 = arith.addf %296, %295 : vector<2x32xf32>
    %298 = arith.divf %296, %297 : vector<2x32xf32>
    %299 = arith.mulf %290, %227 : vector<2x32xf32>
    %300 = arith.mulf %284, %292 : vector<2x32xf32>
    %301 = arith.addf %299, %300 : vector<2x32xf32>
    %302 = math.tanh %301 : vector<2x32xf32>
    %303 = arith.mulf %298, %302 : vector<2x32xf32>
    %304 = arith.index_cast %c3_i32 : i32 to index
    %c0_76 = arith.constant 0 : index
    %c0_77 = arith.constant 0 : index
    %305 = vector.load %arg7[%304, %c0_76, %c0_77] : memref<8x2x32xf32, #tpu.memory_space<vmem>>, vector<1x2x32xf32>
    %306 = vector.shape_cast %305 : vector<1x2x32xf32> to vector<2x32xf32>
    %307 = vector.shape_cast %278 : vector<2x32xf32> to vector<1x2x32xf32>
    tpu.vector_store %arg7[%304, %c0_76, %c0_77], %307 {strides = array<i32>} : memref<8x2x32xf32, #tpu.memory_space<vmem>>, vector<1x2x32xf32>,
    %308 = arith.index_cast %239 : i32 to index
    %c0_78 = arith.constant 0 : index
    %c0_79 = arith.constant 0 : index
    %309 = vector.load %arg8[%308, %c0_78, %c0_79] : memref<8x2x32xf32, #tpu.memory_space<vmem>>, vector<1x2x32xf32>
    %310 = vector.shape_cast %309 : vector<1x2x32xf32> to vector<2x32xf32>
    %311 = vector.shape_cast %303 : vector<2x32xf32> to vector<1x2x32xf32>
    tpu.vector_store %arg8[%308, %c0_78, %c0_79], %311 {strides = array<i32>} : memref<8x2x32xf32, #tpu.memory_space<vmem>>, vector<1x2x32xf32>,
    %312 = tpu.concatenate %278, %303 in 1 : vector<2x32xf32>, vector<2x32xf32> -> vector<2x64xf32>
    %c4_i32 = arith.constant 4 : i32
    %c7_i32_80 = arith.constant 7 : i32
    %313 = arith.subi %c7_i32_80, %c4_i32 : i32
    %314 = arith.truncf %312 : vector<2x64xf32> to vector<2x64xbf16>
    %cst_81 = arith.constant dense<0.000000e+00> : vector<2x256xf32>
    %315 = tpu.matmul %314, %14, %cst_81 {dimension_numbers = #tpu.dot_dimension_numbers<[1], [0], [0], [1], [0, 0, 1, 1], [], []>} : vector<2x64xbf16>, vector<64x256xbf16>, vector<2x256xf32> -> vector<2x256xf32>
    %316 = arith.index_cast %c4_i32 : i32 to index
    %c0_82 = arith.constant 0 : index
    %c0_83 = arith.constant 0 : index
    %317 = vector.load %arg6[%316, %c0_82, %c0_83] : memref<8x2x256xf32, #tpu.memory_space<vmem>>, vector<1x2x256xf32>
    %318 = vector.shape_cast %317 : vector<1x2x256xf32> to vector<2x256xf32>
    %319 = vector.extract_strided_slice %318 {offsets = [0, 0], sizes = [2, 128], strides = [1, 1]} : vector<2x256xf32> to vector<2x128xf32>
    %320 = vector.extract_strided_slice %315 {offsets = [0, 0], sizes = [2, 128], strides = [1, 1]} : vector<2x256xf32> to vector<2x128xf32>
    %321 = arith.addf %319, %320 : vector<2x128xf32>
    %322 = arith.index_cast %313 : i32 to index
    %c0_84 = arith.constant 0 : index
    %c0_85 = arith.constant 0 : index
    %323 = vector.load %arg6[%322, %c0_84, %c0_85] : memref<8x2x256xf32, #tpu.memory_space<vmem>>, vector<1x2x256xf32>
    %324 = vector.shape_cast %323 : vector<1x2x256xf32> to vector<2x256xf32>
    %325 = vector.extract_strided_slice %324 {offsets = [0, 128], sizes = [2, 128], strides = [1, 1]} : vector<2x256xf32> to vector<2x128xf32>
    %326 = vector.extract_strided_slice %315 {offsets = [0, 128], sizes = [2, 128], strides = [1, 1]} : vector<2x256xf32> to vector<2x128xf32>
    %327 = arith.addf %325, %326 : vector<2x128xf32>
    %328 = vector.extract_strided_slice %321 {offsets = [0, 0], sizes = [2, 32], strides = [1, 1]} : vector<2x128xf32> to vector<2x32xf32>
    %329 = arith.negf %328 : vector<2x32xf32>
    %330 = math.exp %329 : vector<2x32xf32>
    %cst_86 = arith.constant 1.000000e+00 : f32
    %331 = vector.broadcast %cst_86 : f32 to vector<2x32xf32>
    %332 = arith.addf %331, %330 : vector<2x32xf32>
    %333 = arith.divf %331, %332 : vector<2x32xf32>
    %334 = vector.extract_strided_slice %321 {offsets = [0, 32], sizes = [2, 32], strides = [1, 1]} : vector<2x128xf32> to vector<2x32xf32>
    %335 = arith.negf %334 : vector<2x32xf32>
    %336 = math.exp %335 : vector<2x32xf32>
    %cst_87 = arith.constant 1.000000e+00 : f32
    %337 = vector.broadcast %cst_87 : f32 to vector<2x32xf32>
    %338 = arith.addf %337, %336 : vector<2x32xf32>
    %339 = arith.divf %337, %338 : vector<2x32xf32>
    %340 = vector.extract_strided_slice %321 {offsets = [0, 64], sizes = [2, 32], strides = [1, 1]} : vector<2x128xf32> to vector<2x32xf32>
    %341 = math.tanh %340 : vector<2x32xf32>
    %342 = vector.extract_strided_slice %321 {offsets = [0, 96], sizes = [2, 32], strides = [1, 1]} : vector<2x128xf32> to vector<2x32xf32>
    %343 = arith.negf %342 : vector<2x32xf32>
    %344 = math.exp %343 : vector<2x32xf32>
    %cst_88 = arith.constant 1.000000e+00 : f32
    %345 = vector.broadcast %cst_88 : f32 to vector<2x32xf32>
    %346 = arith.addf %345, %344 : vector<2x32xf32>
    %347 = arith.divf %345, %346 : vector<2x32xf32>
    %348 = arith.mulf %339, %276 : vector<2x32xf32>
    %349 = arith.mulf %333, %341 : vector<2x32xf32>
    %350 = arith.addf %348, %349 : vector<2x32xf32>
    %351 = math.tanh %350 : vector<2x32xf32>
    %352 = arith.mulf %347, %351 : vector<2x32xf32>
    %353 = vector.extract_strided_slice %327 {offsets = [0, 0], sizes = [2, 32], strides = [1, 1]} : vector<2x128xf32> to vector<2x32xf32>
    %354 = arith.negf %353 : vector<2x32xf32>
    %355 = math.exp %354 : vector<2x32xf32>
    %cst_89 = arith.constant 1.000000e+00 : f32
    %356 = vector.broadcast %cst_89 : f32 to vector<2x32xf32>
    %357 = arith.addf %356, %355 : vector<2x32xf32>
    %358 = arith.divf %356, %357 : vector<2x32xf32>
    %359 = vector.extract_strided_slice %327 {offsets = [0, 32], sizes = [2, 32], strides = [1, 1]} : vector<2x128xf32> to vector<2x32xf32>
    %360 = arith.negf %359 : vector<2x32xf32>
    %361 = math.exp %360 : vector<2x32xf32>
    %cst_90 = arith.constant 1.000000e+00 : f32
    %362 = vector.broadcast %cst_90 : f32 to vector<2x32xf32>
    %363 = arith.addf %362, %361 : vector<2x32xf32>
    %364 = arith.divf %362, %363 : vector<2x32xf32>
    %365 = vector.extract_strided_slice %327 {offsets = [0, 64], sizes = [2, 32], strides = [1, 1]} : vector<2x128xf32> to vector<2x32xf32>
    %366 = math.tanh %365 : vector<2x32xf32>
    %367 = vector.extract_strided_slice %327 {offsets = [0, 96], sizes = [2, 32], strides = [1, 1]} : vector<2x128xf32> to vector<2x32xf32>
    %368 = arith.negf %367 : vector<2x32xf32>
    %369 = math.exp %368 : vector<2x32xf32>
    %cst_91 = arith.constant 1.000000e+00 : f32
    %370 = vector.broadcast %cst_91 : f32 to vector<2x32xf32>
    %371 = arith.addf %370, %369 : vector<2x32xf32>
    %372 = arith.divf %370, %371 : vector<2x32xf32>
    %373 = arith.mulf %364, %301 : vector<2x32xf32>
    %374 = arith.mulf %358, %366 : vector<2x32xf32>
    %375 = arith.addf %373, %374 : vector<2x32xf32>
    %376 = math.tanh %375 : vector<2x32xf32>
    %377 = arith.mulf %372, %376 : vector<2x32xf32>
    %378 = arith.index_cast %c4_i32 : i32 to index
    %c0_92 = arith.constant 0 : index
    %c0_93 = arith.constant 0 : index
    %379 = vector.load %arg7[%378, %c0_92, %c0_93] : memref<8x2x32xf32, #tpu.memory_space<vmem>>, vector<1x2x32xf32>
    %380 = vector.shape_cast %379 : vector<1x2x32xf32> to vector<2x32xf32>
    %381 = vector.shape_cast %352 : vector<2x32xf32> to vector<1x2x32xf32>
    tpu.vector_store %arg7[%378, %c0_92, %c0_93], %381 {strides = array<i32>} : memref<8x2x32xf32, #tpu.memory_space<vmem>>, vector<1x2x32xf32>,
    %382 = arith.index_cast %313 : i32 to index
    %c0_94 = arith.constant 0 : index
    %c0_95 = arith.constant 0 : index
    %383 = vector.load %arg8[%382, %c0_94, %c0_95] : memref<8x2x32xf32, #tpu.memory_space<vmem>>, vector<1x2x32xf32>
    %384 = vector.shape_cast %383 : vector<1x2x32xf32> to vector<2x32xf32>
    %385 = vector.shape_cast %377 : vector<2x32xf32> to vector<1x2x32xf32>
    tpu.vector_store %arg8[%382, %c0_94, %c0_95], %385 {strides = array<i32>} : memref<8x2x32xf32, #tpu.memory_space<vmem>>, vector<1x2x32xf32>,
    %386 = tpu.concatenate %352, %377 in 1 : vector<2x32xf32>, vector<2x32xf32> -> vector<2x64xf32>
    %c5_i32 = arith.constant 5 : i32
    %c7_i32_96 = arith.constant 7 : i32
    %387 = arith.subi %c7_i32_96, %c5_i32 : i32
    %388 = arith.truncf %386 : vector<2x64xf32> to vector<2x64xbf16>
    %cst_97 = arith.constant dense<0.000000e+00> : vector<2x256xf32>
    %389 = tpu.matmul %388, %14, %cst_97 {dimension_numbers = #tpu.dot_dimension_numbers<[1], [0], [0], [1], [0, 0, 1, 1], [], []>} : vector<2x64xbf16>, vector<64x256xbf16>, vector<2x256xf32> -> vector<2x256xf32>
    %390 = arith.index_cast %c5_i32 : i32 to index
    %c0_98 = arith.constant 0 : index
    %c0_99 = arith.constant 0 : index
    %391 = vector.load %arg6[%390, %c0_98, %c0_99] : memref<8x2x256xf32, #tpu.memory_space<vmem>>, vector<1x2x256xf32>
    %392 = vector.shape_cast %391 : vector<1x2x256xf32> to vector<2x256xf32>
    %393 = vector.extract_strided_slice %392 {offsets = [0, 0], sizes = [2, 128], strides = [1, 1]} : vector<2x256xf32> to vector<2x128xf32>
    %394 = vector.extract_strided_slice %389 {offsets = [0, 0], sizes = [2, 128], strides = [1, 1]} : vector<2x256xf32> to vector<2x128xf32>
    %395 = arith.addf %393, %394 : vector<2x128xf32>
    %396 = arith.index_cast %387 : i32 to index
    %c0_100 = arith.constant 0 : index
    %c0_101 = arith.constant 0 : index
    %397 = vector.load %arg6[%396, %c0_100, %c0_101] : memref<8x2x256xf32, #tpu.memory_space<vmem>>, vector<1x2x256xf32>
    %398 = vector.shape_cast %397 : vector<1x2x256xf32> to vector<2x256xf32>
    %399 = vector.extract_strided_slice %398 {offsets = [0, 128], sizes = [2, 128], strides = [1, 1]} : vector<2x256xf32> to vector<2x128xf32>
    %400 = vector.extract_strided_slice %389 {offsets = [0, 128], sizes = [2, 128], strides = [1, 1]} : vector<2x256xf32> to vector<2x128xf32>
    %401 = arith.addf %399, %400 : vector<2x128xf32>
    %402 = vector.extract_strided_slice %395 {offsets = [0, 0], sizes = [2, 32], strides = [1, 1]} : vector<2x128xf32> to vector<2x32xf32>
    %403 = arith.negf %402 : vector<2x32xf32>
    %404 = math.exp %403 : vector<2x32xf32>
    %cst_102 = arith.constant 1.000000e+00 : f32
    %405 = vector.broadcast %cst_102 : f32 to vector<2x32xf32>
    %406 = arith.addf %405, %404 : vector<2x32xf32>
    %407 = arith.divf %405, %406 : vector<2x32xf32>
    %408 = vector.extract_strided_slice %395 {offsets = [0, 32], sizes = [2, 32], strides = [1, 1]} : vector<2x128xf32> to vector<2x32xf32>
    %409 = arith.negf %408 : vector<2x32xf32>
    %410 = math.exp %409 : vector<2x32xf32>
    %cst_103 = arith.constant 1.000000e+00 : f32
    %411 = vector.broadcast %cst_103 : f32 to vector<2x32xf32>
    %412 = arith.addf %411, %410 : vector<2x32xf32>
    %413 = arith.divf %411, %412 : vector<2x32xf32>
    %414 = vector.extract_strided_slice %395 {offsets = [0, 64], sizes = [2, 32], strides = [1, 1]} : vector<2x128xf32> to vector<2x32xf32>
    %415 = math.tanh %414 : vector<2x32xf32>
    %416 = vector.extract_strided_slice %395 {offsets = [0, 96], sizes = [2, 32], strides = [1, 1]} : vector<2x128xf32> to vector<2x32xf32>
    %417 = arith.negf %416 : vector<2x32xf32>
    %418 = math.exp %417 : vector<2x32xf32>
    %cst_104 = arith.constant 1.000000e+00 : f32
    %419 = vector.broadcast %cst_104 : f32 to vector<2x32xf32>
    %420 = arith.addf %419, %418 : vector<2x32xf32>
    %421 = arith.divf %419, %420 : vector<2x32xf32>
    %422 = arith.mulf %413, %350 : vector<2x32xf32>
    %423 = arith.mulf %407, %415 : vector<2x32xf32>
    %424 = arith.addf %422, %423 : vector<2x32xf32>
    %425 = math.tanh %424 : vector<2x32xf32>
    %426 = arith.mulf %421, %425 : vector<2x32xf32>
    %427 = vector.extract_strided_slice %401 {offsets = [0, 0], sizes = [2, 32], strides = [1, 1]} : vector<2x128xf32> to vector<2x32xf32>
    %428 = arith.negf %427 : vector<2x32xf32>
    %429 = math.exp %428 : vector<2x32xf32>
    %cst_105 = arith.constant 1.000000e+00 : f32
    %430 = vector.broadcast %cst_105 : f32 to vector<2x32xf32>
    %431 = arith.addf %430, %429 : vector<2x32xf32>
    %432 = arith.divf %430, %431 : vector<2x32xf32>
    %433 = vector.extract_strided_slice %401 {offsets = [0, 32], sizes = [2, 32], strides = [1, 1]} : vector<2x128xf32> to vector<2x32xf32>
    %434 = arith.negf %433 : vector<2x32xf32>
    %435 = math.exp %434 : vector<2x32xf32>
    %cst_106 = arith.constant 1.000000e+00 : f32
    %436 = vector.broadcast %cst_106 : f32 to vector<2x32xf32>
    %437 = arith.addf %436, %435 : vector<2x32xf32>
    %438 = arith.divf %436, %437 : vector<2x32xf32>
    %439 = vector.extract_strided_slice %401 {offsets = [0, 64], sizes = [2, 32], strides = [1, 1]} : vector<2x128xf32> to vector<2x32xf32>
    %440 = math.tanh %439 : vector<2x32xf32>
    %441 = vector.extract_strided_slice %401 {offsets = [0, 96], sizes = [2, 32], strides = [1, 1]} : vector<2x128xf32> to vector<2x32xf32>
    %442 = arith.negf %441 : vector<2x32xf32>
    %443 = math.exp %442 : vector<2x32xf32>
    %cst_107 = arith.constant 1.000000e+00 : f32
    %444 = vector.broadcast %cst_107 : f32 to vector<2x32xf32>
    %445 = arith.addf %444, %443 : vector<2x32xf32>
    %446 = arith.divf %444, %445 : vector<2x32xf32>
    %447 = arith.mulf %438, %375 : vector<2x32xf32>
    %448 = arith.mulf %432, %440 : vector<2x32xf32>
    %449 = arith.addf %447, %448 : vector<2x32xf32>
    %450 = math.tanh %449 : vector<2x32xf32>
    %451 = arith.mulf %446, %450 : vector<2x32xf32>
    %452 = arith.index_cast %c5_i32 : i32 to index
    %c0_108 = arith.constant 0 : index
    %c0_109 = arith.constant 0 : index
    %453 = vector.load %arg7[%452, %c0_108, %c0_109] : memref<8x2x32xf32, #tpu.memory_space<vmem>>, vector<1x2x32xf32>
    %454 = vector.shape_cast %453 : vector<1x2x32xf32> to vector<2x32xf32>
    %455 = vector.shape_cast %426 : vector<2x32xf32> to vector<1x2x32xf32>
    tpu.vector_store %arg7[%452, %c0_108, %c0_109], %455 {strides = array<i32>} : memref<8x2x32xf32, #tpu.memory_space<vmem>>, vector<1x2x32xf32>,
    %456 = arith.index_cast %387 : i32 to index
    %c0_110 = arith.constant 0 : index
    %c0_111 = arith.constant 0 : index
    %457 = vector.load %arg8[%456, %c0_110, %c0_111] : memref<8x2x32xf32, #tpu.memory_space<vmem>>, vector<1x2x32xf32>
    %458 = vector.shape_cast %457 : vector<1x2x32xf32> to vector<2x32xf32>
    %459 = vector.shape_cast %451 : vector<2x32xf32> to vector<1x2x32xf32>
    tpu.vector_store %arg8[%456, %c0_110, %c0_111], %459 {strides = array<i32>} : memref<8x2x32xf32, #tpu.memory_space<vmem>>, vector<1x2x32xf32>,
    %460 = tpu.concatenate %426, %451 in 1 : vector<2x32xf32>, vector<2x32xf32> -> vector<2x64xf32>
    %c6_i32 = arith.constant 6 : i32
    %c7_i32_112 = arith.constant 7 : i32
    %461 = arith.subi %c7_i32_112, %c6_i32 : i32
    %462 = arith.truncf %460 : vector<2x64xf32> to vector<2x64xbf16>
    %cst_113 = arith.constant dense<0.000000e+00> : vector<2x256xf32>
    %463 = tpu.matmul %462, %14, %cst_113 {dimension_numbers = #tpu.dot_dimension_numbers<[1], [0], [0], [1], [0, 0, 1, 1], [], []>} : vector<2x64xbf16>, vector<64x256xbf16>, vector<2x256xf32> -> vector<2x256xf32>
    %464 = arith.index_cast %c6_i32 : i32 to index
    %c0_114 = arith.constant 0 : index
    %c0_115 = arith.constant 0 : index
    %465 = vector.load %arg6[%464, %c0_114, %c0_115] : memref<8x2x256xf32, #tpu.memory_space<vmem>>, vector<1x2x256xf32>
    %466 = vector.shape_cast %465 : vector<1x2x256xf32> to vector<2x256xf32>
    %467 = vector.extract_strided_slice %466 {offsets = [0, 0], sizes = [2, 128], strides = [1, 1]} : vector<2x256xf32> to vector<2x128xf32>
    %468 = vector.extract_strided_slice %463 {offsets = [0, 0], sizes = [2, 128], strides = [1, 1]} : vector<2x256xf32> to vector<2x128xf32>
    %469 = arith.addf %467, %468 : vector<2x128xf32>
    %470 = arith.index_cast %461 : i32 to index
    %c0_116 = arith.constant 0 : index
    %c0_117 = arith.constant 0 : index
    %471 = vector.load %arg6[%470, %c0_116, %c0_117] : memref<8x2x256xf32, #tpu.memory_space<vmem>>, vector<1x2x256xf32>
    %472 = vector.shape_cast %471 : vector<1x2x256xf32> to vector<2x256xf32>
    %473 = vector.extract_strided_slice %472 {offsets = [0, 128], sizes = [2, 128], strides = [1, 1]} : vector<2x256xf32> to vector<2x128xf32>
    %474 = vector.extract_strided_slice %463 {offsets = [0, 128], sizes = [2, 128], strides = [1, 1]} : vector<2x256xf32> to vector<2x128xf32>
    %475 = arith.addf %473, %474 : vector<2x128xf32>
    %476 = vector.extract_strided_slice %469 {offsets = [0, 0], sizes = [2, 32], strides = [1, 1]} : vector<2x128xf32> to vector<2x32xf32>
    %477 = arith.negf %476 : vector<2x32xf32>
    %478 = math.exp %477 : vector<2x32xf32>
    %cst_118 = arith.constant 1.000000e+00 : f32
    %479 = vector.broadcast %cst_118 : f32 to vector<2x32xf32>
    %480 = arith.addf %479, %478 : vector<2x32xf32>
    %481 = arith.divf %479, %480 : vector<2x32xf32>
    %482 = vector.extract_strided_slice %469 {offsets = [0, 32], sizes = [2, 32], strides = [1, 1]} : vector<2x128xf32> to vector<2x32xf32>
    %483 = arith.negf %482 : vector<2x32xf32>
    %484 = math.exp %483 : vector<2x32xf32>
    %cst_119 = arith.constant 1.000000e+00 : f32
    %485 = vector.broadcast %cst_119 : f32 to vector<2x32xf32>
    %486 = arith.addf %485, %484 : vector<2x32xf32>
    %487 = arith.divf %485, %486 : vector<2x32xf32>
    %488 = vector.extract_strided_slice %469 {offsets = [0, 64], sizes = [2, 32], strides = [1, 1]} : vector<2x128xf32> to vector<2x32xf32>
    %489 = math.tanh %488 : vector<2x32xf32>
    %490 = vector.extract_strided_slice %469 {offsets = [0, 96], sizes = [2, 32], strides = [1, 1]} : vector<2x128xf32> to vector<2x32xf32>
    %491 = arith.negf %490 : vector<2x32xf32>
    %492 = math.exp %491 : vector<2x32xf32>
    %cst_120 = arith.constant 1.000000e+00 : f32
    %493 = vector.broadcast %cst_120 : f32 to vector<2x32xf32>
    %494 = arith.addf %493, %492 : vector<2x32xf32>
    %495 = arith.divf %493, %494 : vector<2x32xf32>
    %496 = arith.mulf %487, %424 : vector<2x32xf32>
    %497 = arith.mulf %481, %489 : vector<2x32xf32>
    %498 = arith.addf %496, %497 : vector<2x32xf32>
    %499 = math.tanh %498 : vector<2x32xf32>
    %500 = arith.mulf %495, %499 : vector<2x32xf32>
    %501 = vector.extract_strided_slice %475 {offsets = [0, 0], sizes = [2, 32], strides = [1, 1]} : vector<2x128xf32> to vector<2x32xf32>
    %502 = arith.negf %501 : vector<2x32xf32>
    %503 = math.exp %502 : vector<2x32xf32>
    %cst_121 = arith.constant 1.000000e+00 : f32
    %504 = vector.broadcast %cst_121 : f32 to vector<2x32xf32>
    %505 = arith.addf %504, %503 : vector<2x32xf32>
    %506 = arith.divf %504, %505 : vector<2x32xf32>
    %507 = vector.extract_strided_slice %475 {offsets = [0, 32], sizes = [2, 32], strides = [1, 1]} : vector<2x128xf32> to vector<2x32xf32>
    %508 = arith.negf %507 : vector<2x32xf32>
    %509 = math.exp %508 : vector<2x32xf32>
    %cst_122 = arith.constant 1.000000e+00 : f32
    %510 = vector.broadcast %cst_122 : f32 to vector<2x32xf32>
    %511 = arith.addf %510, %509 : vector<2x32xf32>
    %512 = arith.divf %510, %511 : vector<2x32xf32>
    %513 = vector.extract_strided_slice %475 {offsets = [0, 64], sizes = [2, 32], strides = [1, 1]} : vector<2x128xf32> to vector<2x32xf32>
    %514 = math.tanh %513 : vector<2x32xf32>
    %515 = vector.extract_strided_slice %475 {offsets = [0, 96], sizes = [2, 32], strides = [1, 1]} : vector<2x128xf32> to vector<2x32xf32>
    %516 = arith.negf %515 : vector<2x32xf32>
    %517 = math.exp %516 : vector<2x32xf32>
    %cst_123 = arith.constant 1.000000e+00 : f32
    %518 = vector.broadcast %cst_123 : f32 to vector<2x32xf32>
    %519 = arith.addf %518, %517 : vector<2x32xf32>
    %520 = arith.divf %518, %519 : vector<2x32xf32>
    %521 = arith.mulf %512, %449 : vector<2x32xf32>
    %522 = arith.mulf %506, %514 : vector<2x32xf32>
    %523 = arith.addf %521, %522 : vector<2x32xf32>
    %524 = math.tanh %523 : vector<2x32xf32>
    %525 = arith.mulf %520, %524 : vector<2x32xf32>
    %526 = arith.index_cast %c6_i32 : i32 to index
    %c0_124 = arith.constant 0 : index
    %c0_125 = arith.constant 0 : index
    %527 = vector.load %arg7[%526, %c0_124, %c0_125] : memref<8x2x32xf32, #tpu.memory_space<vmem>>, vector<1x2x32xf32>
    %528 = vector.shape_cast %527 : vector<1x2x32xf32> to vector<2x32xf32>
    %529 = vector.shape_cast %500 : vector<2x32xf32> to vector<1x2x32xf32>
    tpu.vector_store %arg7[%526, %c0_124, %c0_125], %529 {strides = array<i32>} : memref<8x2x32xf32, #tpu.memory_space<vmem>>, vector<1x2x32xf32>,
    %530 = arith.index_cast %461 : i32 to index
    %c0_126 = arith.constant 0 : index
    %c0_127 = arith.constant 0 : index
    %531 = vector.load %arg8[%530, %c0_126, %c0_127] : memref<8x2x32xf32, #tpu.memory_space<vmem>>, vector<1x2x32xf32>
    %532 = vector.shape_cast %531 : vector<1x2x32xf32> to vector<2x32xf32>
    %533 = vector.shape_cast %525 : vector<2x32xf32> to vector<1x2x32xf32>
    tpu.vector_store %arg8[%530, %c0_126, %c0_127], %533 {strides = array<i32>} : memref<8x2x32xf32, #tpu.memory_space<vmem>>, vector<1x2x32xf32>,
    %534 = tpu.concatenate %500, %525 in 1 : vector<2x32xf32>, vector<2x32xf32> -> vector<2x64xf32>
    %c7_i32_128 = arith.constant 7 : i32
    %c7_i32_129 = arith.constant 7 : i32
    %535 = arith.subi %c7_i32_129, %c7_i32_128 : i32
    %536 = arith.truncf %534 : vector<2x64xf32> to vector<2x64xbf16>
    %cst_130 = arith.constant dense<0.000000e+00> : vector<2x256xf32>
    %537 = tpu.matmul %536, %14, %cst_130 {dimension_numbers = #tpu.dot_dimension_numbers<[1], [0], [0], [1], [0, 0, 1, 1], [], []>} : vector<2x64xbf16>, vector<64x256xbf16>, vector<2x256xf32> -> vector<2x256xf32>
    %538 = arith.index_cast %c7_i32_128 : i32 to index
    %c0_131 = arith.constant 0 : index
    %c0_132 = arith.constant 0 : index
    %539 = vector.load %arg6[%538, %c0_131, %c0_132] : memref<8x2x256xf32, #tpu.memory_space<vmem>>, vector<1x2x256xf32>
    %540 = vector.shape_cast %539 : vector<1x2x256xf32> to vector<2x256xf32>
    %541 = vector.extract_strided_slice %540 {offsets = [0, 0], sizes = [2, 128], strides = [1, 1]} : vector<2x256xf32> to vector<2x128xf32>
    %542 = vector.extract_strided_slice %537 {offsets = [0, 0], sizes = [2, 128], strides = [1, 1]} : vector<2x256xf32> to vector<2x128xf32>
    %543 = arith.addf %541, %542 : vector<2x128xf32>
    %544 = arith.index_cast %535 : i32 to index
    %c0_133 = arith.constant 0 : index
    %c0_134 = arith.constant 0 : index
    %545 = vector.load %arg6[%544, %c0_133, %c0_134] : memref<8x2x256xf32, #tpu.memory_space<vmem>>, vector<1x2x256xf32>
    %546 = vector.shape_cast %545 : vector<1x2x256xf32> to vector<2x256xf32>
    %547 = vector.extract_strided_slice %546 {offsets = [0, 128], sizes = [2, 128], strides = [1, 1]} : vector<2x256xf32> to vector<2x128xf32>
    %548 = vector.extract_strided_slice %537 {offsets = [0, 128], sizes = [2, 128], strides = [1, 1]} : vector<2x256xf32> to vector<2x128xf32>
    %549 = arith.addf %547, %548 : vector<2x128xf32>
    %550 = vector.extract_strided_slice %543 {offsets = [0, 0], sizes = [2, 32], strides = [1, 1]} : vector<2x128xf32> to vector<2x32xf32>
    %551 = arith.negf %550 : vector<2x32xf32>
    %552 = math.exp %551 : vector<2x32xf32>
    %cst_135 = arith.constant 1.000000e+00 : f32
    %553 = vector.broadcast %cst_135 : f32 to vector<2x32xf32>
    %554 = arith.addf %553, %552 : vector<2x32xf32>
    %555 = arith.divf %553, %554 : vector<2x32xf32>
    %556 = vector.extract_strided_slice %543 {offsets = [0, 32], sizes = [2, 32], strides = [1, 1]} : vector<2x128xf32> to vector<2x32xf32>
    %557 = arith.negf %556 : vector<2x32xf32>
    %558 = math.exp %557 : vector<2x32xf32>
    %cst_136 = arith.constant 1.000000e+00 : f32
    %559 = vector.broadcast %cst_136 : f32 to vector<2x32xf32>
    %560 = arith.addf %559, %558 : vector<2x32xf32>
    %561 = arith.divf %559, %560 : vector<2x32xf32>
    %562 = vector.extract_strided_slice %543 {offsets = [0, 64], sizes = [2, 32], strides = [1, 1]} : vector<2x128xf32> to vector<2x32xf32>
    %563 = math.tanh %562 : vector<2x32xf32>
    %564 = vector.extract_strided_slice %543 {offsets = [0, 96], sizes = [2, 32], strides = [1, 1]} : vector<2x128xf32> to vector<2x32xf32>
    %565 = arith.negf %564 : vector<2x32xf32>
    %566 = math.exp %565 : vector<2x32xf32>
    %cst_137 = arith.constant 1.000000e+00 : f32
    %567 = vector.broadcast %cst_137 : f32 to vector<2x32xf32>
    %568 = arith.addf %567, %566 : vector<2x32xf32>
    %569 = arith.divf %567, %568 : vector<2x32xf32>
    %570 = arith.mulf %561, %498 : vector<2x32xf32>
    %571 = arith.mulf %555, %563 : vector<2x32xf32>
    %572 = arith.addf %570, %571 : vector<2x32xf32>
    %573 = math.tanh %572 : vector<2x32xf32>
    %574 = arith.mulf %569, %573 : vector<2x32xf32>
    %575 = vector.extract_strided_slice %549 {offsets = [0, 0], sizes = [2, 32], strides = [1, 1]} : vector<2x128xf32> to vector<2x32xf32>
    %576 = arith.negf %575 : vector<2x32xf32>
    %577 = math.exp %576 : vector<2x32xf32>
    %cst_138 = arith.constant 1.000000e+00 : f32
    %578 = vector.broadcast %cst_138 : f32 to vector<2x32xf32>
    %579 = arith.addf %578, %577 : vector<2x32xf32>
    %580 = arith.divf %578, %579 : vector<2x32xf32>
    %581 = vector.extract_strided_slice %549 {offsets = [0, 32], sizes = [2, 32], strides = [1, 1]} : vector<2x128xf32> to vector<2x32xf32>
    %582 = arith.negf %581 : vector<2x32xf32>
    %583 = math.exp %582 : vector<2x32xf32>
    %cst_139 = arith.constant 1.000000e+00 : f32
    %584 = vector.broadcast %cst_139 : f32 to vector<2x32xf32>
    %585 = arith.addf %584, %583 : vector<2x32xf32>
    %586 = arith.divf %584, %585 : vector<2x32xf32>
    %587 = vector.extract_strided_slice %549 {offsets = [0, 64], sizes = [2, 32], strides = [1, 1]} : vector<2x128xf32> to vector<2x32xf32>
    %588 = math.tanh %587 : vector<2x32xf32>
    %589 = vector.extract_strided_slice %549 {offsets = [0, 96], sizes = [2, 32], strides = [1, 1]} : vector<2x128xf32> to vector<2x32xf32>
    %590 = arith.negf %589 : vector<2x32xf32>
    %591 = math.exp %590 : vector<2x32xf32>
    %cst_140 = arith.constant 1.000000e+00 : f32
    %592 = vector.broadcast %cst_140 : f32 to vector<2x32xf32>
    %593 = arith.addf %592, %591 : vector<2x32xf32>
    %594 = arith.divf %592, %593 : vector<2x32xf32>
    %595 = arith.mulf %586, %523 : vector<2x32xf32>
    %596 = arith.mulf %580, %588 : vector<2x32xf32>
    %597 = arith.addf %595, %596 : vector<2x32xf32>
    %598 = math.tanh %597 : vector<2x32xf32>
    %599 = arith.mulf %594, %598 : vector<2x32xf32>
    %600 = arith.index_cast %c7_i32_128 : i32 to index
    %c0_141 = arith.constant 0 : index
    %c0_142 = arith.constant 0 : index
    %601 = vector.load %arg7[%600, %c0_141, %c0_142] : memref<8x2x32xf32, #tpu.memory_space<vmem>>, vector<1x2x32xf32>
    %602 = vector.shape_cast %601 : vector<1x2x32xf32> to vector<2x32xf32>
    %603 = vector.shape_cast %574 : vector<2x32xf32> to vector<1x2x32xf32>
    tpu.vector_store %arg7[%600, %c0_141, %c0_142], %603 {strides = array<i32>} : memref<8x2x32xf32, #tpu.memory_space<vmem>>, vector<1x2x32xf32>,
    %604 = arith.index_cast %535 : i32 to index
    %c0_143 = arith.constant 0 : index
    %c0_144 = arith.constant 0 : index
    %605 = vector.load %arg8[%604, %c0_143, %c0_144] : memref<8x2x32xf32, #tpu.memory_space<vmem>>, vector<1x2x32xf32>
    %606 = vector.shape_cast %605 : vector<1x2x32xf32> to vector<2x32xf32>
    %607 = vector.shape_cast %599 : vector<2x32xf32> to vector<1x2x32xf32>
    tpu.vector_store %arg8[%604, %c0_143, %c0_144], %607 {strides = array<i32>} : memref<8x2x32xf32, #tpu.memory_space<vmem>>, vector<1x2x32xf32>,
    %608 = tpu.concatenate %574, %599 in 1 : vector<2x32xf32>, vector<2x32xf32> -> vector<2x64xf32>
    %c8_i32 = arith.constant 8 : i32
    %c0_145 = arith.constant 0 : index
    %c0_146 = arith.constant 0 : index
    %c0_147 = arith.constant 0 : index
    %609 = vector.load %arg7[%c0_145, %c0_146, %c0_147] : memref<8x2x32xf32, #tpu.memory_space<vmem>>, vector<8x2x32xf32>
    %c0_148 = arith.constant 0 : index
    %c0_149 = arith.constant 0 : index
    %c0_150 = arith.constant 0 : index
    %610 = vector.load %arg8[%c0_148, %c0_149, %c0_150] : memref<8x2x32xf32, #tpu.memory_space<vmem>>, vector<8x2x32xf32>
    %611 = tpu.concatenate %609, %610 in 2 : vector<8x2x32xf32>, vector<8x2x32xf32> -> vector<8x2x64xf32>
    %c0_151 = arith.constant 0 : index
    %c0_152 = arith.constant 0 : index
    %c0_153 = arith.constant 0 : index
    %c0_154 = arith.constant 0 : index
    %612 = vector.load %arg5[%c0_151, %c0_152, %c0_153, %c0_154] : memref<1x8x2x64xf32, #tpu.memory_space<vmem>>, vector<1x8x2x64xf32>
    %613 = vector.shape_cast %612 : vector<1x8x2x64xf32> to vector<8x2x64xf32>
    %614 = vector.shape_cast %611 : vector<8x2x64xf32> to vector<1x8x2x64xf32>
    tpu.vector_store %arg5[%c0_151, %c0_152, %c0_153, %c0_154], %614 {strides = array<i32>} : memref<1x8x2x64xf32, #tpu.memory_space<vmem>>, vector<1x8x2x64xf32>,
    return
  }
  func.func @transform_0(%arg0: i32) -> (i32, i32, i32, i32) {
    %c0_i32 = arith.constant 0 : i32
    %c0_i32_0 = arith.constant 0 : i32
    %c0_i32_1 = arith.constant 0 : i32
    %c0_i32_2 = arith.constant 0 : i32
    return %arg0, %c0_i32, %c0_i32_0, %c0_i32_1 : i32, i32, i32, i32
  }
  func.func @transform_1(%arg0: i32) -> (i32, i32, i32) {
    %c0_i32 = arith.constant 0 : i32
    %c0_i32_0 = arith.constant 0 : i32
    %c0_i32_1 = arith.constant 0 : i32
    return %arg0, %c0_i32, %c0_i32_0 : i32, i32, i32
  }
  func.func @transform_2(%arg0: i32) -> (i32, i32, i32) {
    %c0_i32 = arith.constant 0 : i32
    %c0_i32_0 = arith.constant 0 : i32
    %c0_i32_1 = arith.constant 0 : i32
    return %arg0, %c0_i32, %c0_i32_0 : i32, i32, i32
  }
  func.func @transform_3(%arg0: i32) -> (i32, i32, i32) {
    %c0_i32 = arith.constant 0 : i32
    %c0_i32_0 = arith.constant 0 : i32
    %c0_i32_1 = arith.constant 0 : i32
    return %arg0, %c0_i32, %c0_i32_0 : i32, i32, i32
  }
  func.func @transform_4(%arg0: i32) -> (i32, i32, i32, i32) {
    %c0_i32 = arith.constant 0 : i32
    %c0_i32_0 = arith.constant 0 : i32
    %c0_i32_1 = arith.constant 0 : i32
    %c0_i32_2 = arith.constant 0 : i32
    return %arg0, %c0_i32, %c0_i32_0, %c0_i32_1 : i32, i32, i32, i32
  }
}

module attributes {stable_mosaic.version = 11 : i64} {
  func.func @_bilstm_kernel(%arg0: i32, %arg1: memref<1x8x2x64xf32, #tpu.memory_space<vmem>>, %arg2: memref<1x64x256xbf16, #tpu.memory_space<vmem>>, %arg3: memref<1x64x256xbf16, #tpu.memory_space<vmem>>, %arg4: memref<1x1x256xf32, #tpu.memory_space<vmem>>, %arg5: memref<1x8x2x64xf32, #tpu.memory_space<vmem>>, %arg6: memref<8x2x256xf32, #tpu.memory_space<vmem>>, %arg7: memref<8x2x32xf32, #tpu.memory_space<vmem>>, %arg8: memref<8x2x32xf32, #tpu.memory_space<vmem>>) attributes {dimension_semantics = [#tpu.dimension_semantics<parallel>], iteration_bounds = array<i64: 3>, scalar_prefetch = 0 : i64, scratch_operands = 3 : i64, tpu.core_type = #tpu.core_type<tc>, window_params = [{transform_indices = @transform_0, window_bounds = array<i64: 1, 8, 2, 64>}, {transform_indices = @transform_1, window_bounds = array<i64: 1, 64, 256>}, {transform_indices = @transform_2, window_bounds = array<i64: 1, 64, 256>}, {transform_indices = @transform_3, window_bounds = array<i64: 1, 1, 256>}, {transform_indices = @transform_4, window_bounds = array<i64: 1, 8, 2, 64>}]} {
    %c0 = arith.constant 0 : index
    %c0_0 = arith.constant 0 : index
    %c0_1 = arith.constant 0 : index
    %c0_2 = arith.constant 0 : index
    %0 = vector.load %arg1[%c0, %c0_0, %c0_1, %c0_2] : memref<1x8x2x64xf32, #tpu.memory_space<vmem>>, vector<1x8x2x64xf32>
    %1 = vector.shape_cast %0 : vector<1x8x2x64xf32> to vector<8x2x64xf32>
    %2 = vector.shape_cast %1 : vector<8x2x64xf32> to vector<16x64xf32>
    %3 = arith.truncf %2 : vector<16x64xf32> to vector<16x64xbf16>
    %c0_3 = arith.constant 0 : index
    %c0_4 = arith.constant 0 : index
    %c0_5 = arith.constant 0 : index
    %4 = vector.load %arg2[%c0_3, %c0_4, %c0_5] : memref<1x64x256xbf16, #tpu.memory_space<vmem>>, vector<1x64x256xbf16>
    %5 = vector.shape_cast %4 : vector<1x64x256xbf16> to vector<64x256xbf16>
    %cst = arith.constant dense<0.000000e+00> : vector<16x256xf32>
    %6 = tpu.matmul %3, %5, %cst {dimension_numbers = #tpu.dot_dimension_numbers<[1], [0], [0], [1], [0, 0, 1, 1], [], []>} : vector<16x64xbf16>, vector<64x256xbf16>, vector<16x256xf32> -> vector<16x256xf32>
    %c0_6 = arith.constant 0 : index
    %c0_7 = arith.constant 0 : index
    %c0_8 = arith.constant 0 : index
    %7 = vector.load %arg4[%c0_6, %c0_7, %c0_8] : memref<1x1x256xf32, #tpu.memory_space<vmem>>, vector<1x1x256xf32>
    %8 = vector.shape_cast %7 : vector<1x1x256xf32> to vector<1x256xf32>
    %9 = vector.broadcast %8 : vector<1x256xf32> to vector<16x256xf32>
    %10 = arith.addf %6, %9 : vector<16x256xf32>
    %11 = vector.shape_cast %10 : vector<16x256xf32> to vector<8x2x256xf32>
    %c0_9 = arith.constant 0 : index
    %c0_10 = arith.constant 0 : index
    %c0_11 = arith.constant 0 : index
    %12 = vector.load %arg6[%c0_9, %c0_10, %c0_11] : memref<8x2x256xf32, #tpu.memory_space<vmem>>, vector<8x2x256xf32>
    tpu.vector_store %arg6[%c0_9, %c0_10, %c0_11], %11 {strides = array<i32>} : memref<8x2x256xf32, #tpu.memory_space<vmem>>, vector<8x2x256xf32>,
    %c0_12 = arith.constant 0 : index
    %c0_13 = arith.constant 0 : index
    %c0_14 = arith.constant 0 : index
    %13 = vector.load %arg3[%c0_12, %c0_13, %c0_14] : memref<1x64x256xbf16, #tpu.memory_space<vmem>>, vector<1x64x256xbf16>
    %14 = vector.shape_cast %13 : vector<1x64x256xbf16> to vector<64x256xbf16>
    %cst_15 = arith.constant 0.000000e+00 : f32
    %15 = vector.broadcast %cst_15 : f32 to vector<2x64xf32>
    %cst_16 = arith.constant 0.000000e+00 : f32
    %16 = vector.broadcast %cst_16 : f32 to vector<2x32xf32>
    %c0_i32 = arith.constant 0 : i32
    %c7_i32 = arith.constant 7 : i32
    %17 = arith.subi %c7_i32, %c0_i32 : i32
    %18 = arith.truncf %15 : vector<2x64xf32> to vector<2x64xbf16>
    %cst_17 = arith.constant dense<0.000000e+00> : vector<2x256xf32>
    %19 = tpu.matmul %18, %14, %cst_17 {dimension_numbers = #tpu.dot_dimension_numbers<[1], [0], [0], [1], [0, 0, 1, 1], [], []>} : vector<2x64xbf16>, vector<64x256xbf16>, vector<2x256xf32> -> vector<2x256xf32>
    %20 = arith.index_cast %c0_i32 : i32 to index
    %c0_18 = arith.constant 0 : index
    %c0_19 = arith.constant 0 : index
    %21 = vector.load %arg6[%20, %c0_18, %c0_19] : memref<8x2x256xf32, #tpu.memory_space<vmem>>, vector<1x2x256xf32>
    %22 = vector.shape_cast %21 : vector<1x2x256xf32> to vector<2x256xf32>
    %23 = vector.extract_strided_slice %22 {offsets = [0, 0], sizes = [2, 128], strides = [1, 1]} : vector<2x256xf32> to vector<2x128xf32>
    %24 = vector.extract_strided_slice %19 {offsets = [0, 0], sizes = [2, 128], strides = [1, 1]} : vector<2x256xf32> to vector<2x128xf32>
    %25 = arith.addf %23, %24 : vector<2x128xf32>
    %26 = arith.index_cast %17 : i32 to index
    %c0_20 = arith.constant 0 : index
    %c0_21 = arith.constant 0 : index
    %27 = vector.load %arg6[%26, %c0_20, %c0_21] : memref<8x2x256xf32, #tpu.memory_space<vmem>>, vector<1x2x256xf32>
    %28 = vector.shape_cast %27 : vector<1x2x256xf32> to vector<2x256xf32>
    %29 = vector.extract_strided_slice %28 {offsets = [0, 128], sizes = [2, 128], strides = [1, 1]} : vector<2x256xf32> to vector<2x128xf32>
    %30 = vector.extract_strided_slice %19 {offsets = [0, 128], sizes = [2, 128], strides = [1, 1]} : vector<2x256xf32> to vector<2x128xf32>
    %31 = arith.addf %29, %30 : vector<2x128xf32>
    %32 = vector.extract_strided_slice %25 {offsets = [0, 0], sizes = [2, 32], strides = [1, 1]} : vector<2x128xf32> to vector<2x32xf32>
    %33 = arith.negf %32 : vector<2x32xf32>
    %34 = math.exp %33 : vector<2x32xf32>
    %cst_22 = arith.constant 1.000000e+00 : f32
    %35 = vector.broadcast %cst_22 : f32 to vector<2x32xf32>
    %36 = arith.addf %35, %34 : vector<2x32xf32>
    %37 = arith.divf %35, %36 : vector<2x32xf32>
    %38 = vector.extract_strided_slice %25 {offsets = [0, 32], sizes = [2, 32], strides = [1, 1]} : vector<2x128xf32> to vector<2x32xf32>
    %39 = arith.negf %38 : vector<2x32xf32>
    %40 = math.exp %39 : vector<2x32xf32>
    %cst_23 = arith.constant 1.000000e+00 : f32
    %41 = vector.broadcast %cst_23 : f32 to vector<2x32xf32>
    %42 = arith.addf %41, %40 : vector<2x32xf32>
    %43 = arith.divf %41, %42 : vector<2x32xf32>
    %44 = vector.extract_strided_slice %25 {offsets = [0, 64], sizes = [2, 32], strides = [1, 1]} : vector<2x128xf32> to vector<2x32xf32>
    %45 = math.tanh %44 : vector<2x32xf32>
    %46 = vector.extract_strided_slice %25 {offsets = [0, 96], sizes = [2, 32], strides = [1, 1]} : vector<2x128xf32> to vector<2x32xf32>
    %47 = arith.negf %46 : vector<2x32xf32>
    %48 = math.exp %47 : vector<2x32xf32>
    %cst_24 = arith.constant 1.000000e+00 : f32
    %49 = vector.broadcast %cst_24 : f32 to vector<2x32xf32>
    %50 = arith.addf %49, %48 : vector<2x32xf32>
    %51 = arith.divf %49, %50 : vector<2x32xf32>
    %52 = arith.mulf %43, %16 : vector<2x32xf32>
    %53 = arith.mulf %37, %45 : vector<2x32xf32>
    %54 = arith.addf %52, %53 : vector<2x32xf32>
    %55 = math.tanh %54 : vector<2x32xf32>
    %56 = arith.mulf %51, %55 : vector<2x32xf32>
    %57 = vector.extract_strided_slice %31 {offsets = [0, 0], sizes = [2, 32], strides = [1, 1]} : vector<2x128xf32> to vector<2x32xf32>
    %58 = arith.negf %57 : vector<2x32xf32>
    %59 = math.exp %58 : vector<2x32xf32>
    %cst_25 = arith.constant 1.000000e+00 : f32
    %60 = vector.broadcast %cst_25 : f32 to vector<2x32xf32>
    %61 = arith.addf %60, %59 : vector<2x32xf32>
    %62 = arith.divf %60, %61 : vector<2x32xf32>
    %63 = vector.extract_strided_slice %31 {offsets = [0, 32], sizes = [2, 32], strides = [1, 1]} : vector<2x128xf32> to vector<2x32xf32>
    %64 = arith.negf %63 : vector<2x32xf32>
    %65 = math.exp %64 : vector<2x32xf32>
    %cst_26 = arith.constant 1.000000e+00 : f32
    %66 = vector.broadcast %cst_26 : f32 to vector<2x32xf32>
    %67 = arith.addf %66, %65 : vector<2x32xf32>
    %68 = arith.divf %66, %67 : vector<2x32xf32>
    %69 = vector.extract_strided_slice %31 {offsets = [0, 64], sizes = [2, 32], strides = [1, 1]} : vector<2x128xf32> to vector<2x32xf32>
    %70 = math.tanh %69 : vector<2x32xf32>
    %71 = vector.extract_strided_slice %31 {offsets = [0, 96], sizes = [2, 32], strides = [1, 1]} : vector<2x128xf32> to vector<2x32xf32>
    %72 = arith.negf %71 : vector<2x32xf32>
    %73 = math.exp %72 : vector<2x32xf32>
    %cst_27 = arith.constant 1.000000e+00 : f32
    %74 = vector.broadcast %cst_27 : f32 to vector<2x32xf32>
    %75 = arith.addf %74, %73 : vector<2x32xf32>
    %76 = arith.divf %74, %75 : vector<2x32xf32>
    %77 = arith.mulf %68, %16 : vector<2x32xf32>
    %78 = arith.mulf %62, %70 : vector<2x32xf32>
    %79 = arith.addf %77, %78 : vector<2x32xf32>
    %80 = math.tanh %79 : vector<2x32xf32>
    %81 = arith.mulf %76, %80 : vector<2x32xf32>
    %82 = arith.index_cast %c0_i32 : i32 to index
    %c0_28 = arith.constant 0 : index
    %c0_29 = arith.constant 0 : index
    %83 = vector.load %arg7[%82, %c0_28, %c0_29] : memref<8x2x32xf32, #tpu.memory_space<vmem>>, vector<1x2x32xf32>
    %84 = vector.shape_cast %83 : vector<1x2x32xf32> to vector<2x32xf32>
    %85 = vector.shape_cast %56 : vector<2x32xf32> to vector<1x2x32xf32>
    tpu.vector_store %arg7[%82, %c0_28, %c0_29], %85 {strides = array<i32>} : memref<8x2x32xf32, #tpu.memory_space<vmem>>, vector<1x2x32xf32>,
    %86 = arith.index_cast %17 : i32 to index
    %c0_30 = arith.constant 0 : index
    %c0_31 = arith.constant 0 : index
    %87 = vector.load %arg8[%86, %c0_30, %c0_31] : memref<8x2x32xf32, #tpu.memory_space<vmem>>, vector<1x2x32xf32>
    %88 = vector.shape_cast %87 : vector<1x2x32xf32> to vector<2x32xf32>
    %89 = vector.shape_cast %81 : vector<2x32xf32> to vector<1x2x32xf32>
    tpu.vector_store %arg8[%86, %c0_30, %c0_31], %89 {strides = array<i32>} : memref<8x2x32xf32, #tpu.memory_space<vmem>>, vector<1x2x32xf32>,
    %90 = tpu.concatenate %56, %81 in 1 : vector<2x32xf32>, vector<2x32xf32> -> vector<2x64xf32>
    %c1_i32 = arith.constant 1 : i32
    %c7_i32_32 = arith.constant 7 : i32
    %91 = arith.subi %c7_i32_32, %c1_i32 : i32
    %92 = arith.truncf %90 : vector<2x64xf32> to vector<2x64xbf16>
    %cst_33 = arith.constant dense<0.000000e+00> : vector<2x256xf32>
    %93 = tpu.matmul %92, %14, %cst_33 {dimension_numbers = #tpu.dot_dimension_numbers<[1], [0], [0], [1], [0, 0, 1, 1], [], []>} : vector<2x64xbf16>, vector<64x256xbf16>, vector<2x256xf32> -> vector<2x256xf32>
    %94 = arith.index_cast %c1_i32 : i32 to index
    %c0_34 = arith.constant 0 : index
    %c0_35 = arith.constant 0 : index
    %95 = vector.load %arg6[%94, %c0_34, %c0_35] : memref<8x2x256xf32, #tpu.memory_space<vmem>>, vector<1x2x256xf32>
    %96 = vector.shape_cast %95 : vector<1x2x256xf32> to vector<2x256xf32>
    %97 = vector.extract_strided_slice %96 {offsets = [0, 0], sizes = [2, 128], strides = [1, 1]} : vector<2x256xf32> to vector<2x128xf32>
    %98 = vector.extract_strided_slice %93 {offsets = [0, 0], sizes = [2, 128], strides = [1, 1]} : vector<2x256xf32> to vector<2x128xf32>
    %99 = arith.addf %97, %98 : vector<2x128xf32>
    %100 = arith.index_cast %91 : i32 to index
    %c0_36 = arith.constant 0 : index
    %c0_37 = arith.constant 0 : index
    %101 = vector.load %arg6[%100, %c0_36, %c0_37] : memref<8x2x256xf32, #tpu.memory_space<vmem>>, vector<1x2x256xf32>
    %102 = vector.shape_cast %101 : vector<1x2x256xf32> to vector<2x256xf32>
    %103 = vector.extract_strided_slice %102 {offsets = [0, 128], sizes = [2, 128], strides = [1, 1]} : vector<2x256xf32> to vector<2x128xf32>
    %104 = vector.extract_strided_slice %93 {offsets = [0, 128], sizes = [2, 128], strides = [1, 1]} : vector<2x256xf32> to vector<2x128xf32>
    %105 = arith.addf %103, %104 : vector<2x128xf32>
    %106 = vector.extract_strided_slice %99 {offsets = [0, 0], sizes = [2, 32], strides = [1, 1]} : vector<2x128xf32> to vector<2x32xf32>
    %107 = arith.negf %106 : vector<2x32xf32>
    %108 = math.exp %107 : vector<2x32xf32>
    %cst_38 = arith.constant 1.000000e+00 : f32
    %109 = vector.broadcast %cst_38 : f32 to vector<2x32xf32>
    %110 = arith.addf %109, %108 : vector<2x32xf32>
    %111 = arith.divf %109, %110 : vector<2x32xf32>
    %112 = vector.extract_strided_slice %99 {offsets = [0, 32], sizes = [2, 32], strides = [1, 1]} : vector<2x128xf32> to vector<2x32xf32>
    %113 = arith.negf %112 : vector<2x32xf32>
    %114 = math.exp %113 : vector<2x32xf32>
    %cst_39 = arith.constant 1.000000e+00 : f32
    %115 = vector.broadcast %cst_39 : f32 to vector<2x32xf32>
    %116 = arith.addf %115, %114 : vector<2x32xf32>
    %117 = arith.divf %115, %116 : vector<2x32xf32>
    %118 = vector.extract_strided_slice %99 {offsets = [0, 64], sizes = [2, 32], strides = [1, 1]} : vector<2x128xf32> to vector<2x32xf32>
    %119 = math.tanh %118 : vector<2x32xf32>
    %120 = vector.extract_strided_slice %99 {offsets = [0, 96], sizes = [2, 32], strides = [1, 1]} : vector<2x128xf32> to vector<2x32xf32>
    %121 = arith.negf %120 : vector<2x32xf32>
    %122 = math.exp %121 : vector<2x32xf32>
    %cst_40 = arith.constant 1.000000e+00 : f32
    %123 = vector.broadcast %cst_40 : f32 to vector<2x32xf32>
    %124 = arith.addf %123, %122 : vector<2x32xf32>
    %125 = arith.divf %123, %124 : vector<2x32xf32>
    %126 = arith.mulf %117, %54 : vector<2x32xf32>
    %127 = arith.mulf %111, %119 : vector<2x32xf32>
    %128 = arith.addf %126, %127 : vector<2x32xf32>
    %129 = math.tanh %128 : vector<2x32xf32>
    %130 = arith.mulf %125, %129 : vector<2x32xf32>
    %131 = vector.extract_strided_slice %105 {offsets = [0, 0], sizes = [2, 32], strides = [1, 1]} : vector<2x128xf32> to vector<2x32xf32>
    %132 = arith.negf %131 : vector<2x32xf32>
    %133 = math.exp %132 : vector<2x32xf32>
    %cst_41 = arith.constant 1.000000e+00 : f32
    %134 = vector.broadcast %cst_41 : f32 to vector<2x32xf32>
    %135 = arith.addf %134, %133 : vector<2x32xf32>
    %136 = arith.divf %134, %135 : vector<2x32xf32>
    %137 = vector.extract_strided_slice %105 {offsets = [0, 32], sizes = [2, 32], strides = [1, 1]} : vector<2x128xf32> to vector<2x32xf32>
    %138 = arith.negf %137 : vector<2x32xf32>
    %139 = math.exp %138 : vector<2x32xf32>
    %cst_42 = arith.constant 1.000000e+00 : f32
    %140 = vector.broadcast %cst_42 : f32 to vector<2x32xf32>
    %141 = arith.addf %140, %139 : vector<2x32xf32>
    %142 = arith.divf %140, %141 : vector<2x32xf32>
    %143 = vector.extract_strided_slice %105 {offsets = [0, 64], sizes = [2, 32], strides = [1, 1]} : vector<2x128xf32> to vector<2x32xf32>
    %144 = math.tanh %143 : vector<2x32xf32>
    %145 = vector.extract_strided_slice %105 {offsets = [0, 96], sizes = [2, 32], strides = [1, 1]} : vector<2x128xf32> to vector<2x32xf32>
    %146 = arith.negf %145 : vector<2x32xf32>
    %147 = math.exp %146 : vector<2x32xf32>
    %cst_43 = arith.constant 1.000000e+00 : f32
    %148 = vector.broadcast %cst_43 : f32 to vector<2x32xf32>
    %149 = arith.addf %148, %147 : vector<2x32xf32>
    %150 = arith.divf %148, %149 : vector<2x32xf32>
    %151 = arith.mulf %142, %79 : vector<2x32xf32>
    %152 = arith.mulf %136, %144 : vector<2x32xf32>
    %153 = arith.addf %151, %152 : vector<2x32xf32>
    %154 = math.tanh %153 : vector<2x32xf32>
    %155 = arith.mulf %150, %154 : vector<2x32xf32>
    %156 = arith.index_cast %c1_i32 : i32 to index
    %c0_44 = arith.constant 0 : index
    %c0_45 = arith.constant 0 : index
    %157 = vector.load %arg7[%156, %c0_44, %c0_45] : memref<8x2x32xf32, #tpu.memory_space<vmem>>, vector<1x2x32xf32>
    %158 = vector.shape_cast %157 : vector<1x2x32xf32> to vector<2x32xf32>
    %159 = vector.shape_cast %130 : vector<2x32xf32> to vector<1x2x32xf32>
    tpu.vector_store %arg7[%156, %c0_44, %c0_45], %159 {strides = array<i32>} : memref<8x2x32xf32, #tpu.memory_space<vmem>>, vector<1x2x32xf32>,
    %160 = arith.index_cast %91 : i32 to index
    %c0_46 = arith.constant 0 : index
    %c0_47 = arith.constant 0 : index
    %161 = vector.load %arg8[%160, %c0_46, %c0_47] : memref<8x2x32xf32, #tpu.memory_space<vmem>>, vector<1x2x32xf32>
    %162 = vector.shape_cast %161 : vector<1x2x32xf32> to vector<2x32xf32>
    %163 = vector.shape_cast %155 : vector<2x32xf32> to vector<1x2x32xf32>
    tpu.vector_store %arg8[%160, %c0_46, %c0_47], %163 {strides = array<i32>} : memref<8x2x32xf32, #tpu.memory_space<vmem>>, vector<1x2x32xf32>,
    %164 = tpu.concatenate %130, %155 in 1 : vector<2x32xf32>, vector<2x32xf32> -> vector<2x64xf32>
    %c2_i32 = arith.constant 2 : i32
    %c7_i32_48 = arith.constant 7 : i32
    %165 = arith.subi %c7_i32_48, %c2_i32 : i32
    %166 = arith.truncf %164 : vector<2x64xf32> to vector<2x64xbf16>
    %cst_49 = arith.constant dense<0.000000e+00> : vector<2x256xf32>
    %167 = tpu.matmul %166, %14, %cst_49 {dimension_numbers = #tpu.dot_dimension_numbers<[1], [0], [0], [1], [0, 0, 1, 1], [], []>} : vector<2x64xbf16>, vector<64x256xbf16>, vector<2x256xf32> -> vector<2x256xf32>
    %168 = arith.index_cast %c2_i32 : i32 to index
    %c0_50 = arith.constant 0 : index
    %c0_51 = arith.constant 0 : index
    %169 = vector.load %arg6[%168, %c0_50, %c0_51] : memref<8x2x256xf32, #tpu.memory_space<vmem>>, vector<1x2x256xf32>
    %170 = vector.shape_cast %169 : vector<1x2x256xf32> to vector<2x256xf32>
    %171 = vector.extract_strided_slice %170 {offsets = [0, 0], sizes = [2, 128], strides = [1, 1]} : vector<2x256xf32> to vector<2x128xf32>
    %172 = vector.extract_strided_slice %167 {offsets = [0, 0], sizes = [2, 128], strides = [1, 1]} : vector<2x256xf32> to vector<2x128xf32>
    %173 = arith.addf %171, %172 : vector<2x128xf32>
    %174 = arith.index_cast %165 : i32 to index
    %c0_52 = arith.constant 0 : index
    %c0_53 = arith.constant 0 : index
    %175 = vector.load %arg6[%174, %c0_52, %c0_53] : memref<8x2x256xf32, #tpu.memory_space<vmem>>, vector<1x2x256xf32>
    %176 = vector.shape_cast %175 : vector<1x2x256xf32> to vector<2x256xf32>
    %177 = vector.extract_strided_slice %176 {offsets = [0, 128], sizes = [2, 128], strides = [1, 1]} : vector<2x256xf32> to vector<2x128xf32>
    %178 = vector.extract_strided_slice %167 {offsets = [0, 128], sizes = [2, 128], strides = [1, 1]} : vector<2x256xf32> to vector<2x128xf32>
    %179 = arith.addf %177, %178 : vector<2x128xf32>
    %180 = vector.extract_strided_slice %173 {offsets = [0, 0], sizes = [2, 32], strides = [1, 1]} : vector<2x128xf32> to vector<2x32xf32>
    %181 = arith.negf %180 : vector<2x32xf32>
    %182 = math.exp %181 : vector<2x32xf32>
    %cst_54 = arith.constant 1.000000e+00 : f32
    %183 = vector.broadcast %cst_54 : f32 to vector<2x32xf32>
    %184 = arith.addf %183, %182 : vector<2x32xf32>
    %185 = arith.divf %183, %184 : vector<2x32xf32>
    %186 = vector.extract_strided_slice %173 {offsets = [0, 32], sizes = [2, 32], strides = [1, 1]} : vector<2x128xf32> to vector<2x32xf32>
    %187 = arith.negf %186 : vector<2x32xf32>
    %188 = math.exp %187 : vector<2x32xf32>
    %cst_55 = arith.constant 1.000000e+00 : f32
    %189 = vector.broadcast %cst_55 : f32 to vector<2x32xf32>
    %190 = arith.addf %189, %188 : vector<2x32xf32>
    %191 = arith.divf %189, %190 : vector<2x32xf32>
    %192 = vector.extract_strided_slice %173 {offsets = [0, 64], sizes = [2, 32], strides = [1, 1]} : vector<2x128xf32> to vector<2x32xf32>
    %193 = math.tanh %192 : vector<2x32xf32>
    %194 = vector.extract_strided_slice %173 {offsets = [0, 96], sizes = [2, 32], strides = [1, 1]} : vector<2x128xf32> to vector<2x32xf32>
    %195 = arith.negf %194 : vector<2x32xf32>
    %196 = math.exp %195 : vector<2x32xf32>
    %cst_56 = arith.constant 1.000000e+00 : f32
    %197 = vector.broadcast %cst_56 : f32 to vector<2x32xf32>
    %198 = arith.addf %197, %196 : vector<2x32xf32>
    %199 = arith.divf %197, %198 : vector<2x32xf32>
    %200 = arith.mulf %191, %128 : vector<2x32xf32>
    %201 = arith.mulf %185, %193 : vector<2x32xf32>
    %202 = arith.addf %200, %201 : vector<2x32xf32>
    %203 = math.tanh %202 : vector<2x32xf32>
    %204 = arith.mulf %199, %203 : vector<2x32xf32>
    %205 = vector.extract_strided_slice %179 {offsets = [0, 0], sizes = [2, 32], strides = [1, 1]} : vector<2x128xf32> to vector<2x32xf32>
    %206 = arith.negf %205 : vector<2x32xf32>
    %207 = math.exp %206 : vector<2x32xf32>
    %cst_57 = arith.constant 1.000000e+00 : f32
    %208 = vector.broadcast %cst_57 : f32 to vector<2x32xf32>
    %209 = arith.addf %208, %207 : vector<2x32xf32>
    %210 = arith.divf %208, %209 : vector<2x32xf32>
    %211 = vector.extract_strided_slice %179 {offsets = [0, 32], sizes = [2, 32], strides = [1, 1]} : vector<2x128xf32> to vector<2x32xf32>
    %212 = arith.negf %211 : vector<2x32xf32>
    %213 = math.exp %212 : vector<2x32xf32>
    %cst_58 = arith.constant 1.000000e+00 : f32
    %214 = vector.broadcast %cst_58 : f32 to vector<2x32xf32>
    %215 = arith.addf %214, %213 : vector<2x32xf32>
    %216 = arith.divf %214, %215 : vector<2x32xf32>
    %217 = vector.extract_strided_slice %179 {offsets = [0, 64], sizes = [2, 32], strides = [1, 1]} : vector<2x128xf32> to vector<2x32xf32>
    %218 = math.tanh %217 : vector<2x32xf32>
    %219 = vector.extract_strided_slice %179 {offsets = [0, 96], sizes = [2, 32], strides = [1, 1]} : vector<2x128xf32> to vector<2x32xf32>
    %220 = arith.negf %219 : vector<2x32xf32>
    %221 = math.exp %220 : vector<2x32xf32>
    %cst_59 = arith.constant 1.000000e+00 : f32
    %222 = vector.broadcast %cst_59 : f32 to vector<2x32xf32>
    %223 = arith.addf %222, %221 : vector<2x32xf32>
    %224 = arith.divf %222, %223 : vector<2x32xf32>
    %225 = arith.mulf %216, %153 : vector<2x32xf32>
    %226 = arith.mulf %210, %218 : vector<2x32xf32>
    %227 = arith.addf %225, %226 : vector<2x32xf32>
    %228 = math.tanh %227 : vector<2x32xf32>
    %229 = arith.mulf %224, %228 : vector<2x32xf32>
    %230 = arith.index_cast %c2_i32 : i32 to index
    %c0_60 = arith.constant 0 : index
    %c0_61 = arith.constant 0 : index
    %231 = vector.load %arg7[%230, %c0_60, %c0_61] : memref<8x2x32xf32, #tpu.memory_space<vmem>>, vector<1x2x32xf32>
    %232 = vector.shape_cast %231 : vector<1x2x32xf32> to vector<2x32xf32>
    %233 = vector.shape_cast %204 : vector<2x32xf32> to vector<1x2x32xf32>
    tpu.vector_store %arg7[%230, %c0_60, %c0_61], %233 {strides = array<i32>} : memref<8x2x32xf32, #tpu.memory_space<vmem>>, vector<1x2x32xf32>,
    %234 = arith.index_cast %165 : i32 to index
    %c0_62 = arith.constant 0 : index
    %c0_63 = arith.constant 0 : index
    %235 = vector.load %arg8[%234, %c0_62, %c0_63] : memref<8x2x32xf32, #tpu.memory_space<vmem>>, vector<1x2x32xf32>
    %236 = vector.shape_cast %235 : vector<1x2x32xf32> to vector<2x32xf32>
    %237 = vector.shape_cast %229 : vector<2x32xf32> to vector<1x2x32xf32>
    tpu.vector_store %arg8[%234, %c0_62, %c0_63], %237 {strides = array<i32>} : memref<8x2x32xf32, #tpu.memory_space<vmem>>, vector<1x2x32xf32>,
    %238 = tpu.concatenate %204, %229 in 1 : vector<2x32xf32>, vector<2x32xf32> -> vector<2x64xf32>
    %c3_i32 = arith.constant 3 : i32
    %c7_i32_64 = arith.constant 7 : i32
    %239 = arith.subi %c7_i32_64, %c3_i32 : i32
    %240 = arith.truncf %238 : vector<2x64xf32> to vector<2x64xbf16>
    %cst_65 = arith.constant dense<0.000000e+00> : vector<2x256xf32>
    %241 = tpu.matmul %240, %14, %cst_65 {dimension_numbers = #tpu.dot_dimension_numbers<[1], [0], [0], [1], [0, 0, 1, 1], [], []>} : vector<2x64xbf16>, vector<64x256xbf16>, vector<2x256xf32> -> vector<2x256xf32>
    %242 = arith.index_cast %c3_i32 : i32 to index
    %c0_66 = arith.constant 0 : index
    %c0_67 = arith.constant 0 : index
    %243 = vector.load %arg6[%242, %c0_66, %c0_67] : memref<8x2x256xf32, #tpu.memory_space<vmem>>, vector<1x2x256xf32>
    %244 = vector.shape_cast %243 : vector<1x2x256xf32> to vector<2x256xf32>
    %245 = vector.extract_strided_slice %244 {offsets = [0, 0], sizes = [2, 128], strides = [1, 1]} : vector<2x256xf32> to vector<2x128xf32>
    %246 = vector.extract_strided_slice %241 {offsets = [0, 0], sizes = [2, 128], strides = [1, 1]} : vector<2x256xf32> to vector<2x128xf32>
    %247 = arith.addf %245, %246 : vector<2x128xf32>
    %248 = arith.index_cast %239 : i32 to index
    %c0_68 = arith.constant 0 : index
    %c0_69 = arith.constant 0 : index
    %249 = vector.load %arg6[%248, %c0_68, %c0_69] : memref<8x2x256xf32, #tpu.memory_space<vmem>>, vector<1x2x256xf32>
    %250 = vector.shape_cast %249 : vector<1x2x256xf32> to vector<2x256xf32>
    %251 = vector.extract_strided_slice %250 {offsets = [0, 128], sizes = [2, 128], strides = [1, 1]} : vector<2x256xf32> to vector<2x128xf32>
    %252 = vector.extract_strided_slice %241 {offsets = [0, 128], sizes = [2, 128], strides = [1, 1]} : vector<2x256xf32> to vector<2x128xf32>
    %253 = arith.addf %251, %252 : vector<2x128xf32>
    %254 = vector.extract_strided_slice %247 {offsets = [0, 0], sizes = [2, 32], strides = [1, 1]} : vector<2x128xf32> to vector<2x32xf32>
    %255 = arith.negf %254 : vector<2x32xf32>
    %256 = math.exp %255 : vector<2x32xf32>
    %cst_70 = arith.constant 1.000000e+00 : f32
    %257 = vector.broadcast %cst_70 : f32 to vector<2x32xf32>
    %258 = arith.addf %257, %256 : vector<2x32xf32>
    %259 = arith.divf %257, %258 : vector<2x32xf32>
    %260 = vector.extract_strided_slice %247 {offsets = [0, 32], sizes = [2, 32], strides = [1, 1]} : vector<2x128xf32> to vector<2x32xf32>
    %261 = arith.negf %260 : vector<2x32xf32>
    %262 = math.exp %261 : vector<2x32xf32>
    %cst_71 = arith.constant 1.000000e+00 : f32
    %263 = vector.broadcast %cst_71 : f32 to vector<2x32xf32>
    %264 = arith.addf %263, %262 : vector<2x32xf32>
    %265 = arith.divf %263, %264 : vector<2x32xf32>
    %266 = vector.extract_strided_slice %247 {offsets = [0, 64], sizes = [2, 32], strides = [1, 1]} : vector<2x128xf32> to vector<2x32xf32>
    %267 = math.tanh %266 : vector<2x32xf32>
    %268 = vector.extract_strided_slice %247 {offsets = [0, 96], sizes = [2, 32], strides = [1, 1]} : vector<2x128xf32> to vector<2x32xf32>
    %269 = arith.negf %268 : vector<2x32xf32>
    %270 = math.exp %269 : vector<2x32xf32>
    %cst_72 = arith.constant 1.000000e+00 : f32
    %271 = vector.broadcast %cst_72 : f32 to vector<2x32xf32>
    %272 = arith.addf %271, %270 : vector<2x32xf32>
    %273 = arith.divf %271, %272 : vector<2x32xf32>
    %274 = arith.mulf %265, %202 : vector<2x32xf32>
    %275 = arith.mulf %259, %267 : vector<2x32xf32>
    %276 = arith.addf %274, %275 : vector<2x32xf32>
    %277 = math.tanh %276 : vector<2x32xf32>
    %278 = arith.mulf %273, %277 : vector<2x32xf32>
    %279 = vector.extract_strided_slice %253 {offsets = [0, 0], sizes = [2, 32], strides = [1, 1]} : vector<2x128xf32> to vector<2x32xf32>
    %280 = arith.negf %279 : vector<2x32xf32>
    %281 = math.exp %280 : vector<2x32xf32>
    %cst_73 = arith.constant 1.000000e+00 : f32
    %282 = vector.broadcast %cst_73 : f32 to vector<2x32xf32>
    %283 = arith.addf %282, %281 : vector<2x32xf32>
    %284 = arith.divf %282, %283 : vector<2x32xf32>
    %285 = vector.extract_strided_slice %253 {offsets = [0, 32], sizes = [2, 32], strides = [1, 1]} : vector<2x128xf32> to vector<2x32xf32>
    %286 = arith.negf %285 : vector<2x32xf32>
    %287 = math.exp %286 : vector<2x32xf32>
    %cst_74 = arith.constant 1.000000e+00 : f32
    %288 = vector.broadcast %cst_74 : f32 to vector<2x32xf32>
    %289 = arith.addf %288, %287 : vector<2x32xf32>
    %290 = arith.divf %288, %289 : vector<2x32xf32>
    %291 = vector.extract_strided_slice %253 {offsets = [0, 64], sizes = [2, 32], strides = [1, 1]} : vector<2x128xf32> to vector<2x32xf32>
    %292 = math.tanh %291 : vector<2x32xf32>
    %293 = vector.extract_strided_slice %253 {offsets = [0, 96], sizes = [2, 32], strides = [1, 1]} : vector<2x128xf32> to vector<2x32xf32>
    %294 = arith.negf %293 : vector<2x32xf32>
    %295 = math.exp %294 : vector<2x32xf32>
    %cst_75 = arith.constant 1.000000e+00 : f32
    %296 = vector.broadcast %cst_75 : f32 to vector<2x32xf32>
    %297 = arith.addf %296, %295 : vector<2x32xf32>
    %298 = arith.divf %296, %297 : vector<2x32xf32>
    %299 = arith.mulf %290, %227 : vector<2x32xf32>
    %300 = arith.mulf %284, %292 : vector<2x32xf32>
    %301 = arith.addf %299, %300 : vector<2x32xf32>
    %302 = math.tanh %301 : vector<2x32xf32>
    %303 = arith.mulf %298, %302 : vector<2x32xf32>
    %304 = arith.index_cast %c3_i32 : i32 to index
    %c0_76 = arith.constant 0 : index
    %c0_77 = arith.constant 0 : index
    %305 = vector.load %arg7[%304, %c0_76, %c0_77] : memref<8x2x32xf32, #tpu.memory_space<vmem>>, vector<1x2x32xf32>
    %306 = vector.shape_cast %305 : vector<1x2x32xf32> to vector<2x32xf32>
    %307 = vector.shape_cast %278 : vector<2x32xf32> to vector<1x2x32xf32>
    tpu.vector_store %arg7[%304, %c0_76, %c0_77], %307 {strides = array<i32>} : memref<8x2x32xf32, #tpu.memory_space<vmem>>, vector<1x2x32xf32>,
    %308 = arith.index_cast %239 : i32 to index
    %c0_78 = arith.constant 0 : index
    %c0_79 = arith.constant 0 : index
    %309 = vector.load %arg8[%308, %c0_78, %c0_79] : memref<8x2x32xf32, #tpu.memory_space<vmem>>, vector<1x2x32xf32>
    %310 = vector.shape_cast %309 : vector<1x2x32xf32> to vector<2x32xf32>
    %311 = vector.shape_cast %303 : vector<2x32xf32> to vector<1x2x32xf32>
    tpu.vector_store %arg8[%308, %c0_78, %c0_79], %311 {strides = array<i32>} : memref<8x2x32xf32, #tpu.memory_space<vmem>>, vector<1x2x32xf32>,
    %312 = tpu.concatenate %278, %303 in 1 : vector<2x32xf32>, vector<2x32xf32> -> vector<2x64xf32>
    %c4_i32 = arith.constant 4 : i32
    %c7_i32_80 = arith.constant 7 : i32
    %313 = arith.subi %c7_i32_80, %c4_i32 : i32
    %314 = arith.truncf %312 : vector<2x64xf32> to vector<2x64xbf16>
    %cst_81 = arith.constant dense<0.000000e+00> : vector<2x256xf32>
    %315 = tpu.matmul %314, %14, %cst_81 {dimension_numbers = #tpu.dot_dimension_numbers<[1], [0], [0], [1], [0, 0, 1, 1], [], []>} : vector<2x64xbf16>, vector<64x256xbf16>, vector<2x256xf32> -> vector<2x256xf32>
    %316 = arith.index_cast %c4_i32 : i32 to index
    %c0_82 = arith.constant 0 : index
    %c0_83 = arith.constant 0 : index
    %317 = vector.load %arg6[%316, %c0_82, %c0_83] : memref<8x2x256xf32, #tpu.memory_space<vmem>>, vector<1x2x256xf32>
    %318 = vector.shape_cast %317 : vector<1x2x256xf32> to vector<2x256xf32>
    %319 = vector.extract_strided_slice %318 {offsets = [0, 0], sizes = [2, 128], strides = [1, 1]} : vector<2x256xf32> to vector<2x128xf32>
    %320 = vector.extract_strided_slice %315 {offsets = [0, 0], sizes = [2, 128], strides = [1, 1]} : vector<2x256xf32> to vector<2x128xf32>
    %321 = arith.addf %319, %320 : vector<2x128xf32>
    %322 = arith.index_cast %313 : i32 to index
    %c0_84 = arith.constant 0 : index
    %c0_85 = arith.constant 0 : index
    %323 = vector.load %arg6[%322, %c0_84, %c0_85] : memref<8x2x256xf32, #tpu.memory_space<vmem>>, vector<1x2x256xf32>
    %324 = vector.shape_cast %323 : vector<1x2x256xf32> to vector<2x256xf32>
    %325 = vector.extract_strided_slice %324 {offsets = [0, 128], sizes = [2, 128], strides = [1, 1]} : vector<2x256xf32> to vector<2x128xf32>
    %326 = vector.extract_strided_slice %315 {offsets = [0, 128], sizes = [2, 128], strides = [1, 1]} : vector<2x256xf32> to vector<2x128xf32>
    %327 = arith.addf %325, %326 : vector<2x128xf32>
    %328 = vector.extract_strided_slice %321 {offsets = [0, 0], sizes = [2, 32], strides = [1, 1]} : vector<2x128xf32> to vector<2x32xf32>
    %329 = arith.negf %328 : vector<2x32xf32>
    %330 = math.exp %329 : vector<2x32xf32>
    %cst_86 = arith.constant 1.000000e+00 : f32
    %331 = vector.broadcast %cst_86 : f32 to vector<2x32xf32>
    %332 = arith.addf %331, %330 : vector<2x32xf32>
    %333 = arith.divf %331, %332 : vector<2x32xf32>
    %334 = vector.extract_strided_slice %321 {offsets = [0, 32], sizes = [2, 32], strides = [1, 1]} : vector<2x128xf32> to vector<2x32xf32>
    %335 = arith.negf %334 : vector<2x32xf32>
    %336 = math.exp %335 : vector<2x32xf32>
    %cst_87 = arith.constant 1.000000e+00 : f32
    %337 = vector.broadcast %cst_87 : f32 to vector<2x32xf32>
    %338 = arith.addf %337, %336 : vector<2x32xf32>
    %339 = arith.divf %337, %338 : vector<2x32xf32>
    %340 = vector.extract_strided_slice %321 {offsets = [0, 64], sizes = [2, 32], strides = [1, 1]} : vector<2x128xf32> to vector<2x32xf32>
    %341 = math.tanh %340 : vector<2x32xf32>
    %342 = vector.extract_strided_slice %321 {offsets = [0, 96], sizes = [2, 32], strides = [1, 1]} : vector<2x128xf32> to vector<2x32xf32>
    %343 = arith.negf %342 : vector<2x32xf32>
    %344 = math.exp %343 : vector<2x32xf32>
    %cst_88 = arith.constant 1.000000e+00 : f32
    %345 = vector.broadcast %cst_88 : f32 to vector<2x32xf32>
    %346 = arith.addf %345, %344 : vector<2x32xf32>
    %347 = arith.divf %345, %346 : vector<2x32xf32>
    %348 = arith.mulf %339, %276 : vector<2x32xf32>
    %349 = arith.mulf %333, %341 : vector<2x32xf32>
    %350 = arith.addf %348, %349 : vector<2x32xf32>
    %351 = math.tanh %350 : vector<2x32xf32>
    %352 = arith.mulf %347, %351 : vector<2x32xf32>
    %353 = vector.extract_strided_slice %327 {offsets = [0, 0], sizes = [2, 32], strides = [1, 1]} : vector<2x128xf32> to vector<2x32xf32>
    %354 = arith.negf %353 : vector<2x32xf32>
    %355 = math.exp %354 : vector<2x32xf32>
    %cst_89 = arith.constant 1.000000e+00 : f32
    %356 = vector.broadcast %cst_89 : f32 to vector<2x32xf32>
    %357 = arith.addf %356, %355 : vector<2x32xf32>
    %358 = arith.divf %356, %357 : vector<2x32xf32>
    %359 = vector.extract_strided_slice %327 {offsets = [0, 32], sizes = [2, 32], strides = [1, 1]} : vector<2x128xf32> to vector<2x32xf32>
    %360 = arith.negf %359 : vector<2x32xf32>
    %361 = math.exp %360 : vector<2x32xf32>
    %cst_90 = arith.constant 1.000000e+00 : f32
    %362 = vector.broadcast %cst_90 : f32 to vector<2x32xf32>
    %363 = arith.addf %362, %361 : vector<2x32xf32>
    %364 = arith.divf %362, %363 : vector<2x32xf32>
    %365 = vector.extract_strided_slice %327 {offsets = [0, 64], sizes = [2, 32], strides = [1, 1]} : vector<2x128xf32> to vector<2x32xf32>
    %366 = math.tanh %365 : vector<2x32xf32>
    %367 = vector.extract_strided_slice %327 {offsets = [0, 96], sizes = [2, 32], strides = [1, 1]} : vector<2x128xf32> to vector<2x32xf32>
    %368 = arith.negf %367 : vector<2x32xf32>
    %369 = math.exp %368 : vector<2x32xf32>
    %cst_91 = arith.constant 1.000000e+00 : f32
    %370 = vector.broadcast %cst_91 : f32 to vector<2x32xf32>
    %371 = arith.addf %370, %369 : vector<2x32xf32>
    %372 = arith.divf %370, %371 : vector<2x32xf32>
    %373 = arith.mulf %364, %301 : vector<2x32xf32>
    %374 = arith.mulf %358, %366 : vector<2x32xf32>
    %375 = arith.addf %373, %374 : vector<2x32xf32>
    %376 = math.tanh %375 : vector<2x32xf32>
    %377 = arith.mulf %372, %376 : vector<2x32xf32>
    %378 = arith.index_cast %c4_i32 : i32 to index
    %c0_92 = arith.constant 0 : index
    %c0_93 = arith.constant 0 : index
    %379 = vector.load %arg7[%378, %c0_92, %c0_93] : memref<8x2x32xf32, #tpu.memory_space<vmem>>, vector<1x2x32xf32>
    %380 = vector.shape_cast %379 : vector<1x2x32xf32> to vector<2x32xf32>
    %381 = vector.shape_cast %352 : vector<2x32xf32> to vector<1x2x32xf32>
    tpu.vector_store %arg7[%378, %c0_92, %c0_93], %381 {strides = array<i32>} : memref<8x2x32xf32, #tpu.memory_space<vmem>>, vector<1x2x32xf32>,
    %382 = arith.index_cast %313 : i32 to index
    %c0_94 = arith.constant 0 : index
    %c0_95 = arith.constant 0 : index
    %383 = vector.load %arg8[%382, %c0_94, %c0_95] : memref<8x2x32xf32, #tpu.memory_space<vmem>>, vector<1x2x32xf32>
    %384 = vector.shape_cast %383 : vector<1x2x32xf32> to vector<2x32xf32>
    %385 = vector.shape_cast %377 : vector<2x32xf32> to vector<1x2x32xf32>
    tpu.vector_store %arg8[%382, %c0_94, %c0_95], %385 {strides = array<i32>} : memref<8x2x32xf32, #tpu.memory_space<vmem>>, vector<1x2x32xf32>,
    %386 = tpu.concatenate %352, %377 in 1 : vector<2x32xf32>, vector<2x32xf32> -> vector<2x64xf32>
    %c5_i32 = arith.constant 5 : i32
    %c7_i32_96 = arith.constant 7 : i32
    %387 = arith.subi %c7_i32_96, %c5_i32 : i32
    %388 = arith.truncf %386 : vector<2x64xf32> to vector<2x64xbf16>
    %cst_97 = arith.constant dense<0.000000e+00> : vector<2x256xf32>
    %389 = tpu.matmul %388, %14, %cst_97 {dimension_numbers = #tpu.dot_dimension_numbers<[1], [0], [0], [1], [0, 0, 1, 1], [], []>} : vector<2x64xbf16>, vector<64x256xbf16>, vector<2x256xf32> -> vector<2x256xf32>
    %390 = arith.index_cast %c5_i32 : i32 to index
    %c0_98 = arith.constant 0 : index
    %c0_99 = arith.constant 0 : index
    %391 = vector.load %arg6[%390, %c0_98, %c0_99] : memref<8x2x256xf32, #tpu.memory_space<vmem>>, vector<1x2x256xf32>
    %392 = vector.shape_cast %391 : vector<1x2x256xf32> to vector<2x256xf32>
    %393 = vector.extract_strided_slice %392 {offsets = [0, 0], sizes = [2, 128], strides = [1, 1]} : vector<2x256xf32> to vector<2x128xf32>
    %394 = vector.extract_strided_slice %389 {offsets = [0, 0], sizes = [2, 128], strides = [1, 1]} : vector<2x256xf32> to vector<2x128xf32>
    %395 = arith.addf %393, %394 : vector<2x128xf32>
    %396 = arith.index_cast %387 : i32 to index
    %c0_100 = arith.constant 0 : index
    %c0_101 = arith.constant 0 : index
    %397 = vector.load %arg6[%396, %c0_100, %c0_101] : memref<8x2x256xf32, #tpu.memory_space<vmem>>, vector<1x2x256xf32>
    %398 = vector.shape_cast %397 : vector<1x2x256xf32> to vector<2x256xf32>
    %399 = vector.extract_strided_slice %398 {offsets = [0, 128], sizes = [2, 128], strides = [1, 1]} : vector<2x256xf32> to vector<2x128xf32>
    %400 = vector.extract_strided_slice %389 {offsets = [0, 128], sizes = [2, 128], strides = [1, 1]} : vector<2x256xf32> to vector<2x128xf32>
    %401 = arith.addf %399, %400 : vector<2x128xf32>
    %402 = vector.extract_strided_slice %395 {offsets = [0, 0], sizes = [2, 32], strides = [1, 1]} : vector<2x128xf32> to vector<2x32xf32>
    %403 = arith.negf %402 : vector<2x32xf32>
    %404 = math.exp %403 : vector<2x32xf32>
    %cst_102 = arith.constant 1.000000e+00 : f32
    %405 = vector.broadcast %cst_102 : f32 to vector<2x32xf32>
    %406 = arith.addf %405, %404 : vector<2x32xf32>
    %407 = arith.divf %405, %406 : vector<2x32xf32>
    %408 = vector.extract_strided_slice %395 {offsets = [0, 32], sizes = [2, 32], strides = [1, 1]} : vector<2x128xf32> to vector<2x32xf32>
    %409 = arith.negf %408 : vector<2x32xf32>
    %410 = math.exp %409 : vector<2x32xf32>
    %cst_103 = arith.constant 1.000000e+00 : f32
    %411 = vector.broadcast %cst_103 : f32 to vector<2x32xf32>
    %412 = arith.addf %411, %410 : vector<2x32xf32>
    %413 = arith.divf %411, %412 : vector<2x32xf32>
    %414 = vector.extract_strided_slice %395 {offsets = [0, 64], sizes = [2, 32], strides = [1, 1]} : vector<2x128xf32> to vector<2x32xf32>
    %415 = math.tanh %414 : vector<2x32xf32>
    %416 = vector.extract_strided_slice %395 {offsets = [0, 96], sizes = [2, 32], strides = [1, 1]} : vector<2x128xf32> to vector<2x32xf32>
    %417 = arith.negf %416 : vector<2x32xf32>
    %418 = math.exp %417 : vector<2x32xf32>
    %cst_104 = arith.constant 1.000000e+00 : f32
    %419 = vector.broadcast %cst_104 : f32 to vector<2x32xf32>
    %420 = arith.addf %419, %418 : vector<2x32xf32>
    %421 = arith.divf %419, %420 : vector<2x32xf32>
    %422 = arith.mulf %413, %350 : vector<2x32xf32>
    %423 = arith.mulf %407, %415 : vector<2x32xf32>
    %424 = arith.addf %422, %423 : vector<2x32xf32>
    %425 = math.tanh %424 : vector<2x32xf32>
    %426 = arith.mulf %421, %425 : vector<2x32xf32>
    %427 = vector.extract_strided_slice %401 {offsets = [0, 0], sizes = [2, 32], strides = [1, 1]} : vector<2x128xf32> to vector<2x32xf32>
    %428 = arith.negf %427 : vector<2x32xf32>
    %429 = math.exp %428 : vector<2x32xf32>
    %cst_105 = arith.constant 1.000000e+00 : f32
    %430 = vector.broadcast %cst_105 : f32 to vector<2x32xf32>
    %431 = arith.addf %430, %429 : vector<2x32xf32>
    %432 = arith.divf %430, %431 : vector<2x32xf32>
    %433 = vector.extract_strided_slice %401 {offsets = [0, 32], sizes = [2, 32], strides = [1, 1]} : vector<2x128xf32> to vector<2x32xf32>
    %434 = arith.negf %433 : vector<2x32xf32>
    %435 = math.exp %434 : vector<2x32xf32>
    %cst_106 = arith.constant 1.000000e+00 : f32
    %436 = vector.broadcast %cst_106 : f32 to vector<2x32xf32>
    %437 = arith.addf %436, %435 : vector<2x32xf32>
    %438 = arith.divf %436, %437 : vector<2x32xf32>
    %439 = vector.extract_strided_slice %401 {offsets = [0, 64], sizes = [2, 32], strides = [1, 1]} : vector<2x128xf32> to vector<2x32xf32>
    %440 = math.tanh %439 : vector<2x32xf32>
    %441 = vector.extract_strided_slice %401 {offsets = [0, 96], sizes = [2, 32], strides = [1, 1]} : vector<2x128xf32> to vector<2x32xf32>
    %442 = arith.negf %441 : vector<2x32xf32>
    %443 = math.exp %442 : vector<2x32xf32>
    %cst_107 = arith.constant 1.000000e+00 : f32
    %444 = vector.broadcast %cst_107 : f32 to vector<2x32xf32>
    %445 = arith.addf %444, %443 : vector<2x32xf32>
    %446 = arith.divf %444, %445 : vector<2x32xf32>
    %447 = arith.mulf %438, %375 : vector<2x32xf32>
    %448 = arith.mulf %432, %440 : vector<2x32xf32>
    %449 = arith.addf %447, %448 : vector<2x32xf32>
    %450 = math.tanh %449 : vector<2x32xf32>
    %451 = arith.mulf %446, %450 : vector<2x32xf32>
    %452 = arith.index_cast %c5_i32 : i32 to index
    %c0_108 = arith.constant 0 : index
    %c0_109 = arith.constant 0 : index
    %453 = vector.load %arg7[%452, %c0_108, %c0_109] : memref<8x2x32xf32, #tpu.memory_space<vmem>>, vector<1x2x32xf32>
    %454 = vector.shape_cast %453 : vector<1x2x32xf32> to vector<2x32xf32>
    %455 = vector.shape_cast %426 : vector<2x32xf32> to vector<1x2x32xf32>
    tpu.vector_store %arg7[%452, %c0_108, %c0_109], %455 {strides = array<i32>} : memref<8x2x32xf32, #tpu.memory_space<vmem>>, vector<1x2x32xf32>,
    %456 = arith.index_cast %387 : i32 to index
    %c0_110 = arith.constant 0 : index
    %c0_111 = arith.constant 0 : index
    %457 = vector.load %arg8[%456, %c0_110, %c0_111] : memref<8x2x32xf32, #tpu.memory_space<vmem>>, vector<1x2x32xf32>
    %458 = vector.shape_cast %457 : vector<1x2x32xf32> to vector<2x32xf32>
    %459 = vector.shape_cast %451 : vector<2x32xf32> to vector<1x2x32xf32>
    tpu.vector_store %arg8[%456, %c0_110, %c0_111], %459 {strides = array<i32>} : memref<8x2x32xf32, #tpu.memory_space<vmem>>, vector<1x2x32xf32>,
    %460 = tpu.concatenate %426, %451 in 1 : vector<2x32xf32>, vector<2x32xf32> -> vector<2x64xf32>
    %c6_i32 = arith.constant 6 : i32
    %c7_i32_112 = arith.constant 7 : i32
    %461 = arith.subi %c7_i32_112, %c6_i32 : i32
    %462 = arith.truncf %460 : vector<2x64xf32> to vector<2x64xbf16>
    %cst_113 = arith.constant dense<0.000000e+00> : vector<2x256xf32>
    %463 = tpu.matmul %462, %14, %cst_113 {dimension_numbers = #tpu.dot_dimension_numbers<[1], [0], [0], [1], [0, 0, 1, 1], [], []>} : vector<2x64xbf16>, vector<64x256xbf16>, vector<2x256xf32> -> vector<2x256xf32>
    %464 = arith.index_cast %c6_i32 : i32 to index
    %c0_114 = arith.constant 0 : index
    %c0_115 = arith.constant 0 : index
    %465 = vector.load %arg6[%464, %c0_114, %c0_115] : memref<8x2x256xf32, #tpu.memory_space<vmem>>, vector<1x2x256xf32>
    %466 = vector.shape_cast %465 : vector<1x2x256xf32> to vector<2x256xf32>
    %467 = vector.extract_strided_slice %466 {offsets = [0, 0], sizes = [2, 128], strides = [1, 1]} : vector<2x256xf32> to vector<2x128xf32>
    %468 = vector.extract_strided_slice %463 {offsets = [0, 0], sizes = [2, 128], strides = [1, 1]} : vector<2x256xf32> to vector<2x128xf32>
    %469 = arith.addf %467, %468 : vector<2x128xf32>
    %470 = arith.index_cast %461 : i32 to index
    %c0_116 = arith.constant 0 : index
    %c0_117 = arith.constant 0 : index
    %471 = vector.load %arg6[%470, %c0_116, %c0_117] : memref<8x2x256xf32, #tpu.memory_space<vmem>>, vector<1x2x256xf32>
    %472 = vector.shape_cast %471 : vector<1x2x256xf32> to vector<2x256xf32>
    %473 = vector.extract_strided_slice %472 {offsets = [0, 128], sizes = [2, 128], strides = [1, 1]} : vector<2x256xf32> to vector<2x128xf32>
    %474 = vector.extract_strided_slice %463 {offsets = [0, 128], sizes = [2, 128], strides = [1, 1]} : vector<2x256xf32> to vector<2x128xf32>
    %475 = arith.addf %473, %474 : vector<2x128xf32>
    %476 = vector.extract_strided_slice %469 {offsets = [0, 0], sizes = [2, 32], strides = [1, 1]} : vector<2x128xf32> to vector<2x32xf32>
    %477 = arith.negf %476 : vector<2x32xf32>
    %478 = math.exp %477 : vector<2x32xf32>
    %cst_118 = arith.constant 1.000000e+00 : f32
    %479 = vector.broadcast %cst_118 : f32 to vector<2x32xf32>
    %480 = arith.addf %479, %478 : vector<2x32xf32>
    %481 = arith.divf %479, %480 : vector<2x32xf32>
    %482 = vector.extract_strided_slice %469 {offsets = [0, 32], sizes = [2, 32], strides = [1, 1]} : vector<2x128xf32> to vector<2x32xf32>
    %483 = arith.negf %482 : vector<2x32xf32>
    %484 = math.exp %483 : vector<2x32xf32>
    %cst_119 = arith.constant 1.000000e+00 : f32
    %485 = vector.broadcast %cst_119 : f32 to vector<2x32xf32>
    %486 = arith.addf %485, %484 : vector<2x32xf32>
    %487 = arith.divf %485, %486 : vector<2x32xf32>
    %488 = vector.extract_strided_slice %469 {offsets = [0, 64], sizes = [2, 32], strides = [1, 1]} : vector<2x128xf32> to vector<2x32xf32>
    %489 = math.tanh %488 : vector<2x32xf32>
    %490 = vector.extract_strided_slice %469 {offsets = [0, 96], sizes = [2, 32], strides = [1, 1]} : vector<2x128xf32> to vector<2x32xf32>
    %491 = arith.negf %490 : vector<2x32xf32>
    %492 = math.exp %491 : vector<2x32xf32>
    %cst_120 = arith.constant 1.000000e+00 : f32
    %493 = vector.broadcast %cst_120 : f32 to vector<2x32xf32>
    %494 = arith.addf %493, %492 : vector<2x32xf32>
    %495 = arith.divf %493, %494 : vector<2x32xf32>
    %496 = arith.mulf %487, %424 : vector<2x32xf32>
    %497 = arith.mulf %481, %489 : vector<2x32xf32>
    %498 = arith.addf %496, %497 : vector<2x32xf32>
    %499 = math.tanh %498 : vector<2x32xf32>
    %500 = arith.mulf %495, %499 : vector<2x32xf32>
    %501 = vector.extract_strided_slice %475 {offsets = [0, 0], sizes = [2, 32], strides = [1, 1]} : vector<2x128xf32> to vector<2x32xf32>
    %502 = arith.negf %501 : vector<2x32xf32>
    %503 = math.exp %502 : vector<2x32xf32>
    %cst_121 = arith.constant 1.000000e+00 : f32
    %504 = vector.broadcast %cst_121 : f32 to vector<2x32xf32>
    %505 = arith.addf %504, %503 : vector<2x32xf32>
    %506 = arith.divf %504, %505 : vector<2x32xf32>
    %507 = vector.extract_strided_slice %475 {offsets = [0, 32], sizes = [2, 32], strides = [1, 1]} : vector<2x128xf32> to vector<2x32xf32>
    %508 = arith.negf %507 : vector<2x32xf32>
    %509 = math.exp %508 : vector<2x32xf32>
    %cst_122 = arith.constant 1.000000e+00 : f32
    %510 = vector.broadcast %cst_122 : f32 to vector<2x32xf32>
    %511 = arith.addf %510, %509 : vector<2x32xf32>
    %512 = arith.divf %510, %511 : vector<2x32xf32>
    %513 = vector.extract_strided_slice %475 {offsets = [0, 64], sizes = [2, 32], strides = [1, 1]} : vector<2x128xf32> to vector<2x32xf32>
    %514 = math.tanh %513 : vector<2x32xf32>
    %515 = vector.extract_strided_slice %475 {offsets = [0, 96], sizes = [2, 32], strides = [1, 1]} : vector<2x128xf32> to vector<2x32xf32>
    %516 = arith.negf %515 : vector<2x32xf32>
    %517 = math.exp %516 : vector<2x32xf32>
    %cst_123 = arith.constant 1.000000e+00 : f32
    %518 = vector.broadcast %cst_123 : f32 to vector<2x32xf32>
    %519 = arith.addf %518, %517 : vector<2x32xf32>
    %520 = arith.divf %518, %519 : vector<2x32xf32>
    %521 = arith.mulf %512, %449 : vector<2x32xf32>
    %522 = arith.mulf %506, %514 : vector<2x32xf32>
    %523 = arith.addf %521, %522 : vector<2x32xf32>
    %524 = math.tanh %523 : vector<2x32xf32>
    %525 = arith.mulf %520, %524 : vector<2x32xf32>
    %526 = arith.index_cast %c6_i32 : i32 to index
    %c0_124 = arith.constant 0 : index
    %c0_125 = arith.constant 0 : index
    %527 = vector.load %arg7[%526, %c0_124, %c0_125] : memref<8x2x32xf32, #tpu.memory_space<vmem>>, vector<1x2x32xf32>
    %528 = vector.shape_cast %527 : vector<1x2x32xf32> to vector<2x32xf32>
    %529 = vector.shape_cast %500 : vector<2x32xf32> to vector<1x2x32xf32>
    tpu.vector_store %arg7[%526, %c0_124, %c0_125], %529 {strides = array<i32>} : memref<8x2x32xf32, #tpu.memory_space<vmem>>, vector<1x2x32xf32>,
    %530 = arith.index_cast %461 : i32 to index
    %c0_126 = arith.constant 0 : index
    %c0_127 = arith.constant 0 : index
    %531 = vector.load %arg8[%530, %c0_126, %c0_127] : memref<8x2x32xf32, #tpu.memory_space<vmem>>, vector<1x2x32xf32>
    %532 = vector.shape_cast %531 : vector<1x2x32xf32> to vector<2x32xf32>
    %533 = vector.shape_cast %525 : vector<2x32xf32> to vector<1x2x32xf32>
    tpu.vector_store %arg8[%530, %c0_126, %c0_127], %533 {strides = array<i32>} : memref<8x2x32xf32, #tpu.memory_space<vmem>>, vector<1x2x32xf32>,
    %534 = tpu.concatenate %500, %525 in 1 : vector<2x32xf32>, vector<2x32xf32> -> vector<2x64xf32>
    %c7_i32_128 = arith.constant 7 : i32
    %c7_i32_129 = arith.constant 7 : i32
    %535 = arith.subi %c7_i32_129, %c7_i32_128 : i32
    %536 = arith.truncf %534 : vector<2x64xf32> to vector<2x64xbf16>
    %cst_130 = arith.constant dense<0.000000e+00> : vector<2x256xf32>
    %537 = tpu.matmul %536, %14, %cst_130 {dimension_numbers = #tpu.dot_dimension_numbers<[1], [0], [0], [1], [0, 0, 1, 1], [], []>} : vector<2x64xbf16>, vector<64x256xbf16>, vector<2x256xf32> -> vector<2x256xf32>
    %538 = arith.index_cast %c7_i32_128 : i32 to index
    %c0_131 = arith.constant 0 : index
    %c0_132 = arith.constant 0 : index
    %539 = vector.load %arg6[%538, %c0_131, %c0_132] : memref<8x2x256xf32, #tpu.memory_space<vmem>>, vector<1x2x256xf32>
    %540 = vector.shape_cast %539 : vector<1x2x256xf32> to vector<2x256xf32>
    %541 = vector.extract_strided_slice %540 {offsets = [0, 0], sizes = [2, 128], strides = [1, 1]} : vector<2x256xf32> to vector<2x128xf32>
    %542 = vector.extract_strided_slice %537 {offsets = [0, 0], sizes = [2, 128], strides = [1, 1]} : vector<2x256xf32> to vector<2x128xf32>
    %543 = arith.addf %541, %542 : vector<2x128xf32>
    %544 = arith.index_cast %535 : i32 to index
    %c0_133 = arith.constant 0 : index
    %c0_134 = arith.constant 0 : index
    %545 = vector.load %arg6[%544, %c0_133, %c0_134] : memref<8x2x256xf32, #tpu.memory_space<vmem>>, vector<1x2x256xf32>
    %546 = vector.shape_cast %545 : vector<1x2x256xf32> to vector<2x256xf32>
    %547 = vector.extract_strided_slice %546 {offsets = [0, 128], sizes = [2, 128], strides = [1, 1]} : vector<2x256xf32> to vector<2x128xf32>
    %548 = vector.extract_strided_slice %537 {offsets = [0, 128], sizes = [2, 128], strides = [1, 1]} : vector<2x256xf32> to vector<2x128xf32>
    %549 = arith.addf %547, %548 : vector<2x128xf32>
    %550 = vector.extract_strided_slice %543 {offsets = [0, 0], sizes = [2, 32], strides = [1, 1]} : vector<2x128xf32> to vector<2x32xf32>
    %551 = arith.negf %550 : vector<2x32xf32>
    %552 = math.exp %551 : vector<2x32xf32>
    %cst_135 = arith.constant 1.000000e+00 : f32
    %553 = vector.broadcast %cst_135 : f32 to vector<2x32xf32>
    %554 = arith.addf %553, %552 : vector<2x32xf32>
    %555 = arith.divf %553, %554 : vector<2x32xf32>
    %556 = vector.extract_strided_slice %543 {offsets = [0, 32], sizes = [2, 32], strides = [1, 1]} : vector<2x128xf32> to vector<2x32xf32>
    %557 = arith.negf %556 : vector<2x32xf32>
    %558 = math.exp %557 : vector<2x32xf32>
    %cst_136 = arith.constant 1.000000e+00 : f32
    %559 = vector.broadcast %cst_136 : f32 to vector<2x32xf32>
    %560 = arith.addf %559, %558 : vector<2x32xf32>
    %561 = arith.divf %559, %560 : vector<2x32xf32>
    %562 = vector.extract_strided_slice %543 {offsets = [0, 64], sizes = [2, 32], strides = [1, 1]} : vector<2x128xf32> to vector<2x32xf32>
    %563 = math.tanh %562 : vector<2x32xf32>
    %564 = vector.extract_strided_slice %543 {offsets = [0, 96], sizes = [2, 32], strides = [1, 1]} : vector<2x128xf32> to vector<2x32xf32>
    %565 = arith.negf %564 : vector<2x32xf32>
    %566 = math.exp %565 : vector<2x32xf32>
    %cst_137 = arith.constant 1.000000e+00 : f32
    %567 = vector.broadcast %cst_137 : f32 to vector<2x32xf32>
    %568 = arith.addf %567, %566 : vector<2x32xf32>
    %569 = arith.divf %567, %568 : vector<2x32xf32>
    %570 = arith.mulf %561, %498 : vector<2x32xf32>
    %571 = arith.mulf %555, %563 : vector<2x32xf32>
    %572 = arith.addf %570, %571 : vector<2x32xf32>
    %573 = math.tanh %572 : vector<2x32xf32>
    %574 = arith.mulf %569, %573 : vector<2x32xf32>
    %575 = vector.extract_strided_slice %549 {offsets = [0, 0], sizes = [2, 32], strides = [1, 1]} : vector<2x128xf32> to vector<2x32xf32>
    %576 = arith.negf %575 : vector<2x32xf32>
    %577 = math.exp %576 : vector<2x32xf32>
    %cst_138 = arith.constant 1.000000e+00 : f32
    %578 = vector.broadcast %cst_138 : f32 to vector<2x32xf32>
    %579 = arith.addf %578, %577 : vector<2x32xf32>
    %580 = arith.divf %578, %579 : vector<2x32xf32>
    %581 = vector.extract_strided_slice %549 {offsets = [0, 32], sizes = [2, 32], strides = [1, 1]} : vector<2x128xf32> to vector<2x32xf32>
    %582 = arith.negf %581 : vector<2x32xf32>
    %583 = math.exp %582 : vector<2x32xf32>
    %cst_139 = arith.constant 1.000000e+00 : f32
    %584 = vector.broadcast %cst_139 : f32 to vector<2x32xf32>
    %585 = arith.addf %584, %583 : vector<2x32xf32>
    %586 = arith.divf %584, %585 : vector<2x32xf32>
    %587 = vector.extract_strided_slice %549 {offsets = [0, 64], sizes = [2, 32], strides = [1, 1]} : vector<2x128xf32> to vector<2x32xf32>
    %588 = math.tanh %587 : vector<2x32xf32>
    %589 = vector.extract_strided_slice %549 {offsets = [0, 96], sizes = [2, 32], strides = [1, 1]} : vector<2x128xf32> to vector<2x32xf32>
    %590 = arith.negf %589 : vector<2x32xf32>
    %591 = math.exp %590 : vector<2x32xf32>
    %cst_140 = arith.constant 1.000000e+00 : f32
    %592 = vector.broadcast %cst_140 : f32 to vector<2x32xf32>
    %593 = arith.addf %592, %591 : vector<2x32xf32>
    %594 = arith.divf %592, %593 : vector<2x32xf32>
    %595 = arith.mulf %586, %523 : vector<2x32xf32>
    %596 = arith.mulf %580, %588 : vector<2x32xf32>
    %597 = arith.addf %595, %596 : vector<2x32xf32>
    %598 = math.tanh %597 : vector<2x32xf32>
    %599 = arith.mulf %594, %598 : vector<2x32xf32>
    %600 = arith.index_cast %c7_i32_128 : i32 to index
    %c0_141 = arith.constant 0 : index
    %c0_142 = arith.constant 0 : index
    %601 = vector.load %arg7[%600, %c0_141, %c0_142] : memref<8x2x32xf32, #tpu.memory_space<vmem>>, vector<1x2x32xf32>
    %602 = vector.shape_cast %601 : vector<1x2x32xf32> to vector<2x32xf32>
    %603 = vector.shape_cast %574 : vector<2x32xf32> to vector<1x2x32xf32>
    tpu.vector_store %arg7[%600, %c0_141, %c0_142], %603 {strides = array<i32>} : memref<8x2x32xf32, #tpu.memory_space<vmem>>, vector<1x2x32xf32>,
    %604 = arith.index_cast %535 : i32 to index
    %c0_143 = arith.constant 0 : index
    %c0_144 = arith.constant 0 : index
    %605 = vector.load %arg8[%604, %c0_143, %c0_144] : memref<8x2x32xf32, #tpu.memory_space<vmem>>, vector<1x2x32xf32>
    %606 = vector.shape_cast %605 : vector<1x2x32xf32> to vector<2x32xf32>
    %607 = vector.shape_cast %599 : vector<2x32xf32> to vector<1x2x32xf32>
    tpu.vector_store %arg8[%604, %c0_143, %c0_144], %607 {strides = array<i32>} : memref<8x2x32xf32, #tpu.memory_space<vmem>>, vector<1x2x32xf32>,
    %608 = tpu.concatenate %574, %599 in 1 : vector<2x32xf32>, vector<2x32xf32> -> vector<2x64xf32>
    %c8_i32 = arith.constant 8 : i32
    %c0_145 = arith.constant 0 : index
    %c0_146 = arith.constant 0 : index
    %c0_147 = arith.constant 0 : index
    %609 = vector.load %arg7[%c0_145, %c0_146, %c0_147] : memref<8x2x32xf32, #tpu.memory_space<vmem>>, vector<8x2x32xf32>
    %c0_148 = arith.constant 0 : index
    %c0_149 = arith.constant 0 : index
    %c0_150 = arith.constant 0 : index
    %610 = vector.load %arg8[%c0_148, %c0_149, %c0_150] : memref<8x2x32xf32, #tpu.memory_space<vmem>>, vector<8x2x32xf32>
    %611 = tpu.concatenate %609, %610 in 2 : vector<8x2x32xf32>, vector<8x2x32xf32> -> vector<8x2x64xf32>
    %c0_151 = arith.constant 0 : index
    %c0_152 = arith.constant 0 : index
    %c0_153 = arith.constant 0 : index
    %c0_154 = arith.constant 0 : index
    %612 = vector.load %arg5[%c0_151, %c0_152, %c0_153, %c0_154] : memref<1x8x2x64xf32, #tpu.memory_space<vmem>>, vector<1x8x2x64xf32>
    %613 = vector.shape_cast %612 : vector<1x8x2x64xf32> to vector<8x2x64xf32>
    %614 = vector.shape_cast %611 : vector<8x2x64xf32> to vector<1x8x2x64xf32>
    tpu.vector_store %arg5[%c0_151, %c0_152, %c0_153, %c0_154], %614 {strides = array<i32>} : memref<1x8x2x64xf32, #tpu.memory_space<vmem>>, vector<1x8x2x64xf32>,
    return
  }
  func.func @transform_0(%arg0: i32) -> (i32, i32, i32, i32) {
    %c0_i32 = arith.constant 0 : i32
    %c0_i32_0 = arith.constant 0 : i32
    %c0_i32_1 = arith.constant 0 : i32
    %c0_i32_2 = arith.constant 0 : i32
    return %arg0, %c0_i32, %c0_i32_0, %c0_i32_1 : i32, i32, i32, i32
  }
  func.func @transform_1(%arg0: i32) -> (i32, i32, i32) {
    %c0_i32 = arith.constant 0 : i32
    %c0_i32_0 = arith.constant 0 : i32
    %c0_i32_1 = arith.constant 0 : i32
    return %arg0, %c0_i32, %c0_i32_0 : i32, i32, i32
  }
  func.func @transform_2(%arg0: i32) -> (i32, i32, i32) {
    %c0_i32 = arith.constant 0 : i32
    %c0_i32_0 = arith.constant 0 : i32
    %c0_i32_1 = arith.constant 0 : i32
    return %arg0, %c0_i32, %c0_i32_0 : i32, i32, i32
  }
  func.func @transform_3(%arg0: i32) -> (i32, i32, i32) {
    %c0_i32 = arith.constant 0 : i32
    %c0_i32_0 = arith.constant 0 : i32
    %c0_i32_1 = arith.constant 0 : i32
    return %arg0, %c0_i32, %c0_i32_0 : i32, i32, i32
  }
  func.func @transform_4(%arg0: i32) -> (i32, i32, i32, i32) {
    %c0_i32 = arith.constant 0 : i32
    %c0_i32_0 = arith.constant 0 : i32
    %c0_i32_1 = arith.constant 0 : i32
    %c0_i32_2 = arith.constant 0 : i32
    return %arg0, %c0_i32, %c0_i32_0, %c0_i32_1 : i32, i32, i32, i32
  }
}

module attributes {stable_mosaic.version = 11 : i64} {
  func.func @_ffn_loss_kernel(%arg0: i32, %arg1: memref<1x8x2x64xf32, #tpu.memory_space<vmem>>, %arg2: memref<1x64x32xbf16, #tpu.memory_space<vmem>>, %arg3: memref<1x1x32xf32, #tpu.memory_space<vmem>>, %arg4: memref<1x32x2xbf16, #tpu.memory_space<vmem>>, %arg5: memref<1x1x2xf32, #tpu.memory_space<vmem>>, %arg6: memref<16x1xi32, #tpu.memory_space<vmem>>, %arg7: memref<16x1xf32, #tpu.memory_space<vmem>>, %arg8: memref<1x1x1xf32, #tpu.memory_space<vmem>>, %arg9: memref<1x16x1xf32, #tpu.memory_space<vmem>>) attributes {dimension_semantics = [#tpu.dimension_semantics<parallel>], iteration_bounds = array<i64: 3>, scalar_prefetch = 0 : i64, scratch_operands = 0 : i64, tpu.core_type = #tpu.core_type<tc>, window_params = [{transform_indices = @transform_0, window_bounds = array<i64: 1, 8, 2, 64>}, {transform_indices = @transform_1, window_bounds = array<i64: 1, 64, 32>}, {transform_indices = @transform_2, window_bounds = array<i64: 1, 1, 32>}, {transform_indices = @transform_3, window_bounds = array<i64: 1, 32, 2>}, {transform_indices = @transform_4, window_bounds = array<i64: 1, 1, 2>}, {pipeline_mode = #tpu.pipeline_mode<synchronous>, transform_indices = @transform_5, window_bounds = array<i64: 16, 1>}, {pipeline_mode = #tpu.pipeline_mode<synchronous>, transform_indices = @transform_6, window_bounds = array<i64: 16, 1>}, {transform_indices = @transform_7, window_bounds = array<i64: 1, 1, 1>}, {transform_indices = @transform_8, window_bounds = array<i64: 1, 16, 1>}]} {
    %c0 = arith.constant 0 : index
    %c0_0 = arith.constant 0 : index
    %c0_1 = arith.constant 0 : index
    %c0_2 = arith.constant 0 : index
    %0 = vector.load %arg1[%c0, %c0_0, %c0_1, %c0_2] : memref<1x8x2x64xf32, #tpu.memory_space<vmem>>, vector<1x8x2x64xf32>
    %1 = vector.shape_cast %0 : vector<1x8x2x64xf32> to vector<8x2x64xf32>
    %2 = vector.shape_cast %1 : vector<8x2x64xf32> to vector<16x64xf32>
    %3 = arith.truncf %2 : vector<16x64xf32> to vector<16x64xbf16>
    %c0_3 = arith.constant 0 : index
    %c0_4 = arith.constant 0 : index
    %c0_5 = arith.constant 0 : index
    %4 = vector.load %arg2[%c0_3, %c0_4, %c0_5] : memref<1x64x32xbf16, #tpu.memory_space<vmem>>, vector<1x64x32xbf16>
    %5 = vector.shape_cast %4 : vector<1x64x32xbf16> to vector<64x32xbf16>
    %cst = arith.constant dense<0.000000e+00> : vector<16x32xf32>
    %6 = tpu.matmul %3, %5, %cst {dimension_numbers = #tpu.dot_dimension_numbers<[1], [0], [0], [1], [0, 0, 1, 1], [], []>} : vector<16x64xbf16>, vector<64x32xbf16>, vector<16x32xf32> -> vector<16x32xf32>
    %c0_6 = arith.constant 0 : index
    %c0_7 = arith.constant 0 : index
    %c0_8 = arith.constant 0 : index
    %7 = vector.load %arg3[%c0_6, %c0_7, %c0_8] : memref<1x1x32xf32, #tpu.memory_space<vmem>>, vector<1x1x32xf32>
    %8 = vector.shape_cast %7 : vector<1x1x32xf32> to vector<1x32xf32>
    %9 = vector.broadcast %8 : vector<1x32xf32> to vector<16x32xf32>
    %10 = arith.addf %6, %9 : vector<16x32xf32>
    %cst_9 = arith.constant 0.000000e+00 : f32
    %11 = vector.broadcast %cst_9 : f32 to vector<16x32xf32>
    %12 = arith.maximumf %10, %11 : vector<16x32xf32>
    %13 = arith.truncf %12 : vector<16x32xf32> to vector<16x32xbf16>
    %c0_10 = arith.constant 0 : index
    %c0_11 = arith.constant 0 : index
    %c0_12 = arith.constant 0 : index
    %14 = vector.load %arg4[%c0_10, %c0_11, %c0_12] : memref<1x32x2xbf16, #tpu.memory_space<vmem>>, vector<1x32x2xbf16>
    %15 = vector.shape_cast %14 : vector<1x32x2xbf16> to vector<32x2xbf16>
    %cst_13 = arith.constant dense<0.000000e+00> : vector<16x2xf32>
    %16 = tpu.matmul %13, %15, %cst_13 {dimension_numbers = #tpu.dot_dimension_numbers<[1], [0], [0], [1], [0, 0, 1, 1], [], []>} : vector<16x32xbf16>, vector<32x2xbf16>, vector<16x2xf32> -> vector<16x2xf32>
    %c0_14 = arith.constant 0 : index
    %c0_15 = arith.constant 0 : index
    %c0_16 = arith.constant 0 : index
    %17 = vector.load %arg5[%c0_14, %c0_15, %c0_16] : memref<1x1x2xf32, #tpu.memory_space<vmem>>, vector<1x1x2xf32>
    %18 = vector.shape_cast %17 : vector<1x1x2xf32> to vector<1x2xf32>
    %19 = vector.broadcast %18 : vector<1x2xf32> to vector<16x2xf32>
    %20 = arith.addf %16, %19 : vector<16x2xf32>
    %21 = vector.extract_strided_slice %20 {offsets = [0, 0], sizes = [16, 1], strides = [1, 1]} : vector<16x2xf32> to vector<16x1xf32>
    %22 = vector.extract_strided_slice %20 {offsets = [0, 1], sizes = [16, 1], strides = [1, 1]} : vector<16x2xf32> to vector<16x1xf32>
    %23 = arith.maximumf %21, %22 : vector<16x1xf32>
    %24 = arith.subf %21, %23 : vector<16x1xf32>
    %25 = math.exp %24 : vector<16x1xf32>
    %26 = arith.subf %22, %23 : vector<16x1xf32>
    %27 = math.exp %26 : vector<16x1xf32>
    %28 = arith.addf %25, %27 : vector<16x1xf32>
    %29 = math.log %28 : vector<16x1xf32>
    %30 = arith.addf %23, %29 : vector<16x1xf32>
    %c0_17 = arith.constant 0 : index
    %c0_18 = arith.constant 0 : index
    %31 = vector.load %arg6[%c0_17, %c0_18] : memref<16x1xi32, #tpu.memory_space<vmem>>, vector<16x1xi32>
    %c1_i32 = arith.constant 1 : i32
    %32 = vector.broadcast %c1_i32 : i32 to vector<16x1xi32>
    %33 = arith.cmpi eq, %31, %32 : vector<16x1xi32>
    %34 = arith.select %33, %22, %21 : vector<16x1xi1>, vector<16x1xf32>
    %35 = arith.subf %34, %30 : vector<16x1xf32>
    %cst_19 = arith.constant 0.000000e+00 : f32
    %36 = vector.broadcast %cst_19 : f32 to vector<16x1xf32>
    %37 = arith.subf %36, %35 : vector<16x1xf32>
    %c0_20 = arith.constant 0 : index
    %c0_21 = arith.constant 0 : index
    %38 = vector.load %arg7[%c0_20, %c0_21] : memref<16x1xf32, #tpu.memory_space<vmem>>, vector<16x1xf32>
    %39 = arith.mulf %37, %38 : vector<16x1xf32>
    %40 = vector.shape_cast %39 : vector<16x1xf32> to vector<1x16x1xf32>
    %cst_22 = arith.constant dense<0.000000e+00> : vector<1xf32>
    %41 = vector.multi_reduction <add>, %40, %cst_22 [1, 2] : vector<1x16x1xf32> to vector<1xf32>
    %42 = vector.shape_cast %41 : vector<1xf32> to vector<1x1x1xf32>
    %43 = vector.extract %42[0, 0, 0] : f32 from vector<1x1x1xf32>
    %44 = vector.broadcast %43 : f32 to vector<1x1xf32>
    %c0_23 = arith.constant 0 : index
    %c0_24 = arith.constant 0 : index
    %c0_25 = arith.constant 0 : index
    %45 = vector.load %arg8[%c0_23, %c0_24, %c0_25] : memref<1x1x1xf32, #tpu.memory_space<vmem>>, vector<1x1x1xf32>
    %46 = vector.shape_cast %45 : vector<1x1x1xf32> to vector<1x1xf32>
    %47 = vector.shape_cast %44 : vector<1x1xf32> to vector<1x1x1xf32>
    tpu.vector_store %arg8[%c0_23, %c0_24, %c0_25], %47 {strides = array<i32>} : memref<1x1x1xf32, #tpu.memory_space<vmem>>, vector<1x1x1xf32>,
    %48 = arith.cmpf ogt, %22, %21 : vector<16x1xf32>
    %49 = arith.extui %48 : vector<16x1xi1> to vector<16x1xi32>
    %50 = arith.sitofp %49 : vector<16x1xi32> to vector<16x1xf32>
    %c0_26 = arith.constant 0 : index
    %c0_27 = arith.constant 0 : index
    %c0_28 = arith.constant 0 : index
    %51 = vector.load %arg9[%c0_26, %c0_27, %c0_28] : memref<1x16x1xf32, #tpu.memory_space<vmem>>, vector<1x16x1xf32>
    %52 = vector.shape_cast %51 : vector<1x16x1xf32> to vector<16x1xf32>
    %53 = vector.shape_cast %50 : vector<16x1xf32> to vector<1x16x1xf32>
    tpu.vector_store %arg9[%c0_26, %c0_27, %c0_28], %53 {strides = array<i32>} : memref<1x16x1xf32, #tpu.memory_space<vmem>>, vector<1x16x1xf32>,
    return
  }
  func.func @transform_0(%arg0: i32) -> (i32, i32, i32, i32) {
    %c0_i32 = arith.constant 0 : i32
    %c0_i32_0 = arith.constant 0 : i32
    %c0_i32_1 = arith.constant 0 : i32
    %c0_i32_2 = arith.constant 0 : i32
    return %arg0, %c0_i32, %c0_i32_0, %c0_i32_1 : i32, i32, i32, i32
  }
  func.func @transform_1(%arg0: i32) -> (i32, i32, i32) {
    %c0_i32 = arith.constant 0 : i32
    %c0_i32_0 = arith.constant 0 : i32
    %c0_i32_1 = arith.constant 0 : i32
    return %arg0, %c0_i32, %c0_i32_0 : i32, i32, i32
  }
  func.func @transform_2(%arg0: i32) -> (i32, i32, i32) {
    %c0_i32 = arith.constant 0 : i32
    %c0_i32_0 = arith.constant 0 : i32
    %c0_i32_1 = arith.constant 0 : i32
    return %arg0, %c0_i32, %c0_i32_0 : i32, i32, i32
  }
  func.func @transform_3(%arg0: i32) -> (i32, i32, i32) {
    %c0_i32 = arith.constant 0 : i32
    %c0_i32_0 = arith.constant 0 : i32
    %c0_i32_1 = arith.constant 0 : i32
    return %arg0, %c0_i32, %c0_i32_0 : i32, i32, i32
  }
  func.func @transform_4(%arg0: i32) -> (i32, i32, i32) {
    %c0_i32 = arith.constant 0 : i32
    %c0_i32_0 = arith.constant 0 : i32
    %c0_i32_1 = arith.constant 0 : i32
    return %arg0, %c0_i32, %c0_i32_0 : i32, i32, i32
  }
  func.func @transform_5(%arg0: i32) -> (i32, i32) {
    %c0_i32 = arith.constant 0 : i32
    %c0_i32_0 = arith.constant 0 : i32
    %c0_i32_1 = arith.constant 0 : i32
    return %c0_i32, %c0_i32_0 : i32, i32
  }
  func.func @transform_6(%arg0: i32) -> (i32, i32) {
    %c0_i32 = arith.constant 0 : i32
    %c0_i32_0 = arith.constant 0 : i32
    %c0_i32_1 = arith.constant 0 : i32
    return %c0_i32, %c0_i32_0 : i32, i32
  }
  func.func @transform_7(%arg0: i32) -> (i32, i32, i32) {
    %c0_i32 = arith.constant 0 : i32
    %c0_i32_0 = arith.constant 0 : i32
    %c0_i32_1 = arith.constant 0 : i32
    return %arg0, %c0_i32, %c0_i32_0 : i32, i32, i32
  }
  func.func @transform_8(%arg0: i32) -> (i32, i32, i32) {
    %c0_i32 = arith.constant 0 : i32
    %c0_i32_0 = arith.constant 0 : i32
    %c0_i32_1 = arith.constant 0 : i32
    return %arg0, %c0_i32, %c0_i32_0 : i32, i32, i32
  }
}

</mosaic_0001>

<bundles_post_ra>
// kernel: ensemble_forward.5
= control target key start
LH: loop header
LB: loop body
LE: loop exit
PB: predicated region body
PF: predicated region fallthrough
CT: control target
= control target key end

     0   :  { %s876_s27 = smov 0   ;;  %s942_s0 = inlined_call_operand.vmem [shape: f32[3,8,2,64], index: 0, kind: input, shape index: {}]   ;;  %s943_s1 = inlined_call_operand.vmem [shape: bf16[3,64,32], index: 1, kind: input, shape index: {}]   ;;  %s944_s2 = inlined_call_operand.vmem [shape: f32[3,1,32], index: 2, kind: input, shape index: {}]   ;;  %s945_s3 = inlined_call_operand.vmem [shape: bf16[3,32,2], index: 3, kind: input, shape index: {}]   ;;  %s946_s4 = inlined_call_operand.vmem [shape: f32[3,1,2], index: 4, kind: input, shape index: {}]   ;;  %s947_s5 = inlined_call_operand.vmem [shape: s32[16,1], index: 5, kind: input, shape index: {}]   ;;  %s948_s6 = inlined_call_operand.vmem [shape: f32[16,1], index: 6, kind: input, shape index: {}]   ;;  %s949_s7 = inlined_call_operand.vmem [shape: f32[3,1,1], index: 7, kind: output, shape index: {0}]   ;;  %s950_s8 = inlined_call_operand.vmem [shape: f32[3,16,1], index: 8, kind: output, shape index: {1}]  }
   0x1 LB: > { %s735_s28 = sadd.s32 4294967295, %s826_s27   ;;  %p739_p0 = scmp.ge.s32.totalorder %s826_s27, 1  ;;  %s826_s27 = sphi %s876_s27, %s19_s27  }
   0x2   : > { %p301_p1 = scmp.lt.s32.totalorder %s826_s27, 4 }
   0x4   : > { %p302_p2 = pnand %p739_p0, %p301_p1 }
   0x5   : > { %p354_p3 = scmp.lt.s32.totalorder (!%p302_p2), %s735_s28, 2  ;;  %s828_s26 = smov (!%p302_p2), 127  }
   0x6   : > { %305 = sbr.rel (%p302_p2) target bundleno = 845 (0x34d), region = 48 }
   0xb   : > { %s952_s28 = smov (!%p354_p3, %s735_s28), 2  ;;  %vm456_vm0 = vcmask 523264   ;;  %vm497_vm1 = vcmask 261120   ;;  %v561_v52 = vld [vmem:[%s947_s5] sm:$0xff]  ;;  %v562_v58 = vld [vmem:[%s947_s5 + $0x8] sm:$0xff]  ;;  %v830_v62 = vmov 0.0  }
   0xc   : > { %s887_s29 = sshll.u32 %s952_s28, 4  ;;  %s779_s30 = sshll.u32 %s952_s28, 5  ;;  %vm563_vm2 = vcmp.eq.s32.totalorder %v561_v52, 1  ;;  %vm564_vm5 = vcmp.eq.s32.totalorder %v562_v58, 1  ;;  %vm575_vm6 = vcmask 7168   ;;  %vm589_vm7 = vcmask 0  }
   0xd   : > { %s358_s11 = scalar_lea.vmem %s942_s0, %s887_s29  ;;  %s363_s14 = scalar_lea.vmem %s943_s1, %s779_s30 }
   0xe   : > { %v785_v0 = vld [vmem:[%s363_s14 + $0x18] sm:$0xff]  ;;  %v384_v1 = vld [vmem:[%s358_s11] sm:$0x3]  ;;  %v784_v2 = vld [vmem:[%s363_s14 + $0x10] sm:$0xff]  ;;  %s366_s17 = scalar_lea.vmem %s944_s2, %s952_s28  ;;  %s374_s20 = scalar_lea.vmem %s946_s4, %s952_s28 }
   0xf   : > { %464 = vmatpush.bf16.msra.mxu0 %v785_v0  ;;  %v385_v3 = vld [vmem:[%s358_s11 + $0x2] sm:$0x3]  ;;  %v386_v4 = vld [vmem:[%s358_s11 + $0x4] sm:$0x3]  ;;  %v387_v5 = vld [vmem:[%s358_s11 + $0x6] sm:$0x3]  ;;  %s371_s23 = scalar_lea.vmem %s945_s3, %s887_s29  ;;  %s382_s19 = scalar_lea.vmem %s950_s8, %s887_s29 }
  0x10   : > { %400 = vst [vmem:[#allocation1] ss:$4 sm:$0xff] %v384_v1  ;;  %v388_v6 = vld [vmem:[%s358_s11 + $0x8] sm:$0x3]  ;;  %v389_v8 = vld [vmem:[%s358_s11 + $0xa] sm:$0x3]  ;;  %s377_s22 = scalar_lea.vmem %s949_s7, %s952_s28 }
  0x11   : > { %402 = vst [vmem:[#allocation1 + $0x1] ss:$4 sm:$0xff] %v385_v3  ;;  %v783_v7 = vld [vmem:[%s363_s14 + $0x8] sm:$0xff]  ;;  %v782_v11 = vld [vmem:[%s363_s14] sm:$0xff]  ;;  %s829_s30 = smov 1  }
  0x12   : > { %404 = vst [vmem:[#allocation1 + $0x2] ss:$4 sm:$0xff] %v386_v4  ;;  %v390_v9 = vld [vmem:[%s358_s11 + $0xc] sm:$0x3]  ;;  %v391_v10 = vld [vmem:[%s358_s11 + $0xe] sm:$0x3] }
  0x13   : > { %465 = vmatpush.bf16.msra.mxu0 %v784_v2  ;;  %406 = vst [vmem:[#allocation1 + $0x3] ss:$4 sm:$0xff] %v387_v5  ;;  %v787_v15 = vld [vmem:[%s371_s23 + $0x8] sm:$0xff]  ;;  %v786_v16 = vld [vmem:[%s371_s23] sm:$0xff] }
  0x14   : > { %408 = vst [vmem:[#allocation1 + $0x20] ss:$4 sm:$0xff] %v388_v6  ;;  %507 = vmatpush.bf16.msra.mxu1 %v787_v15  ;;  %v806_v18 = vld [vmem:[%s366_s17] ss:$0 sm:$0xff] }
  0x15   : > { %410 = vst [vmem:[#allocation1 + $0x21] ss:$4 sm:$0xff] %v389_v8  ;;  %v807_v25 = vld [vmem:[%s374_s20] ss:$0 sm:$0xff]  ;;  %v572_v8 = vld [vmem:[%s948_s6 + $0x8] sm:$0xff] }
  0x16   : > { %412 = vst [vmem:[#allocation1 + $0x22] ss:$4 sm:$0xff] %v390_v9  ;;  %v571_v6 = vld [vmem:[%s948_s6] sm:$0xff] }
  0x17   : > { %466 = vmatpush.bf16.msra.mxu0 %v783_v7  ;;  %414 = vst [vmem:[#allocation1 + $0x23] ss:$4 sm:$0xff] %v391_v10 }
  0x18   : > { %508 = vmatpush.bf16.msra.mxu1 %v786_v16 }
  0x1a   : > { %v415_v12 = vld.sshfl [vmem:[#allocation1] sm:$0xff pattern:$0x73625140] }
  0x1b   : > { %467 = vmatpush.bf16.msra.mxu0 %v782_v11 }
  0x1e   : > { %v416_v13 = vld.sshfl [vmem:[#allocation1 + $0x20] sm:$0xff pattern:$0x73625140] }
  0x1f   : > { %v419_v14 = vpack.c.bf16 %v416_v13, %v415_v12 }
  0x21   : > { %764 = vmatmul.msk.bf16.vlgmr.msra.gmra.mxu0 %vm456_vm0, %v419_v14 }
  0x9e   : > { %v469_v17 = vpop.f32.mrf.mxu0 }
  0x9f   : > { %v470_v19 = vadd.f32 %v806_v18, %v469_v17 }
  0xa1   : > { %v474_v22 = vmax.f32 %v470_v19, 0.0 }
  0xa6   : > { %v471_v20 = vpop.f32.mrf.mxu0 }
  0xa7   : > { %v472_v21 = vadd.f32 %v806_v18, %v471_v20 }
  0xa9   : > { %v475_v23 = vmax.f32 %v472_v21, 0.0 }
  0xab   : > { %v476_v24 = vpack.c.bf16 %v475_v23, %v474_v22 }
  0xad   : > { %773 = vmatmul.msk.bf16.vlgmr.msra.gmra.mxu1 %vm497_vm1, %v476_v24 }
 0x12a   : > { %v510_v26 = vpop.f32.mrf.mxu1 }
 0x12b   : > { %v511_v27 = vadd.f32 %v807_v25, %v510_v26 }
 0x12d   : > { %517 = vrot.lane.b32.xlu0 %v511_v27, %s828_s26 }
 0x132   : > { %v512_v28 = vpop.f32.mrf.mxu1 }
 0x133   : > { %v513_v29 = vadd.f32 %v807_v25, %v512_v28 }
 0x135   : > { %519 = vrot.lane.b32.xlu0 %v513_v29, %s828_s26 }
 0x19f   : > { %v518_v30 = vpop.permute.xlu0 %517 }
 0x1a0   : > { %v523_v31 = vmax.f32 %v511_v27, %v518_v30  ;;  %v565_v57 = vsel %vm563_vm2, %v518_v30, %v511_v27 }
 0x1a2   : > { %533 = vrot.lane.b32.xlu1 %v523_v31, %s829_s30  ;;  %v525_v42 = vsub.f32 %v511_v27, %v523_v31 }
 0x1a4   : > { %v527_v43 = vmul.f32 1.442695, %v525_v42 }
 0x1a7   : > { %v520_v32 = vpop.permute.xlu0 %519 }
 0x1a8   : > { %v524_v33 = vmax.f32 %v513_v29, %v520_v32  ;;  %v566_v5 = vsel %vm564_vm5, %v520_v32, %v513_v29 }
 0x1aa   : > { %535 = vrot.lane.b32.xlu1 %v524_v33, %s829_s30  ;;  %v526_v44 = vsub.f32 %v513_v29, %v524_v33 }
 0x1ac   : > { %v529_v45 = vmul.f32 1.442695, %v526_v44 }
 0x1b2   : > { %591 = vrot.lane.b32.xlu1 %v511_v27, %s829_s30 }
 0x214   : > { %v534_v34 = vpop.permute.xlu1 %533 }
 0x215   : > { %v539_v35 = vsub.f32 %v511_v27, %v534_v34 }
 0x217   : > { %v541_v36 = vmul.f32 1.442695, %v539_v35 }
 0x219   : > { %808 = vpow2.f32 %v541_v36 }
 0x21c   : > { %v536_v37 = vpop.permute.xlu1 %535 }
 0x21d   : > { %v540_v38 = vsub.f32 %v513_v29, %v536_v37 }
 0x21f   : > { %v809_v39 = vpop.eup %808  ;;  %v543_v40 = vmul.f32 1.442695, %v540_v38 }
 0x220   : > { %547 = vrot.lane.b32.xlu2 %v809_v39, %s828_s26 }
 0x221   : > { %810 = vpow2.f32 %v543_v40 }
 0x222   : > { %812 = vpow2.f32 %v527_v43 }
 0x223   : > { %814 = vpow2.f32 %v529_v45 }
 0x224   : > { %v592_v55 = vpop.permute.xlu1 %591 }
 0x225   : > { %vm597_vm3 = vcmp.gt.f32.partialorder %v511_v27, %v592_v55 }
 0x226   : > { %v774_v63 = vsel %vm597_vm3, 1.0, %v830_v62 }
 0x227   : > { %v811_v41 = vpop.eup %810 }
 0x228   : > { %549 = vrot.lane.b32.xlu2 %v811_v41, %s828_s26  ;;  %v813_v46 = vpop.eup %812 }
 0x229   : > { %v815_v49 = vpop.eup %814 }
 0x230   : > { %593 = vrot.lane.b32.xlu2 %v513_v29, %s829_s30 }
 0x27a   : > { %v548_v47 = vpop.permute.xlu2 %547 }
 0x27b   : > { %v553_v48 = vadd.f32 %v813_v46, %v548_v47 }
 0x27d   : > { %816 = vlog2.f32 %v553_v48 }
 0x282   : > { %v550_v50 = vpop.permute.xlu2 %549 }
 0x283   : > { %v817_v51 = vpop.eup %816  ;;  %v554_v53 = vadd.f32 %v815_v49, %v550_v50 }
 0x284   : > { %v556_v54 = vmul.f32 0.6931472, %v817_v51 }
 0x285   : > { %818 = vlog2.f32 %v554_v53 }
 0x286   : > { %v559_v56 = vadd.f32 %v556_v54, %v523_v31 }
 0x288   : > { %v567_v59 = vsub.f32 %v565_v57, %v559_v56 }
 0x28a   : > { %v594_v60 = vpop.permute.xlu2 %593  ;;  %v569_v4 = vsub.f32 0.0, %v567_v59 }
 0x28b   : > { %v819_v61 = vpop.eup %818  ;;  %vm598_vm4 = vcmp.gt.f32.partialorder %v513_v29, %v594_v60 }
 0x28c   : > { %v558_v0 = vmul.f32 0.6931472, %v819_v61  ;;  %v775_v1 = vsel %vm598_vm4, 1.0, %v830_v62  ;;  %v573_v10 = vmul.f32 %v571_v6, %v569_v4 }
 0x28d   : > { %v801_v2 = vpack.i.bf16 %v775_v1, %v774_v63 }
 0x28e   : > { %v560_v3 = vadd.f32 %v558_v0, %v524_v33  ;;  %v576_v12 = vsel %vm575_vm6, %v573_v10, 0.0 }
 0x28f   : > { %802 = vrot.lane.b32.xlu1 %v801_v2, %s828_s26 }
 0x290   : > { %v568_v7 = vsub.f32 %v566_v5, %v560_v3 }
 0x292   : > { %v570_v9 = vsub.f32 0.0, %v568_v7 }
 0x294   : > { %v574_v11 = vmul.f32 %v572_v8, %v570_v9 }
 0x296   : > { %v577_v13 = vsel %vm575_vm6, %v574_v11, 0.0 }
 0x297   : > { %v578_v14 = vadd.f32 %v577_v13, %v576_v12 }
 0x299   : > { %579 = vadd.xlane.f32.xlu0 %v578_v14 }
 0x301   : > { %v803_v15 = vpop.permute.xlu1 %802 }
 0x302   : > { %v805_v16 = vunpack.i.h.bf16 %v803_v15  ;;  %v804_v17 = vunpack.i.l.bf16 %v803_v15 }
 0x304   : > { %612 = vst.msk [vmem:[%s382_s19 + $0x8] sm:$0xff] %vm575_vm6, %v805_v16 }
 0x305   : > { %611 = vst.msk [vmem:[%s382_s19] sm:$0xff] %vm575_vm6, %v804_v17 }
 0x30c   : > { %v580_v18 = vpop.xlane.xlu0 %579 }
 0x30d   : > { %v581_v19 = vrot.slane %v580_v18, 4 }
 0x30f   : > { %v582_v20 = vadd.f32 %v581_v19, %v580_v18 }
 0x311   : > { %v583_v21 = vrot.slane %v582_v20, 2 }
 0x313   : > { %v584_v22 = vadd.f32 %v583_v21, %v582_v20 }
 0x315   : > { %v585_v23 = vrot.slane %v584_v22, 1 }
 0x317   : > { %v586_v24 = vadd.f32 %v585_v23, %v584_v22 }
 0x319   : > { %788 = vpush %v586_v24 }
 0x34a   : > { %s789_s23 = spop %788 }
 0x34b   : > { %v588_v25 = vstv %s789_s23 }
 0x34c   : > { %590 = vst.msk [vmem:[%s377_s22] sm:$0x1] %vm589_vm7, %v588_v25 }
 0x34d PF: > { %s19_s27 = sadd.s32 1, %s826_s27  }
 0x34e   : > { %p16_p4 = scmp.ge.s32.totalorder %s19_s27, 5  }
 0x350   :  { %18 = sbr.rel (!%p16_p4) target bundleno = 1 (0x1), region = 109 }

// kernel: ensemble_forward.3
= control target key start
LH: loop header
LB: loop body
LE: loop exit
PB: predicated region body
PF: predicated region fallthrough
CT: control target
= control target key end

     0   :  { %s1984_s15 = smov 0   ;;  %s2390_s0 = inlined_call_operand.vmem [shape: f32[3,8,2,32], index: 0, kind: input, shape index: {}]   ;;  %s2391_s1 = inlined_call_operand.vmem [shape: bf16[3,32,256], index: 1, kind: input, shape index: {}]   ;;  %s2392_s2 = inlined_call_operand.vmem [shape: bf16[3,64,256], index: 2, kind: input, shape index: {}]   ;;  %s2393_s3 = inlined_call_operand.vmem [shape: f32[3,1,256], index: 3, kind: input, shape index: {}]   ;;  %s2394_s4 = inlined_call_operand.vmem [shape: f32[3,8,2,64], index: 4, kind: output, shape index: {}]  }
   0x1 LB: > { %s1697_s16 = sadd.s32 4294967295, %s1954_s15   ;;  %p1701_p0 = scmp.ge.s32.totalorder %s1954_s15, 1  ;;  %s1954_s15 = sphi %s1984_s15, %s14_s15  }
   0x2   : > { %p191_p1 = scmp.lt.s32.totalorder %s1954_s15, 4 }
   0x4   : > { %p192_p2 = pnand %p1701_p0, %p191_p1 }
   0x5   : > { %p231_p3 = scmp.lt.s32.totalorder (!%p192_p2), %s1697_s16, 2  ;;  %s1957_s7 = smov (!%p192_p2), 64  }
   0x6   : > { %195 = sbr.rel (%p192_p2) target bundleno = 5126 (0x1406), region = 36  ;;  %s1958_s8 = smov (!%p192_p2), 32  }
   0xb   : > { %s2396_s16 = smov (!%p231_p3, %s1697_s16), 2  ;;  %v1956_v44 = vmov 0   ;;  %vm322_vm0 = vcmask 261120   ;;  %vm360_vm1 = vcmask 1041408   ;;  %vm362_vm2 = vcmask 1043458  }
   0xc   : > { %s1795_s17 = sshll.u32 %s2396_s16, 6  ;;  %s1794_s18 = sshll.u32 %s2396_s16, 5  ;;  %vm365_vm3 = vcmask 1045508   ;;  %vm368_vm4 = vcmask 1045504   ;;  %vm442_vm13 = vcmask 523264  }
   0xd   : > { %s1999_s21 = scalar_lea.vmem %s2392_s2, %s1795_s17  ;;  %s240_s24 = scalar_lea.vmem %s2391_s1, %s1794_s18 }
   0xe   : > { %v1755_v0 = vld [vmem:[%s1999_s21 + $0x30] sm:$0xf]  ;;  %v1808_v1 = vld [vmem:[%s1999_s21 + $0x34] sm:$0xf0]  ;;  %v1799_v5 = vld [vmem:[%s240_s24 + $0x14] sm:$0xf] }
   0xf   : > { %v1721_v2 = vld [vmem:[%s240_s24 + $0x10] sm:$0xf]  ;;  %v2006_v3 = vor.u32 %v1808_v1, %v1755_v0  ;;  %v1800_v4 = vld [vmem:[%s240_s24 + $0x14] sm:$0xf0]  ;;  %v1723_v6 = vld [vmem:[%s240_s24 + $0x18] sm:$0xf0] }
  0x10   : > { %v1722_v7 = vor.u32 %v1800_v4, %v1721_v2  ;;  %v1726_v8 = vor.u32 %v1799_v5, %v1723_v6  ;;  %v1747_v9 = vld [vmem:[%s1999_s21 + $0x20] sm:$0xf]  ;;  %v1806_v10 = vld [vmem:[%s1999_s21 + $0x24] sm:$0xf0]  ;;  %v1807_v11 = vld [vmem:[%s1999_s21 + $0x34] sm:$0xf] }
  0x11   : > { %450 = vmatpush.bf16.msra.mxu2 %v2006_v3  ;;  %v2012_v12 = vor.u32 %v1806_v10, %v1747_v9  ;;  %v1757_v13 = vld [vmem:[%s1999_s21 + $0x38] sm:$0xf0]  ;;  %v1713_v14 = vld [vmem:[%s240_s24] sm:$0xf]  ;;  %v1798_v15 = vld [vmem:[%s240_s24 + $0x4] sm:$0xf0] }
  0x12   : > { %332 = vmatpush.bf16.msra.mxu0 %v1722_v7  ;;  %346 = vmatpush.bf16.msra.mxu1 %v1726_v8  ;;  %v2015_v16 = vor.u32 %v1807_v11, %v1757_v13  ;;  %v1714_v17 = vor.u32 %v1798_v15, %v1713_v14  ;;  %v1797_v18 = vld [vmem:[%s240_s24 + $0x4] sm:$0xf]  ;;  %v1715_v19 = vld [vmem:[%s240_s24 + $0x8] sm:$0xf0]  ;;  %s1793_s25 = sshll.u32 %s2396_s16, 4  ;;  %s1708_s29 = sshll.u32 %s2396_s16, 1 }
  0x13   : > { %v1718_v20 = vor.u32 %v1797_v18, %v1715_v19  ;;  %s2023_s28 = scalar_lea.vmem %s2390_s0, %s1793_s25  ;;  %v1739_v21 = vld [vmem:[%s1999_s21 + $0x10] sm:$0xf]  ;;  %v1804_v22 = vld [vmem:[%s1999_s21 + $0x14] sm:$0xf0]  ;;  %v1805_v28 = vld [vmem:[%s1999_s21 + $0x24] sm:$0xf]  ;;  %s249_s6 = scalar_lea.vmem %s2393_s3, %s1708_s29 }
  0x14   : > { %463 = vmatpush.bf16.msra.mxu3 %v2015_v16  ;;  %v256_v23 = vld [vmem:[%s2023_s28] sm:$0x3]  ;;  %v257_v24 = vld [vmem:[%s2023_s28 + $0x2] sm:$0x3]  ;;  %v258_v25 = vld [vmem:[%s2023_s28 + $0x4] sm:$0x3]  ;;  %v2033_v27 = vor.u32 %v1804_v22, %v1739_v21  ;;  %s2355_s11 = scalar_lea.vmem %s2394_s4, %s1793_s25 }
  0x15   : > { %451 = vmatpush.bf16.msra.mxu2 %v2012_v12  ;;  %v259_v26 = vld [vmem:[%s2023_s28 + $0x6] sm:$0x3]  ;;  %v260_v29 = vld [vmem:[%s2023_s28 + $0x8] sm:$0x3]  ;;  %v261_v30 = vld [vmem:[%s2023_s28 + $0xa] sm:$0x3] }
  0x16   : > { %333 = vmatpush.bf16.msra.mxu0 %v1714_v17  ;;  %347 = vmatpush.bf16.msra.mxu1 %v1718_v20  ;;  %272 = vst [vmem:[#allocation1] ss:$4 sm:$0xff] %v256_v23  ;;  %v1749_v31 = vld [vmem:[%s1999_s21 + $0x28] sm:$0xf0]  ;;  %v1731_v32 = vld [vmem:[%s1999_s21] sm:$0xf] }
  0x17   : > { %274 = vst [vmem:[#allocation1 + $0x1] ss:$4 sm:$0xff] %v257_v24  ;;  %v2042_v33 = vor.u32 %v1805_v28, %v1749_v31  ;;  %v1802_v34 = vld [vmem:[%s1999_s21 + $0x4] sm:$0xf0]  ;;  %v1803_v35 = vld [vmem:[%s1999_s21 + $0x14] sm:$0xf] }
  0x18   : > { %276 = vst [vmem:[#allocation1 + $0x2] ss:$4 sm:$0xff] %v258_v25  ;;  %v262_v36 = vld [vmem:[%s2023_s28 + $0xc] sm:$0x3]  ;;  %v2048_v37 = vor.u32 %v1802_v34, %v1731_v32  ;;  %v1741_v38 = vld [vmem:[%s1999_s21 + $0x18] sm:$0xf0] }
  0x19   : > { %278 = vst [vmem:[#allocation1 + $0x3] ss:$4 sm:$0xff] %v259_v26  ;;  %452 = vmatpush.bf16.msra.mxu2 %v2033_v27  ;;  %v263_v39 = vld [vmem:[%s2023_s28 + $0xe] sm:$0x3]  ;;  %464 = vmatpush.bf16.msra.mxu3 %v2042_v33  ;;  %v2053_v40 = vor.u32 %v1803_v35, %v1741_v38  ;;  %v1801_v41 = vld [vmem:[%s1999_s21 + $0x4] sm:$0xf] }
  0x1a   : > { %589 = vmatpush.bf16.msrb.mxu0 %v2006_v3  ;;  %602 = vmatpush.bf16.msrb.mxu1 %v2015_v16  ;;  %280 = vst [vmem:[#allocation1 + $0x20] ss:$4 sm:$0xff] %v260_v29  ;;  %v1733_v42 = vld [vmem:[%s1999_s21 + $0x8] sm:$0xf0]  ;;  %v296_v48 = vld [vmem:[%s249_s6] sm:$0x3] }
  0x1b   : > { %282 = vst [vmem:[#allocation1 + $0x21] ss:$4 sm:$0xff] %v261_v30  ;;  %v2061_v43 = vor.u32 %v1801_v41, %v1733_v42  ;;  %v298_v49 = vperm.slane %v296_v48, 0  ;;  %v299_v50 = vperm.slane %v296_v48, 1 }
  0x1c   : > { %284 = vst [vmem:[#allocation1 + $0x22] ss:$4 sm:$0xff] %v262_v36 }
  0x1d   : > { %286 = vst [vmem:[#allocation1 + $0x23] ss:$4 sm:$0xff] %v263_v39  ;;  %453 = vmatpush.bf16.msra.mxu2 %v2048_v37  ;;  %465 = vmatpush.bf16.msra.mxu3 %v2053_v40 }
  0x1e   : > { %590 = vmatpush.bf16.msrb.mxu0 %v2012_v12  ;;  %603 = vmatpush.bf16.msrb.mxu1 %v2042_v33 }
  0x20   : > { %454 = vmatmul.bf16.vlgmr.msra.gmra.mxu2 %v1956_v44  ;;  %v287_v45 = vld.sshfl [vmem:[#allocation1] sm:$0xff pattern:$0x73625140] }
  0x21   : > { %729 = vmatpush.bf16.msrb.mxu2 %v2006_v3  ;;  %466 = vmatpush.bf16.msra.mxu3 %v2061_v43 }
  0x22   : > { %591 = vmatpush.bf16.msrb.mxu0 %v2033_v27  ;;  %604 = vmatpush.bf16.msrb.mxu1 %v2053_v40 }
  0x24   : > { %v288_v46 = vld.sshfl [vmem:[#allocation1 + $0x20] sm:$0xff pattern:$0x73625140]  ;;  %467 = vmatmul.bf16.vlgmr.msra.gmra.mxu3 %v1956_v44 }
  0x25   : > { %730 = vmatpush.bf16.msrb.mxu2 %v2012_v12  ;;  %742 = vmatpush.bf16.msrb.mxu3 %v2015_v16  ;;  %v291_v47 = vpack.c.bf16 %v288_v46, %v287_v45 }
  0x26   : > { %592 = vmatpush.bf16.msrb.mxu0 %v2048_v37  ;;  %605 = vmatpush.bf16.msrb.mxu1 %v2061_v43 }
  0x27   : > { %1727 = vmatmul.msk.bf16.vlgmr.msra.gmra.mxu0 %vm322_vm0, %v291_v47  ;;  %1728 = vmatmul.msk.bf16.vlgmr.msra.gmra.mxu1 %vm322_vm0, %v291_v47 }
  0x29   : > { %731 = vmatpush.bf16.msrb.mxu2 %v2033_v27  ;;  %743 = vmatpush.bf16.msrb.mxu3 %v2042_v33 }
  0x2a   : > { %869 = vmatpush.bf16.msra.mxu0 %v2006_v3  ;;  %882 = vmatpush.bf16.msra.mxu1 %v2015_v16 }
  0x2d   : > { %732 = vmatpush.bf16.msrb.mxu2 %v2048_v37  ;;  %744 = vmatpush.bf16.msrb.mxu3 %v2053_v40 }
  0x2e   : > { %870 = vmatpush.bf16.msra.mxu0 %v2012_v12  ;;  %883 = vmatpush.bf16.msra.mxu1 %v2042_v33 }
  0x31   : > { %1009 = vmatpush.bf16.msra.mxu2 %v2006_v3  ;;  %745 = vmatpush.bf16.msrb.mxu3 %v2061_v43 }
  0x32   : > { %871 = vmatpush.bf16.msra.mxu0 %v2033_v27  ;;  %884 = vmatpush.bf16.msra.mxu1 %v2053_v40 }
  0x35   : > { %1010 = vmatpush.bf16.msra.mxu2 %v2012_v12  ;;  %1022 = vmatpush.bf16.msra.mxu3 %v2015_v16 }
  0x36   : > { %872 = vmatpush.bf16.msra.mxu0 %v2048_v37  ;;  %885 = vmatpush.bf16.msra.mxu1 %v2061_v43 }
  0x39   : > { %1011 = vmatpush.bf16.msra.mxu2 %v2033_v27  ;;  %1023 = vmatpush.bf16.msra.mxu3 %v2042_v33 }
  0x3d   : > { %1012 = vmatpush.bf16.msra.mxu2 %v2048_v37  ;;  %1024 = vmatpush.bf16.msra.mxu3 %v2053_v40 }
  0x41   : > { %1025 = vmatpush.bf16.msra.mxu3 %v2061_v43 }
  0xa3   : > { %v455_v51 = vpop.f32.mrf.mxu2 }
  0xa4   : > { %v335_v52 = vpop.f32.mrf.mxu0  ;;  %v349_v53 = vpop.f32.mrf.mxu1 }
  0xa5   : > { %v336_v54 = vadd.f32 %v335_v52, %v298_v49  ;;  %v350_v55 = vadd.f32 %v349_v53, %v299_v50 }
  0xa7   : > { %v358_v56 = vrot.slane %v350_v55, 6  ;;  %v468_v57 = vpop.f32.mrf.mxu3 }
  0xa9   : > { %v361_v58 = vsel %vm360_vm1, %v336_v54, %v358_v56  ;;  %v363_v59 = vsel %vm362_vm2, %v336_v54, %v358_v56  ;;  %v366_v60 = vsel %vm365_vm3, %v336_v54, %v358_v56  ;;  %v369_v61 = vsel %vm368_vm4, %v358_v56, %v336_v54 }
  0xaa   : > { %v364_v62 = vrot.slane %v363_v59, 2  ;;  %v367_v63 = vrot.slane %v366_v60, 4  ;;  %v370_v0 = vrot.slane %v369_v61, 6  ;;  %386 = vst [vmem:[#allocation2] sm:$0xf] %v361_v58 }
  0xab   : > { %v457_v1 = vpop.f32.mrf.mxu2 }
  0xac   : > { %387 = vst [vmem:[#allocation2 + $0x4] sm:$0xf] %v364_v62  ;;  %v337_v2 = vpop.f32.mrf.mxu0  ;;  %v351_v4 = vpop.f32.mrf.mxu1 }
  0xad   : > { %388 = vst [vmem:[#allocation2 + $0x8] sm:$0xf] %v367_v63  ;;  %v352_v5 = vadd.f32 %v351_v4, %v299_v50  ;;  %v338_v6 = vadd.f32 %v337_v2, %v298_v49 }
  0xae   : > { %389 = vst [vmem:[#allocation2 + $0xc] sm:$0xf] %v370_v0 }
  0xaf   : > { %v359_v7 = vrot.slane %v352_v5, 6  ;;  %v470_v8 = vpop.f32.mrf.mxu3 }
  0xb1   : > { %v371_v9 = vsel %vm360_vm1, %v338_v6, %v359_v7  ;;  %v372_v10 = vsel %vm362_vm2, %v338_v6, %v359_v7  ;;  %v374_v11 = vsel %vm365_vm3, %v338_v6, %v359_v7  ;;  %v376_v13 = vsel %vm368_vm4, %v359_v7, %v338_v6  ;;  %v472_v14 = vld [vmem:[#allocation2] sm:$0xf] }
  0xb2   : > { %v373_v15 = vrot.slane %v372_v10, 2  ;;  %v375_v17 = vrot.slane %v374_v11, 4  ;;  %v377_v18 = vrot.slane %v376_v13, 6  ;;  %390 = vst [vmem:[#allocation2 + $0x10] sm:$0xf] %v371_v9  ;;  %v473_v19 = vadd.f32 %v472_v14, %v455_v51 }
  0xb4   : > { %391 = vst [vmem:[#allocation2 + $0x14] sm:$0xf] %v373_v15  ;;  %1820 = vtanh.f32 %v473_v19  ;;  %v1761_v25 = vmul.f32 -1.442695, %v473_v19 }
  0xb5   : > { %392 = vst [vmem:[#allocation2 + $0x18] sm:$0xf] %v375_v17 }
  0xb6   : > { %393 = vst [vmem:[#allocation2 + $0x1c] sm:$0xf] %v377_v18 }
  0xba   : > { %v1821_v20 = vpop.eup %1820 }
  0xbb   : > { %502 = vrot.lane.b32.xlu0 %v1821_v20, %s1957_s7 }
  0xbc   : > { %v615_v19 = vld [vmem:[#allocation2 + $0x18] sm:$0xf] }
  0xbd   : > { %v475_v21 = vld [vmem:[#allocation2 + $0x1c] sm:$0xf]  ;;  %v617_v20 = vrot.slane %v615_v19, 2 }
  0xbe   : > { %v477_v22 = vrot.slane %v475_v21, 2 }
  0xc0   : > { %v479_v23 = vadd.f32 %v477_v22, %v468_v57  ;;  %v612_v22 = vld [vmem:[#allocation2 + $0x4] sm:$0xf] }
  0xc2   : > { %1822 = vtanh.f32 %v479_v23  ;;  %v1762_v29 = vmul.f32 -1.442695, %v479_v23 }
  0xc3   : > { %1824 = vpow2.f32 %v1761_v25 }
  0xc8   : > { %v1823_v24 = vpop.eup %1822 }
  0xc9   : > { %539 = vrot.lane.b32.xlu0 %v1823_v24, %s1957_s7  ;;  %v1825_v26 = vpop.eup %1824 }
  0xca   : > { %v483_v28 = vadd.f32 1.0, %v1825_v26 }
  0xcc   : > { %1826 = vrcp.f32 %v483_v28  ;;  %v495_v41 = vand.u32 2147483648, %v483_v28  ;;  %vm489_vm6 = vweird.f32 %v483_v28  ;;  %v493_v42 = vand.u32 2147483647, %v483_v28 }
  0xcd   : > { %1828 = vpow2.f32 %v1762_v29 }
  0xce   : > { %v496_v46 = vor.u32 1.1754944e-38, %v495_v41  ;;  %vm494_vm8 = vcmp.eq.f32.partialorder %v493_v42, 8.507059e+37 }
  0xd2   : > { %v1827_v30 = vpop.eup %1826 }
  0xd3   : > { %v1829_v31 = vpop.eup %1828  ;;  %v485_v32 = vmul.f32 %v1827_v30, %v483_v28  ;;  %vm490_vm5 = vweird.f32 %v1827_v30 }
  0xd4   : > { %v520_v34 = vadd.f32 1.0, %v1829_v31  ;;  %vm491_vm7 = vmor %vm489_vm6, %vm490_vm5 }
  0xd5   : > { %v486_v35 = vsub.f32 1.0, %v485_v32 }
  0xd6   : > { %1830 = vrcp.f32 %v520_v34  ;;  %v532_v53 = vand.u32 2147483648, %v520_v34  ;;  %vm526_vm10 = vweird.f32 %v520_v34  ;;  %v530_v54 = vand.u32 2147483647, %v520_v34 }
  0xd7   : > { %v487_v36 = vmul.f32 %v1827_v30, %v486_v35 }
  0xd8   : > { %v533_v56 = vor.u32 1.1754944e-38, %v532_v53  ;;  %vm531_vm12 = vcmp.eq.f32.partialorder %v530_v54, 8.507059e+37 }
  0xd9   : > { %v488_v39 = vadd.f32 %v1827_v30, %v487_v36 }
  0xdb   : > { %v492_v45 = vsel %vm491_vm7, %v1827_v30, %v488_v39 }
  0xdc   : > { %v1831_v38 = vpop.eup %1830  ;;  %v497_v49 = vsel %vm494_vm8, %v496_v46, %v492_v45 }
  0xdd   : > { %v522_v44 = vmul.f32 %v1831_v38, %v520_v34  ;;  %vm527_vm9 = vweird.f32 %v1831_v38  ;;  %v500_v60 = vmul.f32 0.0, %v497_v49 }
  0xde   : > { %vm528_vm11 = vmor %vm526_vm10, %vm527_vm9 }
  0xdf   : > { %v523_v47 = vsub.f32 1.0, %v522_v44 }
  0xe1   : > { %v524_v51 = vmul.f32 %v1831_v38, %v523_v47 }
  0xe3   : > { %v525_v52 = vadd.f32 %v1831_v38, %v524_v51 }
  0xe5   : > { %v529_v55 = vsel %vm528_vm11, %v1831_v38, %v525_v52 }
  0xe6   : > { %v534_v57 = vsel %vm531_vm12, %v533_v56, %v529_v55 }
  0xe7   : > { %v537_v0 = vmul.f32 0.0, %v534_v57 }
 0x12d   : > { %v503_v48 = vpop.permute.xlu0 %502 }
 0x12e   : > { %v505_v50 = vmul.f32 %v503_v48, %v497_v49 }
 0x130   : > { %507 = vrot.lane.b32.xlu1 %v505_v50, %s1958_s8 }
 0x13b   : > { %v540_v58 = vpop.permute.xlu0 %539 }
 0x13c   : > { %v542_v59 = vmul.f32 %v540_v58, %v534_v57 }
 0x13e   : > { %544 = vrot.lane.b32.xlu1 %v542_v59, %s1958_s8 }
 0x1a2   : > { %v508_v61 = vpop.permute.xlu1 %507 }
 0x1a3   : > { %v2110_v62 = vadd.f32 %v508_v61, %v500_v60 }
 0x1a5   : > { %1832 = vtanh.f32 %v2110_v62 }
 0x1ab   : > { %v1833_v63 = vpop.eup %1832 }
 0x1ac   : > { %513 = vrot.lane.b32.xlu2 %v1833_v63, %s1957_s7 }
 0x1b0   : > { %v545_v1 = vpop.permute.xlu1 %544 }
 0x1b1   : > { %v2114_v2 = vadd.f32 %v545_v1, %v537_v0 }
 0x1b3   : > { %1834 = vtanh.f32 %v2114_v2 }
 0x1b9   : > { %v1835_v4 = vpop.eup %1834 }
 0x1ba   : > { %550 = vrot.lane.b32.xlu2 %v1835_v4, %s1957_s7 }
 0x206   : > { %v514_v5 = vpop.permute.xlu2 %513 }
 0x207   : > { %v516_v6 = vmul.f32 %v514_v5, %v497_v49 }
 0x209   : > { %555 = vst [vmem:[#allocation1] ss:$4 sm:$0xff] %v516_v6 }
 0x210   : > { %v2118_v9 = vld.sshfl [vmem:[#allocation1] sm:$0xff pattern:$0x73625140] }
 0x214   : > { %v551_v7 = vpop.permute.xlu2 %550 }
 0x215   : > { %v553_v8 = vmul.f32 %v551_v7, %v534_v57 }
 0x217   : > { %563 = vst [vmem:[#allocation1] ss:$4 sm:$0xff] %v553_v8 }
 0x21e   : > { %v2120_v10 = vld.sshfl [vmem:[#allocation1] sm:$0xff pattern:$0x73625140] }
 0x21f   : > { %570 = vst [vmem:[#allocation1] ss:$4 sm:$0xff] %v516_v6 }
 0x226   : > { %v571_v11 = vld.sshfl [vmem:[#allocation1] sm:$0xff pattern:$0x73625140] }
 0x227   : > { %575 = vst [vmem:[#allocation1] ss:$4 sm:$0xff] %v553_v8  ;;  %572 = vrot.lane.b32.xlu0 %v571_v11, %s1958_s8 }
 0x22e   : > { %v576_v13 = vld.sshfl [vmem:[#allocation1] sm:$0xff pattern:$0x73625140] }
 0x22f   : > { %577 = vrot.lane.b32.xlu1 %v576_v13, %s1957_s7 }
 0x299   : > { %v573_v14 = vpop.permute.xlu0 %572 }
 0x2a1   : > { %v578_v15 = vpop.permute.xlu1 %577 }
 0x2a2   : > { %v580_v17 = vsel %vm322_vm0, %v573_v14, %v578_v15 }
 0x2a3   : > { %v581_v18 = vpack.c.bf16 %v580_v17, %v580_v17 }
 0x2a5   : > { %1763 = vmatmul.msk.bf16.vlgmr.msrb.gmra.mxu0 %vm442_vm13, %v581_v18  ;;  %1764 = vmatmul.msk.bf16.vlgmr.msrb.gmra.mxu1 %vm442_vm13, %v581_v18 }
 0x2a6   : > { %1147 = vmatpush.bf16.msrb.mxu0 %v2006_v3  ;;  %1160 = vmatpush.bf16.msrb.mxu1 %v2015_v16 }
 0x2aa   : > { %1148 = vmatpush.bf16.msrb.mxu0 %v2012_v12  ;;  %1161 = vmatpush.bf16.msrb.mxu1 %v2042_v33 }
 0x2ae   : > { %1149 = vmatpush.bf16.msrb.mxu0 %v2033_v27  ;;  %1162 = vmatpush.bf16.msrb.mxu1 %v2053_v40 }
 0x2b2   : > { %1150 = vmatpush.bf16.msrb.mxu0 %v2048_v37  ;;  %1163 = vmatpush.bf16.msrb.mxu1 %v2061_v43 }
 0x322   : > { %v594_v21 = vpop.f32.mrf.mxu0  ;;  %v607_v23 = vpop.f32.mrf.mxu1 }
 0x323   : > { %v613_v24 = vadd.f32 %v612_v22, %v594_v21  ;;  %v619_v25 = vadd.f32 %v617_v20, %v607_v23 }
 0x325   : > { %1836 = vtanh.f32 %v613_v24  ;;  %v1765_v31 = vmul.f32 -1.442695, %v613_v24  ;;  %v1766_v36 = vmul.f32 -1.442695, %v619_v25 }
 0x326   : > { %1838 = vtanh.f32 %v619_v25 }
 0x327   : > { %1840 = vpow2.f32 %v1765_v31 }
 0x32a   : > { %v596_v26 = vpop.f32.mrf.mxu0  ;;  %v609_v28 = vpop.f32.mrf.mxu1 }
 0x32b   : > { %v1837_v29 = vpop.eup %1836  ;;  %v755_v26 = vld [vmem:[#allocation2 + $0x14] sm:$0xf] }
 0x32c   : > { %v1839_v30 = vpop.eup %1838  ;;  %642 = vrot.lane.b32.xlu2 %v1837_v29, %s1957_s7  ;;  %v757_v28 = vrot.slane %v755_v26, 2 }
 0x32d   : > { %679 = vrot.lane.b32.xlu0 %v1839_v30, %s1957_s7  ;;  %v1841_v32 = vpop.eup %1840  ;;  %v752_v30 = vld [vmem:[#allocation2 + $0x8] sm:$0xf] }
 0x32e   : > { %v623_v34 = vadd.f32 1.0, %v1841_v32 }
 0x330   : > { %1842 = vrcp.f32 %v623_v34  ;;  %v635_v46 = vand.u32 2147483648, %v623_v34  ;;  %vm629_vm15 = vweird.f32 %v623_v34  ;;  %v633_v47 = vand.u32 2147483647, %v623_v34 }
 0x331   : > { %1844 = vpow2.f32 %v1766_v36 }
 0x332   : > { %v636_v49 = vor.u32 1.1754944e-38, %v635_v46  ;;  %vm634_vm2 = vcmp.eq.f32.partialorder %v633_v47, 8.507059e+37 }
 0x336   : > { %v1843_v35 = vpop.eup %1842 }
 0x337   : > { %v625_v38 = vmul.f32 %v1843_v35, %v623_v34  ;;  %v1845_v42 = vpop.eup %1844  ;;  %vm630_vm14 = vweird.f32 %v1843_v35 }
 0x338   : > { %v660_v44 = vadd.f32 1.0, %v1845_v42  ;;  %vm631_vm1 = vmor %vm629_vm15, %vm630_vm14 }
 0x339   : > { %v626_v39 = vsub.f32 1.0, %v625_v38 }
 0x33a   : > { %1846 = vrcp.f32 %v660_v44  ;;  %v672_v58 = vand.u32 2147483648, %v660_v44  ;;  %vm666_vm4 = vweird.f32 %v660_v44  ;;  %v670_v59 = vand.u32 2147483647, %v660_v44 }
 0x33b   : > { %v627_v41 = vmul.f32 %v1843_v35, %v626_v39 }
 0x33c   : > { %v673_v61 = vor.u32 1.1754944e-38, %v672_v58  ;;  %vm671_vm6 = vcmp.eq.f32.partialorder %v670_v59, 8.507059e+37 }
 0x33d   : > { %v628_v45 = vadd.f32 %v1843_v35, %v627_v41 }
 0x33f   : > { %v632_v48 = vsel %vm631_vm1, %v1843_v35, %v628_v45 }
 0x340   : > { %v637_v51 = vsel %vm634_vm2, %v636_v49, %v632_v48  ;;  %v1847_v53 = vpop.eup %1846 }
 0x341   : > { %v662_v54 = vmul.f32 %v1847_v53, %v660_v44  ;;  %vm667_vm3 = vweird.f32 %v1847_v53  ;;  %v640_v4 = vmul.f32 %v637_v51, %v2110_v62 }
 0x342   : > { %vm668_vm5 = vmor %vm666_vm4, %vm667_vm3 }
 0x343   : > { %v663_v55 = vsub.f32 1.0, %v662_v54 }
 0x345   : > { %v664_v56 = vmul.f32 %v1847_v53, %v663_v55 }
 0x347   : > { %v665_v57 = vadd.f32 %v1847_v53, %v664_v56 }
 0x349   : > { %v669_v60 = vsel %vm668_vm5, %v1847_v53, %v665_v57 }
 0x34a   : > { %v674_v0 = vsel %vm671_vm6, %v673_v61, %v669_v60 }
 0x34b   : > { %v677_v5 = vmul.f32 %v674_v0, %v2114_v2 }
 0x386   : > { %v643_v50 = vpop.permute.xlu2 %642 }
 0x387   : > { %v645_v52 = vmul.f32 %v643_v50, %v637_v51 }
 0x389   : > { %647 = vrot.lane.b32.xlu1 %v645_v52, %s1958_s8 }
 0x39f   : > { %v680_v63 = vpop.permute.xlu0 %679 }
 0x3a0   : > { %v682_v1 = vmul.f32 %v680_v63, %v674_v0 }
 0x3a2   : > { %684 = vrot.lane.b32.xlu2 %v682_v1, %s1958_s8 }
 0x3fb   : > { %v648_v6 = vpop.permute.xlu1 %647 }
 0x3fc   : > { %v685_v7 = vpop.permute.xlu2 %684  ;;  %v2141_v8 = vadd.f32 %v648_v6, %v640_v4 }
 0x3fd   : > { %v2143_v11 = vadd.f32 %v685_v7, %v677_v5 }
 0x3fe   : > { %1848 = vtanh.f32 %v2141_v8 }
 0x3ff   : > { %1850 = vtanh.f32 %v2143_v11 }
 0x404   : > { %v1849_v13 = vpop.eup %1848 }
 0x405   : > { %v1851_v14 = vpop.eup %1850  ;;  %653 = vrot.lane.b32.xlu0 %v1849_v13, %s1957_s7 }
 0x406   : > { %690 = vrot.lane.b32.xlu1 %v1851_v14, %s1957_s7 }
 0x477   : > { %v654_v15 = vpop.permute.xlu0 %653 }
 0x478   : > { %v656_v62 = vmul.f32 %v654_v15, %v637_v51  ;;  %v691_v2 = vpop.permute.xlu1 %690 }
 0x479   : > { %v693_v17 = vmul.f32 %v691_v2, %v674_v0 }
 0x47a   : > { %695 = vst [vmem:[#allocation1] ss:$4 sm:$0xff] %v656_v62 }
 0x481   : > { %v2149_v18 = vld.sshfl [vmem:[#allocation1] sm:$0xff pattern:$0x73625140] }
 0x482   : > { %703 = vst [vmem:[#allocation1] ss:$4 sm:$0xff] %v693_v17 }
 0x489   : > { %v2151_v19 = vld.sshfl [vmem:[#allocation1] sm:$0xff pattern:$0x73625140] }
 0x48a   : > { %710 = vst [vmem:[#allocation1] ss:$4 sm:$0xff] %v656_v62 }
 0x491   : > { %v711_v20 = vld.sshfl [vmem:[#allocation1] sm:$0xff pattern:$0x73625140] }
 0x492   : > { %715 = vst [vmem:[#allocation1] ss:$4 sm:$0xff] %v693_v17  ;;  %712 = vrot.lane.b32.xlu2 %v711_v20, %s1958_s8 }
 0x499   : > { %v716_v21 = vld.sshfl [vmem:[#allocation1] sm:$0xff pattern:$0x73625140] }
 0x49a   : > { %717 = vrot.lane.b32.xlu0 %v716_v21, %s1957_s7 }
 0x4ec   : > { %v713_v22 = vpop.permute.xlu2 %712 }
 0x50c   : > { %v718_v23 = vpop.permute.xlu0 %717 }
 0x50d   : > { %v720_v24 = vsel %vm322_vm0, %v713_v22, %v718_v23 }
 0x50e   : > { %v721_v25 = vpack.c.bf16 %v720_v24, %v720_v24 }
 0x510   : > { %1767 = vmatmul.msk.bf16.vlgmr.msrb.gmra.mxu2 %vm442_vm13, %v721_v25  ;;  %1768 = vmatmul.msk.bf16.vlgmr.msrb.gmra.mxu3 %vm442_vm13, %v721_v25 }
 0x511   : > { %1285 = vmatpush.bf16.msrb.mxu2 %v2006_v3  ;;  %1298 = vmatpush.bf16.msrb.mxu3 %v2015_v16 }
 0x515   : > { %1286 = vmatpush.bf16.msrb.mxu2 %v2012_v12  ;;  %1299 = vmatpush.bf16.msrb.mxu3 %v2042_v33 }
 0x519   : > { %1287 = vmatpush.bf16.msrb.mxu2 %v2033_v27  ;;  %1300 = vmatpush.bf16.msrb.mxu3 %v2053_v40 }
 0x51d   : > { %1288 = vmatpush.bf16.msrb.mxu2 %v2048_v37  ;;  %1301 = vmatpush.bf16.msrb.mxu3 %v2061_v43 }
 0x593   : > { %v734_v29 = vpop.f32.mrf.mxu2  ;;  %v747_v31 = vpop.f32.mrf.mxu3 }
 0x594   : > { %v753_v32 = vadd.f32 %v752_v30, %v734_v29  ;;  %v759_v34 = vadd.f32 %v757_v28, %v747_v31 }
 0x596   : > { %1852 = vtanh.f32 %v753_v32  ;;  %v1770_v41 = vmul.f32 -1.442695, %v759_v34  ;;  %v1769_v46 = vmul.f32 -1.442695, %v753_v32 }
 0x597   : > { %1854 = vtanh.f32 %v759_v34 }
 0x598   : > { %1856 = vpow2.f32 %v1770_v41 }
 0x59b   : > { %v736_v35 = vpop.f32.mrf.mxu2  ;;  %v749_v36 = vpop.f32.mrf.mxu3 }
 0x59c   : > { %v1853_v38 = vpop.eup %1852 }
 0x59d   : > { %v1855_v39 = vpop.eup %1854  ;;  %782 = vrot.lane.b32.xlu1 %v1853_v38, %s1957_s7  ;;  %v895_v38 = vld [vmem:[#allocation2 + $0x10] sm:$0xf] }
 0x59e   : > { %819 = vrot.lane.b32.xlu2 %v1855_v39, %s1957_s7  ;;  %v1857_v42 = vpop.eup %1856  ;;  %v897_v39 = vrot.slane %v895_v38, 2 }
 0x59f   : > { %v800_v44 = vadd.f32 1.0, %v1857_v42  ;;  %v892_v42 = vld [vmem:[#allocation2 + $0xc] sm:$0xf] }
 0x5a1   : > { %1858 = vrcp.f32 %v800_v44  ;;  %v812_v53 = vand.u32 2147483648, %v800_v44  ;;  %vm806_vm8 = vweird.f32 %v800_v44  ;;  %v810_v54 = vand.u32 2147483647, %v800_v44 }
 0x5a2   : > { %1860 = vpow2.f32 %v1769_v46 }
 0x5a3   : > { %v813_v56 = vor.u32 1.1754944e-38, %v812_v53  ;;  %vm811_vm10 = vcmp.eq.f32.partialorder %v810_v54, 8.507059e+37 }
 0x5a7   : > { %v1859_v45 = vpop.eup %1858 }
 0x5a8   : > { %v802_v47 = vmul.f32 %v1859_v45, %v800_v44  ;;  %v1861_v49 = vpop.eup %1860  ;;  %vm807_vm7 = vweird.f32 %v1859_v45 }
 0x5a9   : > { %v763_v51 = vadd.f32 1.0, %v1861_v49  ;;  %vm808_vm9 = vmor %vm806_vm8, %vm807_vm7 }
 0x5aa   : > { %v803_v48 = vsub.f32 1.0, %v802_v47 }
 0x5ab   : > { %1862 = vrcp.f32 %v763_v51  ;;  %v775_v4 = vand.u32 2147483648, %v763_v51  ;;  %vm769_vm12 = vweird.f32 %v763_v51  ;;  %v773_v5 = vand.u32 2147483647, %v763_v51 }
 0x5ac   : > { %v804_v50 = vmul.f32 %v1859_v45, %v803_v48 }
 0x5ad   : > { %v776_v7 = vor.u32 1.1754944e-38, %v775_v4  ;;  %vm774_vm15 = vcmp.eq.f32.partialorder %v773_v5, 8.507059e+37 }
 0x5ae   : > { %v805_v52 = vadd.f32 %v1859_v45, %v804_v50 }
 0x5b0   : > { %v809_v55 = vsel %vm808_vm9, %v1859_v45, %v805_v52 }
 0x5b1   : > { %v814_v58 = vsel %vm811_vm10, %v813_v56, %v809_v55  ;;  %v1863_v59 = vpop.eup %1862 }
 0x5b2   : > { %v765_v61 = vmul.f32 %v1863_v59, %v763_v51  ;;  %vm770_vm11 = vweird.f32 %v1863_v59  ;;  %v817_v62 = vmul.f32 %v814_v58, %v2143_v11 }
 0x5b3   : > { %vm771_vm14 = vmor %vm769_vm12, %vm770_vm11 }
 0x5b4   : > { %v766_v63 = vsub.f32 1.0, %v765_v61 }
 0x5b6   : > { %v767_v0 = vmul.f32 %v1863_v59, %v766_v63 }
 0x5b8   : > { %v768_v1 = vadd.f32 %v1863_v59, %v767_v0 }
 0x5ba   : > { %v772_v6 = vsel %vm771_vm14, %v1863_v59, %v768_v1 }
 0x5bb   : > { %v777_v14 = vsel %vm774_vm15, %v776_v7, %v772_v6 }
 0x5bc   : > { %v780_v21 = vmul.f32 %v777_v14, %v2141_v8 }
 0x5f8   : > { %v820_v57 = vpop.permute.xlu2 %819 }
 0x5f9   : > { %v822_v60 = vmul.f32 %v820_v57, %v814_v58 }
 0x5fb   : > { %824 = vrot.lane.b32.xlu1 %v822_v60, %s1958_s8 }
 0x60f   : > { %v783_v13 = vpop.permute.xlu1 %782 }
 0x610   : > { %v785_v15 = vmul.f32 %v783_v13, %v777_v14 }
 0x612   : > { %787 = vrot.lane.b32.xlu0 %v785_v15, %s1958_s8 }
 0x66d   : > { %v825_v2 = vpop.permute.xlu1 %824 }
 0x66e   : > { %v2171_v17 = vadd.f32 %v825_v2, %v817_v62 }
 0x670   : > { %1864 = vtanh.f32 %v2171_v17 }
 0x676   : > { %v1865_v20 = vpop.eup %1864 }
 0x677   : > { %830 = vrot.lane.b32.xlu0 %v1865_v20, %s1957_s7 }
 0x684   : > { %v788_v22 = vpop.permute.xlu0 %787 }
 0x685   : > { %v2176_v23 = vadd.f32 %v788_v22, %v780_v21 }
 0x687   : > { %1866 = vtanh.f32 %v2176_v23 }
 0x68d   : > { %v1867_v24 = vpop.eup %1866 }
 0x68e   : > { %793 = vrot.lane.b32.xlu2 %v1867_v24, %s1957_s7 }
 0x6e8   : > { %v794_v25 = vpop.permute.xlu2 %793 }
 0x6e9   : > { %v796_v11 = vmul.f32 %v794_v25, %v777_v14  ;;  %v831_v26 = vpop.permute.xlu0 %830 }
 0x6ea   : > { %v833_v28 = vmul.f32 %v831_v26, %v814_v58 }
 0x6eb   : > { %835 = vst [vmem:[#allocation1] ss:$4 sm:$0xff] %v796_v11 }
 0x6f2   : > { %v2180_v29 = vld.sshfl [vmem:[#allocation1] sm:$0xff pattern:$0x73625140] }
 0x6f3   : > { %843 = vst [vmem:[#allocation1] ss:$4 sm:$0xff] %v833_v28 }
 0x6fa   : > { %v2182_v30 = vld.sshfl [vmem:[#allocation1] sm:$0xff pattern:$0x73625140] }
 0x6fb   : > { %850 = vst [vmem:[#allocation1] ss:$4 sm:$0xff] %v796_v11 }
 0x702   : > { %v851_v8 = vld.sshfl [vmem:[#allocation1] sm:$0xff pattern:$0x73625140] }
 0x703   : > { %852 = vrot.lane.b32.xlu1 %v851_v8, %s1958_s8  ;;  %855 = vst [vmem:[#allocation1] ss:$4 sm:$0xff] %v833_v28 }
 0x70a   : > { %v856_v31 = vld.sshfl [vmem:[#allocation1] sm:$0xff pattern:$0x73625140] }
 0x70b   : > { %857 = vrot.lane.b32.xlu2 %v856_v31, %s1957_s7 }
 0x765   : > { %v858_v32 = vpop.permute.xlu2 %857 }
 0x775   : > { %v853_v34 = vpop.permute.xlu1 %852 }
 0x776   : > { %v860_v35 = vsel %vm322_vm0, %v853_v34, %v858_v32 }
 0x777   : > { %v861_v36 = vpack.c.bf16 %v860_v35, %v860_v35 }
 0x779   : > { %1771 = vmatmul.msk.bf16.vlgmr.msra.gmra.mxu0 %vm442_vm13, %v861_v36  ;;  %1772 = vmatmul.msk.bf16.vlgmr.msra.gmra.mxu1 %vm442_vm13, %v861_v36 }
 0x77a   : > { %1423 = vmatpush.bf16.msra.mxu0 %v2006_v3  ;;  %1436 = vmatpush.bf16.msra.mxu1 %v2015_v16 }
 0x77e   : > { %1424 = vmatpush.bf16.msra.mxu0 %v2012_v12  ;;  %1437 = vmatpush.bf16.msra.mxu1 %v2042_v33 }
 0x782   : > { %1425 = vmatpush.bf16.msra.mxu0 %v2033_v27  ;;  %1438 = vmatpush.bf16.msra.mxu1 %v2053_v40 }
 0x786   : > { %1426 = vmatpush.bf16.msra.mxu0 %v2048_v37  ;;  %1439 = vmatpush.bf16.msra.mxu1 %v2061_v43 }
 0x7f6   : > { %v874_v41 = vpop.f32.mrf.mxu0  ;;  %v887_v44 = vpop.f32.mrf.mxu1 }
 0x7f7   : > { %v893_v3 = vadd.f32 %v892_v42, %v874_v41  ;;  %v899_v45 = vadd.f32 %v897_v39, %v887_v44  ;;  %v1033_v42 = vld [vmem:[#allocation2 + $0xc] sm:$0xf] }
 0x7f8   : > { %v1035_v44 = vrot.slane %v1033_v42, 2 }
 0x7f9   : > { %1868 = vtanh.f32 %v893_v3  ;;  %v1773_v27 = vmul.f32 -1.442695, %v893_v3  ;;  %v1774_v37 = vmul.f32 -1.442695, %v899_v45 }
 0x7fa   : > { %1870 = vtanh.f32 %v899_v45  ;;  %v1031_v45 = vld [vmem:[#allocation2 + $0x10] sm:$0xf] }
 0x7fb   : > { %1872 = vpow2.f32 %v1773_v27 }
 0x7fc   : > { %1874 = vpow2.f32 %v1774_v37 }
 0x7fe   : > { %v876_v12 = vpop.f32.mrf.mxu0  ;;  %v889_v16 = vpop.f32.mrf.mxu1 }
 0x7ff   : > { %v1869_v33 = vpop.eup %1868 }
 0x800   : > { %v1871_v46 = vpop.eup %1870  ;;  %922 = vrot.lane.b32.xlu0 %v1869_v33, %s1957_s7 }
 0x801   : > { %959 = vrot.lane.b32.xlu1 %v1871_v46, %s1957_s7  ;;  %v1873_v40 = vpop.eup %1872 }
 0x802   : > { %v1875_v43 = vpop.eup %1874  ;;  %v903_v47 = vadd.f32 1.0, %v1873_v40 }
 0x803   : > { %v940_v48 = vadd.f32 1.0, %v1875_v43 }
 0x804   : > { %1876 = vrcp.f32 %v903_v47  ;;  %v915_v59 = vand.u32 2147483648, %v903_v47  ;;  %vm909_vm3 = vweird.f32 %v903_v47  ;;  %v913_v61 = vand.u32 2147483647, %v903_v47 }
 0x805   : > { %1878 = vrcp.f32 %v940_v48  ;;  %v952_v60 = vand.u32 2147483648, %v940_v48  ;;  %vm946_vm4 = vweird.f32 %v940_v48  ;;  %v950_v63 = vand.u32 2147483647, %v940_v48 }
 0x806   : > { %v916_v4 = vor.u32 1.1754944e-38, %v915_v59  ;;  %vm914_vm7 = vcmp.eq.f32.partialorder %v913_v61, 8.507059e+37 }
 0x807   : > { %v953_v5 = vor.u32 1.1754944e-38, %v952_v60  ;;  %vm951_vm8 = vcmp.eq.f32.partialorder %v950_v63, 8.507059e+37 }
 0x80a   : > { %v1877_v49 = vpop.eup %1876 }
 0x80b   : > { %v1879_v50 = vpop.eup %1878  ;;  %v905_v51 = vmul.f32 %v1877_v49, %v903_v47  ;;  %vm910_vm1 = vweird.f32 %v1877_v49 }
 0x80c   : > { %v942_v52 = vmul.f32 %v1879_v50, %v940_v48  ;;  %vm947_vm2 = vweird.f32 %v1879_v50  ;;  %vm911_vm5 = vmor %vm909_vm3, %vm910_vm1 }
 0x80d   : > { %v906_v53 = vsub.f32 1.0, %v905_v51  ;;  %vm948_vm6 = vmor %vm946_vm4, %vm947_vm2 }
 0x80e   : > { %v943_v54 = vsub.f32 1.0, %v942_v52 }
 0x80f   : > { %v907_v55 = vmul.f32 %v1877_v49, %v906_v53 }
 0x810   : > { %v944_v56 = vmul.f32 %v1879_v50, %v943_v54 }
 0x811   : > { %v908_v57 = vadd.f32 %v1877_v49, %v907_v55 }
 0x812   : > { %v945_v58 = vadd.f32 %v1879_v50, %v944_v56 }
 0x813   : > { %v912_v0 = vsel %vm911_vm5, %v1877_v49, %v908_v57 }
 0x814   : > { %v949_v1 = vsel %vm948_vm6, %v1879_v50, %v945_v58  ;;  %v917_v7 = vsel %vm914_vm7, %v916_v4, %v912_v0 }
 0x815   : > { %v954_v14 = vsel %vm951_vm8, %v953_v5, %v949_v1  ;;  %v920_v2 = vmul.f32 %v917_v7, %v2176_v23 }
 0x816   : > { %v957_v24 = vmul.f32 %v954_v14, %v2171_v17 }
 0x872   : > { %v923_v6 = vpop.permute.xlu0 %922 }
 0x873   : > { %v960_v13 = vpop.permute.xlu1 %959  ;;  %v925_v15 = vmul.f32 %v923_v6, %v917_v7 }
 0x874   : > { %v962_v62 = vmul.f32 %v960_v13, %v954_v14 }
 0x875   : > { %927 = vrot.lane.b32.xlu2 %v925_v15, %s1958_s8 }
 0x876   : > { %964 = vrot.lane.b32.xlu0 %v962_v62, %s1958_s8 }
 0x8cf   : > { %v928_v20 = vpop.permute.xlu2 %927 }
 0x8d0   : > { %v2202_v21 = vadd.f32 %v928_v20, %v920_v2 }
 0x8d2   : > { %1880 = vtanh.f32 %v2202_v21 }
 0x8d8   : > { %v1881_v22 = vpop.eup %1880 }
 0x8d9   : > { %933 = vrot.lane.b32.xlu1 %v1881_v22, %s1957_s7 }
 0x8e8   : > { %v965_v25 = vpop.permute.xlu0 %964 }
 0x8e9   : > { %v2207_v11 = vadd.f32 %v965_v25, %v957_v24 }
 0x8eb   : > { %1882 = vtanh.f32 %v2207_v11 }
 0x8f1   : > { %v1883_v26 = vpop.eup %1882 }
 0x8f2   : > { %970 = vrot.lane.b32.xlu2 %v1883_v26, %s1957_s7 }
 0x94b   : > { %v934_v28 = vpop.permute.xlu1 %933 }
 0x94c   : > { %v936_v23 = vmul.f32 %v934_v28, %v917_v7  ;;  %v971_v8 = vpop.permute.xlu2 %970 }
 0x94d   : > { %v973_v31 = vmul.f32 %v971_v8, %v954_v14 }
 0x94e   : > { %975 = vst [vmem:[#allocation1] ss:$4 sm:$0xff] %v936_v23 }
 0x955   : > { %v2211_v32 = vld.sshfl [vmem:[#allocation1] sm:$0xff pattern:$0x73625140] }
 0x956   : > { %983 = vst [vmem:[#allocation1] ss:$4 sm:$0xff] %v973_v31 }
 0x95d   : > { %v2213_v34 = vld.sshfl [vmem:[#allocation1] sm:$0xff pattern:$0x73625140] }
 0x95e   : > { %990 = vst [vmem:[#allocation1] ss:$4 sm:$0xff] %v936_v23 }
 0x965   : > { %v991_v17 = vld.sshfl [vmem:[#allocation1] sm:$0xff pattern:$0x73625140] }
 0x966   : > { %992 = vrot.lane.b32.xlu0 %v991_v17, %s1958_s8  ;;  %995 = vst [vmem:[#allocation1] ss:$4 sm:$0xff] %v973_v31 }
 0x96d   : > { %v996_v35 = vld.sshfl [vmem:[#allocation1] sm:$0xff pattern:$0x73625140] }
 0x96e   : > { %997 = vrot.lane.b32.xlu1 %v996_v35, %s1957_s7 }
 0x9d8   : > { %v993_v36 = vpop.permute.xlu0 %992 }
 0x9e0   : > { %v998_v38 = vpop.permute.xlu1 %997 }
 0x9e1   : > { %v1000_v39 = vsel %vm322_vm0, %v993_v36, %v998_v38 }
 0x9e2   : > { %v1001_v41 = vpack.c.bf16 %v1000_v39, %v1000_v39 }
 0x9e4   : > { %1775 = vmatmul.msk.bf16.vlgmr.msra.gmra.mxu2 %vm442_vm13, %v1001_v41  ;;  %1776 = vmatmul.msk.bf16.vlgmr.msra.gmra.mxu3 %vm442_vm13, %v1001_v41 }
 0xa67   : > { %v1014_v3 = vpop.f32.mrf.mxu2  ;;  %v1027_v12 = vpop.f32.mrf.mxu3 }
 0xa68   : > { %v1032_v16 = vadd.f32 %v1031_v45, %v1014_v3  ;;  %v1037_v33 = vadd.f32 %v1035_v44, %v1027_v12 }
 0xa6a   : > { %1884 = vtanh.f32 %v1032_v16  ;;  %v1777_v43 = vmul.f32 -1.442695, %v1032_v16  ;;  %v1778_v50 = vmul.f32 -1.442695, %v1037_v33  ;;  %v1171_v16 = vld [vmem:[#allocation2 + $0x8] sm:$0xf] }
 0xa6b   : > { %1886 = vtanh.f32 %v1037_v33  ;;  %v1173_v33 = vrot.slane %v1171_v16, 2 }
 0xa6c   : > { %1888 = vpow2.f32 %v1777_v43 }
 0xa6f   : > { %v1016_v46 = vpop.f32.mrf.mxu2  ;;  %v1029_v27 = vpop.f32.mrf.mxu3 }
 0xa70   : > { %v1885_v37 = vpop.eup %1884  ;;  %v1169_v27 = vld [vmem:[#allocation2 + $0x14] sm:$0xf] }
 0xa71   : > { %v1887_v40 = vpop.eup %1886  ;;  %1060 = vrot.lane.b32.xlu2 %v1885_v37, %s1957_s7 }
 0xa72   : > { %1097 = vrot.lane.b32.xlu0 %v1887_v40, %s1957_s7  ;;  %v1889_v47 = vpop.eup %1888 }
 0xa73   : > { %v1041_v48 = vadd.f32 1.0, %v1889_v47 }
 0xa75   : > { %1890 = vrcp.f32 %v1041_v48  ;;  %v1053_v57 = vand.u32 2147483648, %v1041_v48  ;;  %vm1047_vm10 = vweird.f32 %v1041_v48  ;;  %v1051_v58 = vand.u32 2147483647, %v1041_v48 }
 0xa76   : > { %1892 = vpow2.f32 %v1778_v50 }
 0xa77   : > { %v1054_v60 = vor.u32 1.1754944e-38, %v1053_v57  ;;  %vm1052_vm12 = vcmp.eq.f32.partialorder %v1051_v58, 8.507059e+37 }
 0xa7b   : > { %v1891_v49 = vpop.eup %1890 }
 0xa7c   : > { %v1043_v51 = vmul.f32 %v1891_v49, %v1041_v48  ;;  %v1893_v54 = vpop.eup %1892  ;;  %vm1048_vm9 = vweird.f32 %v1891_v49 }
 0xa7d   : > { %v1078_v55 = vadd.f32 1.0, %v1893_v54  ;;  %vm1049_vm11 = vmor %vm1047_vm10, %vm1048_vm9 }
 0xa7e   : > { %v1044_v52 = vsub.f32 1.0, %v1043_v51 }
 0xa7f   : > { %1894 = vrcp.f32 %v1078_v55  ;;  %v1090_v13 = vand.u32 2147483648, %v1078_v55  ;;  %vm1084_vm15 = vweird.f32 %v1078_v55  ;;  %v1088_v14 = vand.u32 2147483647, %v1078_v55 }
 0xa80   : > { %v1045_v53 = vmul.f32 %v1891_v49, %v1044_v52 }
 0xa81   : > { %v1091_v62 = vor.u32 1.1754944e-38, %v1090_v13  ;;  %vm1089_vm2 = vcmp.eq.f32.partialorder %v1088_v14, 8.507059e+37 }
 0xa82   : > { %v1046_v56 = vadd.f32 %v1891_v49, %v1045_v53 }
 0xa84   : > { %v1050_v59 = vsel %vm1049_vm11, %v1891_v49, %v1046_v56 }
 0xa85   : > { %v1055_v63 = vsel %vm1052_vm12, %v1054_v60, %v1050_v59  ;;  %v1895_v1 = vpop.eup %1894 }
 0xa86   : > { %v1080_v4 = vmul.f32 %v1895_v1, %v1078_v55  ;;  %vm1085_vm14 = vweird.f32 %v1895_v1  ;;  %v1058_v24 = vmul.f32 %v1055_v63, %v2202_v21 }
 0xa87   : > { %vm1086_vm1 = vmor %vm1084_vm15, %vm1085_vm14 }
 0xa88   : > { %v1081_v5 = vsub.f32 1.0, %v1080_v4 }
 0xa8a   : > { %v1082_v6 = vmul.f32 %v1895_v1, %v1081_v5 }
 0xa8c   : > { %v1083_v7 = vadd.f32 %v1895_v1, %v1082_v6 }
 0xa8e   : > { %v1087_v15 = vsel %vm1086_vm1, %v1895_v1, %v1083_v7 }
 0xa8f   : > { %v1092_v20 = vsel %vm1089_vm2, %v1091_v62, %v1087_v15 }
 0xa90   : > { %v1095_v25 = vmul.f32 %v1092_v20, %v2207_v11 }
 0xacb   : > { %v1061_v61 = vpop.permute.xlu2 %1060 }
 0xacc   : > { %v1063_v0 = vmul.f32 %v1061_v61, %v1055_v63 }
 0xace   : > { %1065 = vrot.lane.b32.xlu1 %v1063_v0, %s1958_s8 }
 0xae4   : > { %v1098_v2 = vpop.permute.xlu0 %1097 }
 0xae5   : > { %v1100_v22 = vmul.f32 %v1098_v2, %v1092_v20 }
 0xae7   : > { %1102 = vrot.lane.b32.xlu2 %v1100_v22, %s1958_s8 }
 0xb40   : > { %v1066_v26 = vpop.permute.xlu1 %1065 }
 0xb41   : > { %v1103_v28 = vpop.permute.xlu2 %1102  ;;  %v2226_v23 = vadd.f32 %v1066_v26, %v1058_v24 }
 0xb42   : > { %v2228_v8 = vadd.f32 %v1103_v28, %v1095_v25 }
 0xb43   : > { %1896 = vtanh.f32 %v2226_v23 }
 0xb44   : > { %1898 = vtanh.f32 %v2228_v8 }
 0xb49   : > { %v1897_v31 = vpop.eup %1896 }
 0xb4a   : > { %v1899_v17 = vpop.eup %1898  ;;  %1071 = vrot.lane.b32.xlu0 %v1897_v31, %s1957_s7 }
 0xb4b   : > { %1108 = vrot.lane.b32.xlu1 %v1899_v17, %s1957_s7 }
 0xbbc   : > { %v1072_v35 = vpop.permute.xlu0 %1071 }
 0xbbd   : > { %v1074_v21 = vmul.f32 %v1072_v35, %v1055_v63  ;;  %v1109_v11 = vpop.permute.xlu1 %1108 }
 0xbbe   : > { %v1111_v36 = vmul.f32 %v1109_v11, %v1092_v20 }
 0xbbf   : > { %1113 = vst [vmem:[#allocation1] ss:$4 sm:$0xff] %v1074_v21 }
 0xbc6   : > { %v2234_v38 = vld.sshfl [vmem:[#allocation1] sm:$0xff pattern:$0x73625140] }
 0xbc7   : > { %1121 = vst [vmem:[#allocation1] ss:$4 sm:$0xff] %v1111_v36 }
 0xbce   : > { %v2236_v39 = vld.sshfl [vmem:[#allocation1] sm:$0xff pattern:$0x73625140] }
 0xbcf   : > { %1128 = vst [vmem:[#allocation1] ss:$4 sm:$0xff] %v1074_v21 }
 0xbd6   : > { %v1129_v41 = vld.sshfl [vmem:[#allocation1] sm:$0xff pattern:$0x73625140] }
 0xbd7   : > { %1130 = vrot.lane.b32.xlu2 %v1129_v41, %s1958_s8  ;;  %1133 = vst [vmem:[#allocation1] ss:$4 sm:$0xff] %v1111_v36 }
 0xbde   : > { %v1134_v42 = vld.sshfl [vmem:[#allocation1] sm:$0xff pattern:$0x73625140] }
 0xbdf   : > { %1135 = vrot.lane.b32.xlu0 %v1134_v42, %s1957_s7 }
 0xc31   : > { %v1131_v44 = vpop.permute.xlu2 %1130 }
 0xc51   : > { %v1136_v3 = vpop.permute.xlu0 %1135 }
 0xc52   : > { %v1138_v45 = vsel %vm322_vm0, %v1131_v44, %v1136_v3 }
 0xc53   : > { %v1139_v12 = vpack.c.bf16 %v1138_v45, %v1138_v45 }
 0xc55   : > { %1779 = vmatmul.msk.bf16.vlgmr.msrb.gmra.mxu0 %vm442_vm13, %v1139_v12  ;;  %1780 = vmatmul.msk.bf16.vlgmr.msrb.gmra.mxu1 %vm442_vm13, %v1139_v12 }
 0xcd2   : > { %v1152_v46 = vpop.f32.mrf.mxu0  ;;  %v1165_v37 = vpop.f32.mrf.mxu1 }
 0xcd3   : > { %v1170_v40 = vadd.f32 %v1169_v27, %v1152_v46  ;;  %v1175_v43 = vadd.f32 %v1173_v33, %v1165_v37 }
 0xcd5   : > { %1900 = vtanh.f32 %v1170_v40  ;;  %v1782_v51 = vmul.f32 -1.442695, %v1175_v43  ;;  %v1781_v55 = vmul.f32 -1.442695, %v1170_v40 }
 0xcd6   : > { %1902 = vtanh.f32 %v1175_v43 }
 0xcd7   : > { %1904 = vpow2.f32 %v1782_v51 }
 0xcda   : > { %v1154_v47 = vpop.f32.mrf.mxu0  ;;  %v1167_v48 = vpop.f32.mrf.mxu1 }
 0xcdb   : > { %v1901_v49 = vpop.eup %1900  ;;  %v1309_v47 = vld [vmem:[#allocation2 + $0x4] sm:$0xf] }
 0xcdc   : > { %v1903_v50 = vpop.eup %1902  ;;  %1198 = vrot.lane.b32.xlu1 %v1901_v49, %s1957_s7  ;;  %v1311_v48 = vrot.slane %v1309_v47, 2 }
 0xcdd   : > { %1235 = vrot.lane.b32.xlu2 %v1903_v50, %s1957_s7  ;;  %v1905_v52 = vpop.eup %1904  ;;  %v1307_v50 = vld [vmem:[#allocation2 + $0x18] sm:$0xf] }
 0xcde   : > { %v1216_v53 = vadd.f32 1.0, %v1905_v52 }
 0xce0   : > { %1906 = vrcp.f32 %v1216_v53  ;;  %v1228_v63 = vand.u32 2147483648, %v1216_v53  ;;  %vm1222_vm4 = vweird.f32 %v1216_v53  ;;  %v1226_v0 = vand.u32 2147483647, %v1216_v53 }
 0xce1   : > { %1908 = vpow2.f32 %v1781_v55 }
 0xce2   : > { %v1229_v4 = vor.u32 1.1754944e-38, %v1228_v63  ;;  %vm1227_vm6 = vcmp.eq.f32.partialorder %v1226_v0, 8.507059e+37 }
 0xce6   : > { %v1907_v54 = vpop.eup %1906 }
 0xce7   : > { %v1218_v56 = vmul.f32 %v1907_v54, %v1216_v53  ;;  %v1909_v58 = vpop.eup %1908  ;;  %vm1223_vm3 = vweird.f32 %v1907_v54 }
 0xce8   : > { %v1179_v60 = vadd.f32 1.0, %v1909_v58  ;;  %vm1224_vm5 = vmor %vm1222_vm4, %vm1223_vm3 }
 0xce9   : > { %v1219_v57 = vsub.f32 1.0, %v1218_v56 }
 0xcea   : > { %1910 = vrcp.f32 %v1179_v60  ;;  %v1191_v20 = vand.u32 2147483648, %v1179_v60  ;;  %vm1185_vm8 = vweird.f32 %v1179_v60  ;;  %v1189_v22 = vand.u32 2147483647, %v1179_v60 }
 0xceb   : > { %v1220_v59 = vmul.f32 %v1907_v54, %v1219_v57 }
 0xcec   : > { %v1192_v25 = vor.u32 1.1754944e-38, %v1191_v20  ;;  %vm1190_vm10 = vcmp.eq.f32.partialorder %v1189_v22, 8.507059e+37 }
 0xced   : > { %v1221_v61 = vadd.f32 %v1907_v54, %v1220_v59 }
 0xcef   : > { %v1225_v1 = vsel %vm1224_vm5, %v1907_v54, %v1221_v61 }
 0xcf0   : > { %v1230_v6 = vsel %vm1227_vm6, %v1229_v4, %v1225_v1  ;;  %v1911_v7 = vpop.eup %1910 }
 0xcf1   : > { %v1181_v14 = vmul.f32 %v1911_v7, %v1179_v60  ;;  %vm1186_vm7 = vweird.f32 %v1911_v7  ;;  %v1233_v17 = vmul.f32 %v1230_v6, %v2228_v8 }
 0xcf2   : > { %vm1187_vm9 = vmor %vm1185_vm8, %vm1186_vm7 }
 0xcf3   : > { %v1182_v15 = vsub.f32 1.0, %v1181_v14 }
 0xcf5   : > { %v1183_v62 = vmul.f32 %v1911_v7, %v1182_v15 }
 0xcf7   : > { %v1184_v2 = vadd.f32 %v1911_v7, %v1183_v62 }
 0xcf9   : > { %v1188_v24 = vsel %vm1187_vm9, %v1911_v7, %v1184_v2 }
 0xcfa   : > { %v1193_v28 = vsel %vm1190_vm10, %v1192_v25, %v1188_v24 }
 0xcfb   : > { %v1196_v36 = vmul.f32 %v1193_v28, %v2226_v23 }
 0xd37   : > { %v1236_v5 = vpop.permute.xlu2 %1235 }
 0xd38   : > { %v1238_v13 = vmul.f32 %v1236_v5, %v1230_v6 }
 0xd3a   : > { %1240 = vrot.lane.b32.xlu1 %v1238_v13, %s1958_s8 }
 0xd4e   : > { %v1199_v26 = vpop.permute.xlu1 %1198 }
 0xd4f   : > { %v1201_v31 = vmul.f32 %v1199_v26, %v1193_v28 }
 0xd51   : > { %1203 = vrot.lane.b32.xlu0 %v1201_v31, %s1958_s8 }
 0xdac   : > { %v1241_v35 = vpop.permute.xlu1 %1240 }
 0xdad   : > { %v2248_v21 = vadd.f32 %v1241_v35, %v1233_v17 }
 0xdaf   : > { %1912 = vtanh.f32 %v2248_v21 }
 0xdb5   : > { %v1913_v11 = vpop.eup %1912 }
 0xdb6   : > { %1246 = vrot.lane.b32.xlu0 %v1913_v11, %s1957_s7 }
 0xdc3   : > { %v1204_v41 = vpop.permute.xlu0 %1203 }
 0xdc4   : > { %v2253_v42 = vadd.f32 %v1204_v41, %v1196_v36 }
 0xdc6   : > { %1914 = vtanh.f32 %v2253_v42 }
 0xdcc   : > { %v1915_v44 = vpop.eup %1914 }
 0xdcd   : > { %1209 = vrot.lane.b32.xlu2 %v1915_v44, %s1957_s7 }
 0xe27   : > { %v1210_v3 = vpop.permute.xlu2 %1209 }
 0xe28   : > { %v1212_v8 = vmul.f32 %v1210_v3, %v1193_v28  ;;  %v1247_v45 = vpop.permute.xlu0 %1246 }
 0xe29   : > { %v1249_v12 = vmul.f32 %v1247_v45, %v1230_v6 }
 0xe2a   : > { %1251 = vst [vmem:[#allocation1] ss:$4 sm:$0xff] %v1212_v8 }
 0xe31   : > { %v2257_v16 = vld.sshfl [vmem:[#allocation1] sm:$0xff pattern:$0x73625140] }
 0xe32   : > { %1259 = vst [vmem:[#allocation1] ss:$4 sm:$0xff] %v1249_v12 }
 0xe39   : > { %v2259_v33 = vld.sshfl [vmem:[#allocation1] sm:$0xff pattern:$0x73625140] }
 0xe3a   : > { %1266 = vst [vmem:[#allocation1] ss:$4 sm:$0xff] %v1212_v8 }
 0xe41   : > { %v1267_v23 = vld.sshfl [vmem:[#allocation1] sm:$0xff pattern:$0x73625140] }
 0xe42   : > { %1268 = vrot.lane.b32.xlu1 %v1267_v23, %s1958_s8  ;;  %1271 = vst [vmem:[#allocation1] ss:$4 sm:$0xff] %v1249_v12 }
 0xe49   : > { %v1272_v46 = vld.sshfl [vmem:[#allocation1] sm:$0xff pattern:$0x73625140] }
 0xe4a   : > { %1273 = vrot.lane.b32.xlu2 %v1272_v46, %s1957_s7 }
 0xea4   : > { %v1274_v27 = vpop.permute.xlu2 %1273 }
 0xeb4   : > { %v1269_v37 = vpop.permute.xlu1 %1268 }
 0xeb5   : > { %v1276_v40 = vsel %vm322_vm0, %v1269_v37, %v1274_v27 }
 0xeb6   : > { %v1277_v43 = vpack.c.bf16 %v1276_v40, %v1276_v40 }
 0xeb8   : > { %1783 = vmatmul.msk.bf16.vlgmr.msrb.gmra.mxu2 %vm442_vm13, %v1277_v43  ;;  %1784 = vmatmul.msk.bf16.vlgmr.msrb.gmra.mxu3 %vm442_vm13, %v1277_v43 }
 0xf3b   : > { %v1290_v49 = vpop.f32.mrf.mxu2  ;;  %v1303_v51 = vpop.f32.mrf.mxu3 }
 0xf3c   : > { %v1308_v52 = vadd.f32 %v1307_v50, %v1290_v49  ;;  %v1313_v53 = vadd.f32 %v1311_v48, %v1303_v51 }
 0xf3e   : > { %1916 = vtanh.f32 %v1308_v52  ;;  %v1785_v58 = vmul.f32 -1.442695, %v1308_v52  ;;  %v1786_v59 = vmul.f32 -1.442695, %v1313_v53 }
 0xf3f   : > { %1918 = vtanh.f32 %v1313_v53 }
 0xf40   : > { %1920 = vpow2.f32 %v1785_v58 }
 0xf41   : > { %1922 = vpow2.f32 %v1786_v59  ;;  %v1445_v59 = vld [vmem:[#allocation2 + $0x1c] sm:$0xf] }
 0xf43   : > { %v1292_v54 = vpop.f32.mrf.mxu2  ;;  %v1305_v55 = vpop.f32.mrf.mxu3 }
 0xf44   : > { %v1917_v56 = vpop.eup %1916 }
 0xf45   : > { %v1919_v57 = vpop.eup %1918  ;;  %1336 = vrot.lane.b32.xlu0 %v1917_v56, %s1957_s7  ;;  %v1447_v56 = vld [vmem:[#allocation2] sm:$0xf] }
 0xf46   : > { %1373 = vrot.lane.b32.xlu1 %v1919_v57, %s1957_s7  ;;  %v1921_v60 = vpop.eup %1920  ;;  %v1449_v57 = vrot.slane %v1447_v56, 2 }
 0xf47   : > { %v1923_v61 = vpop.eup %1922  ;;  %v1317_v63 = vadd.f32 1.0, %v1921_v60 }
 0xf48   : > { %v1354_v0 = vadd.f32 1.0, %v1923_v61 }
 0xf49   : > { %1924 = vrcp.f32 %v1317_v63  ;;  %v1329_v20 = vand.u32 2147483648, %v1317_v63  ;;  %vm1323_vm14 = vweird.f32 %v1317_v63  ;;  %v1327_v24 = vand.u32 2147483647, %v1317_v63 }
 0xf4a   : > { %1926 = vrcp.f32 %v1354_v0  ;;  %v1366_v22 = vand.u32 2147483648, %v1354_v0  ;;  %vm1360_vm15 = vweird.f32 %v1354_v0  ;;  %v1364_v25 = vand.u32 2147483647, %v1354_v0 }
 0xf4b   : > { %v1330_v31 = vor.u32 1.1754944e-38, %v1329_v20  ;;  %vm1328_vm3 = vcmp.eq.f32.partialorder %v1327_v24, 8.507059e+37 }
 0xf4c   : > { %v1367_v17 = vor.u32 1.1754944e-38, %v1366_v22  ;;  %vm1365_vm4 = vcmp.eq.f32.partialorder %v1364_v25, 8.507059e+37 }
 0xf4f   : > { %v1925_v1 = vpop.eup %1924 }
 0xf50   : > { %v1927_v4 = vpop.eup %1926  ;;  %v1319_v5 = vmul.f32 %v1925_v1, %v1317_v63  ;;  %vm1324_vm11 = vweird.f32 %v1925_v1 }
 0xf51   : > { %v1356_v6 = vmul.f32 %v1927_v4, %v1354_v0  ;;  %vm1361_vm12 = vweird.f32 %v1927_v4  ;;  %vm1325_vm1 = vmor %vm1323_vm14, %vm1324_vm11  ;;  %vm1597_vm14 = vcmask 517120  }
 0xf52   : > { %v1320_v7 = vsub.f32 1.0, %v1319_v5  ;;  %vm1362_vm2 = vmor %vm1360_vm15, %vm1361_vm12  ;;  %vm560_vm12 = vcmask 254976  }
 0xf53   : > { %v1357_v13 = vsub.f32 1.0, %v1356_v6 }
 0xf54   : > { %v1321_v14 = vmul.f32 %v1925_v1, %v1320_v7 }
 0xf55   : > { %v1358_v15 = vmul.f32 %v1927_v4, %v1357_v13 }
 0xf56   : > { %v1322_v62 = vadd.f32 %v1925_v1, %v1321_v14 }
 0xf57   : > { %v1359_v2 = vadd.f32 %v1927_v4, %v1358_v15 }
 0xf58   : > { %v1326_v26 = vsel %vm1325_vm1, %v1925_v1, %v1322_v62 }
 0xf59   : > { %v1363_v28 = vsel %vm1362_vm2, %v1927_v4, %v1359_v2  ;;  %v1331_v11 = vsel %vm1328_vm3, %v1330_v31, %v1326_v26 }
 0xf5a   : > { %v1368_v41 = vsel %vm1365_vm4, %v1367_v17, %v1363_v28  ;;  %v1334_v8 = vmul.f32 %v1331_v11, %v2253_v42 }
 0xf5b   : > { %v1371_v46 = vmul.f32 %v1368_v41, %v2248_v21 }
 0xfb7   : > { %v1337_v35 = vpop.permute.xlu0 %1336 }
 0xfb8   : > { %v1374_v36 = vpop.permute.xlu1 %1373  ;;  %v1339_v44 = vmul.f32 %v1337_v35, %v1331_v11 }
 0xfb9   : > { %v1376_v3 = vmul.f32 %v1374_v36, %v1368_v41 }
 0xfba   : > { %1341 = vrot.lane.b32.xlu2 %v1339_v44, %s1958_s8 }
 0xfbb   : > { %1378 = vrot.lane.b32.xlu0 %v1376_v3, %s1958_s8 }
0x1014   : > { %v1342_v45 = vpop.permute.xlu2 %1341 }
0x1015   : > { %v2271_v12 = vadd.f32 %v1342_v45, %v1334_v8 }
0x1017   : > { %1928 = vtanh.f32 %v2271_v12 }
0x101d   : > { %v1929_v23 = vpop.eup %1928 }
0x101e   : > { %1347 = vrot.lane.b32.xlu1 %v1929_v23, %s1957_s7 }
0x102d   : > { %v1379_v27 = vpop.permute.xlu0 %1378 }
0x102e   : > { %v2276_v37 = vadd.f32 %v1379_v27, %v1371_v46 }
0x1030   : > { %1930 = vtanh.f32 %v2276_v37 }
0x1036   : > { %v1931_v40 = vpop.eup %1930 }
0x1037   : > { %1384 = vrot.lane.b32.xlu2 %v1931_v40, %s1957_s7 }
0x1090   : > { %v1348_v43 = vpop.permute.xlu1 %1347 }
0x1091   : > { %v1350_v42 = vmul.f32 %v1348_v43, %v1331_v11  ;;  %v1385_v47 = vpop.permute.xlu2 %1384 }
0x1092   : > { %v1387_v48 = vmul.f32 %v1385_v47, %v1368_v41 }
0x1093   : > { %1389 = vst [vmem:[#allocation1] ss:$4 sm:$0xff] %v1350_v42 }
0x109a   : > { %v2280_v49 = vld.sshfl [vmem:[#allocation1] sm:$0xff pattern:$0x73625140] }
0x109b   : > { %1397 = vst [vmem:[#allocation1] ss:$4 sm:$0xff] %v1387_v48 }
0x10a2   : > { %v2282_v50 = vld.sshfl [vmem:[#allocation1] sm:$0xff pattern:$0x73625140] }
0x10a3   : > { %1404 = vst [vmem:[#allocation1] ss:$4 sm:$0xff] %v1350_v42 }
0x10aa   : > { %v1405_v21 = vld.sshfl [vmem:[#allocation1] sm:$0xff pattern:$0x73625140] }
0x10ab   : > { %1406 = vrot.lane.b32.xlu0 %v1405_v21, %s1958_s8  ;;  %1409 = vst [vmem:[#allocation1] ss:$4 sm:$0xff] %v1387_v48 }
0x10b2   : > { %v1410_v51 = vld.sshfl [vmem:[#allocation1] sm:$0xff pattern:$0x73625140] }
0x10b3   : > { %1411 = vrot.lane.b32.xlu1 %v1410_v51, %s1957_s7 }
0x111d   : > { %v1407_v52 = vpop.permute.xlu0 %1406 }
0x1125   : > { %v1412_v53 = vpop.permute.xlu1 %1411 }
0x1126   : > { %v1414_v54 = vsel %vm322_vm0, %v1407_v52, %v1412_v53 }
0x1127   : > { %v1415_v55 = vpack.c.bf16 %v1414_v54, %v1414_v54 }
0x1129   : > { %1787 = vmatmul.msk.bf16.vlgmr.msra.gmra.mxu0 %vm442_vm13, %v1415_v55  ;;  %1788 = vmatmul.msk.bf16.vlgmr.msra.gmra.mxu1 %vm442_vm13, %v1415_v55 }
0x11a6   : > { %v1428_v58 = vpop.f32.mrf.mxu0  ;;  %v1441_v60 = vpop.f32.mrf.mxu1 }
0x11a7   : > { %v1446_v61 = vadd.f32 %v1445_v59, %v1428_v58  ;;  %v1451_v63 = vadd.f32 %v1449_v57, %v1441_v60 }
0x11a9   : > { %1932 = vtanh.f32 %v1446_v61  ;;  %v1789_v6 = vmul.f32 -1.442695, %v1446_v61  ;;  %v1790_v15 = vmul.f32 -1.442695, %v1451_v63 }
0x11aa   : > { %1934 = vtanh.f32 %v1451_v63 }
0x11ab   : > { %1936 = vpow2.f32 %v1789_v6 }
0x11ae   : > { %v1430_v0 = vpop.f32.mrf.mxu0  ;;  %v1443_v1 = vpop.f32.mrf.mxu1 }
0x11af   : > { %v1933_v4 = vpop.eup %1932 }
0x11b0   : > { %v1935_v5 = vpop.eup %1934  ;;  %1474 = vrot.lane.b32.xlu2 %v1933_v4, %s1957_s7 }
0x11b1   : > { %1511 = vrot.lane.b32.xlu0 %v1935_v5, %s1957_s7  ;;  %v1937_v7 = vpop.eup %1936 }
0x11b2   : > { %v1455_v13 = vadd.f32 1.0, %v1937_v7 }
0x11b4   : > { %1938 = vrcp.f32 %v1455_v13  ;;  %v1467_v26 = vand.u32 2147483648, %v1455_v13  ;;  %vm1461_vm5 = vweird.f32 %v1455_v13  ;;  %v1465_v28 = vand.u32 2147483647, %v1455_v13 }
0x11b5   : > { %1940 = vpow2.f32 %v1790_v15 }
0x11b6   : > { %v1468_v17 = vor.u32 1.1754944e-38, %v1467_v26  ;;  %vm1466_vm7 = vcmp.eq.f32.partialorder %v1465_v28, 8.507059e+37 }
0x11ba   : > { %v1939_v14 = vpop.eup %1938 }
0x11bb   : > { %v1457_v62 = vmul.f32 %v1939_v14, %v1455_v13  ;;  %v1941_v22 = vpop.eup %1940  ;;  %vm1462_vm13 = vweird.f32 %v1939_v14 }
0x11bc   : > { %v1492_v24 = vadd.f32 1.0, %v1941_v22  ;;  %vm1463_vm6 = vmor %vm1461_vm5, %vm1462_vm13 }
0x11bd   : > { %v1458_v2 = vsub.f32 1.0, %v1457_v62 }
0x11be   : > { %1942 = vrcp.f32 %v1492_v24  ;;  %v1504_v23 = vand.u32 2147483648, %v1492_v24  ;;  %vm1498_vm9 = vweird.f32 %v1492_v24  ;;  %v1502_v46 = vand.u32 2147483647, %v1492_v24 }
0x11bf   : > { %v1459_v20 = vmul.f32 %v1939_v14, %v1458_v2 }
0x11c0   : > { %v1505_v40 = vor.u32 1.1754944e-38, %v1504_v23  ;;  %vm1503_vm11 = vcmp.eq.f32.partialorder %v1502_v46, 8.507059e+37 }
0x11c1   : > { %v1460_v25 = vadd.f32 %v1939_v14, %v1459_v20 }
0x11c3   : > { %v1464_v31 = vsel %vm1463_vm6, %v1939_v14, %v1460_v25 }
0x11c4   : > { %v2291_v11 = vsel %vm1466_vm7, %v1468_v17, %v1464_v31  ;;  %v1943_v41 = vpop.eup %1942 }
0x11c5   : > { %v1494_v44 = vmul.f32 %v1943_v41, %v1492_v24  ;;  %vm1499_vm8 = vweird.f32 %v1943_v41  ;;  %v1472_v48 = vmul.f32 %v2291_v11, %v2271_v12 }
0x11c6   : > { %vm1500_vm10 = vmor %vm1498_vm9, %vm1499_vm8 }
0x11c7   : > { %v1495_v3 = vsub.f32 1.0, %v1494_v44 }
0x11c9   : > { %v1496_v8 = vmul.f32 %v1943_v41, %v1495_v3 }
0x11cb   : > { %v1497_v45 = vadd.f32 %v1943_v41, %v1496_v8 }
0x11cd   : > { %v1501_v27 = vsel %vm1500_vm10, %v1943_v41, %v1497_v45 }
0x11ce   : > { %v1506_v42 = vsel %vm1503_vm11, %v1505_v40, %v1501_v27 }
0x11cf   : > { %v1509_v21 = vmul.f32 %v1506_v42, %v2276_v37 }
0x120a   : > { %v1475_v35 = vpop.permute.xlu2 %1474 }
0x120b   : > { %v1477_v36 = vmul.f32 %v1475_v35, %v2291_v11 }
0x120d   : > { %1479 = vrot.lane.b32.xlu1 %v1477_v36, %s1958_s8 }
0x1223   : > { %v1512_v43 = vpop.permute.xlu0 %1511 }
0x1224   : > { %v1514_v47 = vmul.f32 %v1512_v43, %v1506_v42 }
0x1226   : > { %1516 = vrot.lane.b32.xlu2 %v1514_v47, %s1958_s8 }
0x122e   : > { %565 = vrot.lane.b32.xlu2 %v2120_v10, %s1958_s8 }
0x1236   : > { %985 = vrot.lane.b32.xlu2 %v2213_v34, %s1958_s8 }
0x123e   : > { %1399 = vrot.lane.b32.xlu2 %v2282_v50, %s1958_s8 }
0x1246   : > { %697 = vrot.lane.b32.xlu2 %v2149_v18, %s1958_s8 }
0x124e   : > { %1115 = vrot.lane.b32.xlu2 %v2234_v38, %s1958_s8 }
0x127f   : > { %v1480_v51 = vpop.permute.xlu1 %1479 }
0x1280   : > { %v1517_v52 = vpop.permute.xlu2 %1516  ;;  %v1482_v10 = vadd.f32 %v1480_v51, %v1472_v48 }
0x1281   : > { %v1519_v53 = vadd.f32 %v1517_v52, %v1509_v21 }
0x1282   : > { %1944 = vtanh.f32 %v1482_v10 }
0x1283   : > { %1946 = vtanh.f32 %v1519_v53 }
0x1288   : > { %v1945_v34 = vpop.eup %1944  ;;  %v566_v50 = vpop.permute.xlu2 %565 }
0x1289   : > { %v1947_v54 = vpop.eup %1946  ;;  %569 = vst.msk [vmem:[#allocation4 + $0xe] sm:$0x3] %vm560_vm12, %v566_v50  ;;  %1485 = vrot.lane.b32.xlu0 %v1945_v34, %s1957_s7 }
0x128a   : > { %1522 = vrot.lane.b32.xlu1 %v1947_v54, %s1957_s7 }
0x1290   : > { %v986_v18 = vpop.permute.xlu2 %985 }
0x1291   : > { %989 = vst.msk [vmem:[#allocation4 + $0x8] sm:$0x3] %vm560_vm12, %v986_v18  ;;  %705 = vrot.lane.b32.xlu0 %v2151_v19, %s1958_s8 }
0x1292   : > { %845 = vrot.lane.b32.xlu1 %v2182_v30, %s1958_s8 }
0x1298   : > { %v1400_v38 = vpop.permute.xlu2 %1399  ;;  %v1553_v30 = vld [vmem:[#allocation4 + $0x8] sm:$0x3] }
0x1299   : > { %1403 = vst.msk [vmem:[#allocation4 + $0x2] sm:$0x3] %vm560_vm12, %v1400_v38  ;;  %1123 = vrot.lane.b32.xlu0 %v2236_v39, %s1958_s8  ;;  %v1556_v39 = vld [vmem:[#allocation4 + $0xe] sm:$0x3] }
0x129a   : > { %1261 = vrot.lane.b32.xlu1 %v2259_v33, %s1958_s8 }
0x12a0   : > { %v698_v12 = vpop.permute.xlu2 %697  ;;  %v1550_v19 = vld [vmem:[#allocation4 + $0x2] sm:$0x3] }
0x12a1   : > { %701 = vst.msk [vmem:[#allocation3 + $0x2] sm:$0x3] %vm560_vm12, %v698_v12 }
0x12a2   : > { %557 = vrot.lane.b32.xlu1 %v2118_v9, %s1958_s8 }
0x12a8   : > { %v1116_v37 = vpop.permute.xlu2 %1115 }
0x12a9   : > { %1119 = vst.msk [vmem:[#allocation3 + $0x8] sm:$0x3] %vm560_vm12, %v1116_v37 }
0x12aa   : > { %977 = vrot.lane.b32.xlu1 %v2211_v32, %s1958_s8 }
0x12b0   : > { %v1545_v7 = vld [vmem:[#allocation3 + $0x8] sm:$0x3] }
0x12b2   : > { %1391 = vrot.lane.b32.xlu1 %v2280_v49, %s1958_s8 }
0x12ba   : > { %1567 = vrot.lane.b32.xlu1 %v1550_v19, %s1958_s8 }
0x12c2   : > { %1573 = vrot.lane.b32.xlu1 %v1553_v30, %s1958_s8 }
0x12ca   : > { %1579 = vrot.lane.b32.xlu1 %v1556_v39, %s1958_s8 }
0x12fb   : > { %v1486_v33 = vpop.permute.xlu0 %1485 }
0x12fc   : > { %v1523_v9 = vpop.permute.xlu1 %1522  ;;  %v1488_v55 = vmul.f32 %v1486_v33, %v2291_v11 }
0x12fd   : > { %v1525_v57 = vmul.f32 %v1523_v9, %v1506_v42 }
0x12fe   : > { %1527 = vst [vmem:[#allocation1] ss:$4 sm:$0xff] %v1488_v55 }
0x1303   : > { %v706_v56 = vpop.permute.xlu0 %705 }
0x1304   : > { %v846_v32 = vpop.permute.xlu1 %845  ;;  %709 = vst.msk [vmem:[#allocation4 + $0xc] sm:$0x3] %vm560_vm12, %v706_v56 }
0x1305   : > { %849 = vst.msk [vmem:[#allocation4 + $0xa] sm:$0x3] %vm560_vm12, %v846_v32  ;;  %v1528_v49 = vld.sshfl [vmem:[#allocation1] sm:$0xff pattern:$0x73625140] }
0x1306   : > { %1529 = vrot.lane.b32.xlu2 %v1528_v49, %s1958_s8  ;;  %1535 = vst [vmem:[#allocation1] ss:$4 sm:$0xff] %v1525_v57 }
0x130b   : > { %v1124_v58 = vpop.permute.xlu0 %1123  ;;  %v1555_v17 = vld [vmem:[#allocation4 + $0xc] sm:$0x3] }
0x130c   : > { %v1262_v59 = vpop.permute.xlu1 %1261  ;;  %1127 = vst.msk [vmem:[#allocation4 + $0x6] sm:$0x3] %vm560_vm12, %v1124_v58  ;;  %v1554_v1 = vld [vmem:[#allocation4 + $0xa] sm:$0x3] }
0x130d   : > { %1265 = vst.msk [vmem:[#allocation4 + $0x4] sm:$0x3] %vm560_vm12, %v1262_v59  ;;  %v1536_v60 = vld.sshfl [vmem:[#allocation1] sm:$0xff pattern:$0x73625140] }
0x130e   : > { %1537 = vrot.lane.b32.xlu0 %v1536_v60, %s1958_s8 }
0x1313   : > { %v1552_v5 = vld [vmem:[#allocation4 + $0x6] sm:$0x3] }
0x1314   : > { %v558_v61 = vpop.permute.xlu1 %557  ;;  %v1551_v63 = vld [vmem:[#allocation4 + $0x4] sm:$0x3] }
0x1315   : > { %561 = vst.msk [vmem:[#allocation3] sm:$0x3] %vm560_vm12, %v558_v61  ;;  %1569 = vrot.lane.b32.xlu2 %v1551_v63, %s1958_s8 }
0x1316   : > { %837 = vrot.lane.b32.xlu0 %v2180_v29, %s1958_s8  ;;  %v1542_v29 = vld [vmem:[#allocation3 + $0x2] sm:$0x3] }
0x131c   : > { %v978_v0 = vpop.permute.xlu1 %977  ;;  %v1541_v45 = vld [vmem:[#allocation3] sm:$0x3] }
0x131d   : > { %981 = vst.msk [vmem:[#allocation3 + $0x6] sm:$0x3] %vm560_vm12, %v978_v0  ;;  %1575 = vrot.lane.b32.xlu2 %v1554_v1, %s1958_s8 }
0x131e   : > { %1253 = vrot.lane.b32.xlu0 %v2257_v16, %s1958_s8 }
0x1324   : > { %v1392_v4 = vpop.permute.xlu1 %1391  ;;  %v1544_v41 = vld [vmem:[#allocation3 + $0x6] sm:$0x3] }
0x1325   : > { %1395 = vst.msk [vmem:[#allocation3 + $0xc] sm:$0x3] %vm560_vm12, %v1392_v4 }
0x1326   : > { %1571 = vrot.lane.b32.xlu0 %v1552_v5, %s1958_s8 }
0x132c   : > { %v1568_v6 = vpop.permute.xlu1 %1567  ;;  %v1547_v27 = vld [vmem:[#allocation3 + $0xc] sm:$0x3] }
0x132d   : > { %v1590_v16 = vsel %vm322_vm0, %v1542_v29, %v1568_v6 }
0x132e   : > { %1599 = vst.msk [vmem:[%s2355_s11 + $0x2] sm:$0x3] %vm1597_vm14, %v1590_v16 }
0x1334   : > { %v1574_v13 = vpop.permute.xlu1 %1573 }
0x1335   : > { %v1593_v14 = vsel %vm322_vm0, %v1545_v7, %v1574_v13 }
0x1336   : > { %1602 = vst.msk [vmem:[%s2355_s11 + $0x8] sm:$0x3] %vm1597_vm14, %v1593_v14 }
0x133c   : > { %v1580_v62 = vpop.permute.xlu1 %1579 }
0x1360   : > { %v1530_v15 = vpop.permute.xlu2 %1529 }
0x1361   : > { %1533 = vst.msk [vmem:[#allocation3 + $0xe] sm:$0x3] %vm560_vm12, %v1530_v15 }
0x1368   : > { %v1548_v2 = vld [vmem:[#allocation3 + $0xe] sm:$0x3] }
0x1369   : > { %v1596_v20 = vsel %vm322_vm0, %v1548_v2, %v1580_v62 }
0x136a   : > { %1605 = vst.msk [vmem:[%s2355_s11 + $0xe] sm:$0x3] %vm1597_vm14, %v1596_v20 }
0x136f   : > { %v1570_v26 = vpop.permute.xlu2 %1569 }
0x1377   : > { %v1576_v11 = vpop.permute.xlu2 %1575 }
0x1380   : > { %v1538_v22 = vpop.permute.xlu0 %1537 }
0x1381   : > { %1540 = vst.msk [vmem:[#allocation4] sm:$0x3] %vm560_vm12, %v1538_v22 }
0x1388   : > { %v838_v24 = vpop.permute.xlu0 %837  ;;  %v1549_v25 = vld [vmem:[#allocation4] sm:$0x3] }
0x1389   : > { %841 = vst.msk [vmem:[#allocation3 + $0x4] sm:$0x3] %vm560_vm12, %v838_v24  ;;  %1565 = vrot.lane.b32.xlu0 %v1549_v25, %s1958_s8 }
0x1390   : > { %v1543_v28 = vld [vmem:[#allocation3 + $0x4] sm:$0x3]  ;;  %v1254_v31 = vpop.permute.xlu0 %1253 }
0x1391   : > { %v1591_v35 = vsel %vm322_vm0, %v1543_v28, %v1570_v26  ;;  %1257 = vst.msk [vmem:[#allocation3 + $0xa] sm:$0x3] %vm560_vm12, %v1254_v31  ;;  %1577 = vrot.lane.b32.xlu0 %v1555_v17, %s1958_s8 }
0x1392   : > { %1600 = vst.msk [vmem:[%s2355_s11 + $0x4] sm:$0x3] %vm1597_vm14, %v1591_v35 }
0x1398   : > { %v1546_v36 = vld [vmem:[#allocation3 + $0xa] sm:$0x3]  ;;  %v1572_v44 = vpop.permute.xlu0 %1571 }
0x1399   : > { %v1594_v3 = vsel %vm322_vm0, %v1546_v36, %v1576_v11  ;;  %v1592_v8 = vsel %vm322_vm0, %v1544_v41, %v1572_v44 }
0x139a   : > { %1603 = vst.msk [vmem:[%s2355_s11 + $0xa] sm:$0x3] %vm1597_vm14, %v1594_v3 }
0x139b   : > { %1601 = vst.msk [vmem:[%s2355_s11 + $0x6] sm:$0x3] %vm1597_vm14, %v1592_v8 }
0x13fb   : > { %v1566_v23 = vpop.permute.xlu0 %1565 }
0x13fc   : > { %v1589_v46 = vsel %vm322_vm0, %v1541_v45, %v1566_v23 }
0x13fd   : > { %1598 = vst.msk [vmem:[%s2355_s11] sm:$0x3] %vm1597_vm14, %v1589_v46 }
0x1403   : > { %v1578_v40 = vpop.permute.xlu0 %1577 }
0x1404   : > { %v1595_v43 = vsel %vm322_vm0, %v1547_v27, %v1578_v40 }
0x1405   : > { %1604 = vst.msk [vmem:[%s2355_s11 + $0xc] sm:$0x3] %vm1597_vm14, %v1595_v43 }
0x1406 PF: > { %s14_s15 = sadd.s32 1, %s1954_s15  }
0x1407   : > { %p11_p4 = scmp.ge.s32.totalorder %s14_s15, 5  }
0x1409   :  { %13 = sbr.rel (!%p11_p4) target bundleno = 1 (0x1), region = 103 }

// kernel: ensemble_forward.4
= control target key start
LH: loop header
LB: loop body
LE: loop exit
PB: predicated region body
PF: predicated region fallthrough
CT: control target
= control target key end

     0   :  { %9 = vsyncpa [#allocation6], 0  ;;  %s2761_s0 = inlined_call_operand.vmem [shape: f32[3,8,2,64], index: 0, kind: input, shape index: {}]   ;;  %s2762_s1 = inlined_call_operand.vmem [shape: bf16[3,64,256], index: 1, kind: input, shape index: {}]   ;;  %s2763_s2 = inlined_call_operand.hbm [shape: bf16[3,64,256], index: 2, kind: input, shape index: {}]   ;;  %s2764_s3 = inlined_call_operand.hbm [shape: f32[3,1,256], index: 3, kind: input, shape index: {}]   ;;  %s2765_s4 = inlined_call_operand.vmem [shape: f32[3,8,2,64], index: 4, kind: output, shape index: {}]  }
   0x1   :  { %11 = vsyncpa [#allocation6 + $0x1], 0 }
   0x2   :  { %12 = vsyncpa [#allocation8], 0 }
   0x3   :  { %14 = vsyncpa [#allocation8 + $0x1], 0  ;;  %s2230_s15 = smov 0   ;;  %s2232_s16 = smov 0  }
   0x4   :  { %s2234_s17 = smov 0   ;;  %s2236_s18 = smov 0  }
   0x5 LB: > { %s2249_s19 = sadd.s32 4294967295, %s2198_s18   ;;  %s2252_s20 = sadd.s32 1, %s2198_s18   ;;  %s2198_s18 = sphi %s2236_s18, %s2773_s18   ;;  %s2194_s17 = sphi %s2234_s17, %s2772_s17   ;;  %s2190_s16 = sphi %s2232_s16, %s2771_s16   ;;  %s2186_s15 = sphi %s2230_s15, %s2770_s15  }
   0x6   : > { %s76_s21 = ssub.s32 %s2198_s18, %s2252_s20  ;;  %s79_s22 = sadd.s32 1, %s2194_s17 }
   0x7   : > { %p77_p0 = scmp.eq.s32.totalorder %s76_s21, 0  ;;  %p86_p1 = scmp.ne.s32.totalorder %s2194_s17, %s2190_s16 }
   0x8   : > { %p87_p2 = scmp.eq.s32.totalorder %s2198_s18, 0  ;;  %p92_p3 = scmp.ne.s32.totalorder %s2190_s16, %s2186_s15 }
   0x9   : > { %s2262_s23 = scalar_select %p77_p0, %s2194_s17, %s79_s22  }
   0xa   : > { %p2264_p4 = por %p87_p2, %p86_p1  ;;  %p93_p5 = scmp.eq.s32.totalorder %s2249_s19, 0 }
   0xb   : > { %p1934_p6 = scmp.lt.s32.totalorder %s2198_s18, 3  ;;  %s2275_s26 = sand.u32 1, %s2194_s17  }
   0xc   : > { %p2270_p7 = por %p93_p5, %p92_p3  ;;  %s1791_s27 = sshll.u32 %s2275_s26, 6 }
   0xd   : > { %s1903_s28 = sshll.u32 %s2198_s18, 6  ;;  %s188_s6 = scalar_lea.vmem [#allocation5], %s1791_s27 }
   0xe   : > { %s193_s5 = scalar_lea.hbm %s2763_s2, %s1903_s28  ;;  %s196_s7 = sshll.u32 %s188_s6, 4  ;;  %s197_s7 = int_to_ptr.vmem [resolvable:$true] %s196_s7 }
   0xf   : > { %s194_s8 = sshll.u32 %s193_s5, 4  ;;  %p2284_p8 = pnand %p1934_p6, %p2264_p4  ;;  %s195_s8 = int_to_ptr.hbm [resolvable:$true] %s194_s8 }
  0x10   : > { %p1796_p9 = scmp.ge.s32.totalorder %s2198_s18, 1  ;;  %s185_s10 = scalar_lea.sflag [#allocation6], %s2275_s26 }
  0x11   : > { %s2100_s11 = sshra.s32 %s195_s8, 4  ;;  %p2104_p11 = pneg %p2284_p8  ;;  %s2101_s11 = int_to_ptr.hbm [resolvable:$true] %s2100_s11 }
  0x12   : > { %s2102_s12 = scalar_lea.hbm %s2101_s11, 64  ;;  %s2107_s15 = scalar_lea.hbm %s2763_s2, 192 }
  0x13   : > { %p2103_p10 = scmp.ne.s32.totalorder %s2101_s11, %s2102_s12  ;;  %p2108_p0 = scmp.lt.s32.totalorder %s2101_s11, %s2763_s2 }
  0x14   : > { %p2109_p1 = scmp.lt.s32.totalorder %s2107_s15, %s2102_s12 }
  0x15   : > { %p2105_p12 = pnand %p2104_p11, %p2103_p10 }
  0x16   : > { %p2110_p2 = por %p2109_p1, %p2108_p0 }
  0x17   : > { %p2106_p13 = pneg %p2105_p12 }
  0x19   : > { %p2111_p3 = pnand %p2110_p2, %p2106_p13 }
  0x1b   : > { %2114 = shalt.err (!%p2111_p3)
}
  0x1c   : > { %s2200_s24 = smov 128   ;;  %s2201_s27 = smov 8  }
  0x1d   : > { %1930 = dma.hbm_to_vmem [thread:$0]  (!%p2284_p8), %s195_s8, 1024, %s197_s7, %s185_s10, %s2200_s24, %s2200_s24, %s2201_s27  }
  0x1e   : > { %p223_p4 = scmp.lt.s32.totalorder %s2198_s18, 4  ;;  %s1794_s28 = sshll.u32 %s2275_s26, 1 }
  0x1f   : > { %s1795_s29 = sshll.u32 %s2198_s18, 1  ;;  %s210_s12 = scalar_lea.vmem [#allocation7], %s1794_s28 }
  0x20   : > { %p2308_p5 = pnand %p1796_p9, %p223_p4  ;;  %s214_s11 = scalar_lea.hbm %s2764_s3, %s1795_s29 }
  0x21   : > { %s218_s13 = sshll.u32 %s210_s12, 4  ;;  %s216_s14 = sshll.u32 %s214_s11, 4  ;;  %s219_s13 = int_to_ptr.vmem [resolvable:$true] %s218_s13  ;;  %s217_s14 = int_to_ptr.hbm [resolvable:$true] %s216_s14 }
  0x22   : > { %s207_s15 = scalar_lea.sflag [#allocation8], %s2275_s26  ;;  %s2130_s7 = sshra.s32 %s217_s14, 4  ;;  %s2131_s7 = int_to_ptr.hbm [resolvable:$true] %s2130_s7 }
  0x23   : > { %s2132_s8 = scalar_lea.hbm %s2131_s7, 2  ;;  %s2137_s21 = scalar_lea.hbm %s2764_s3, 6 }
  0x24   : > { %p2133_p6 = scmp.ne.s32.totalorder %s2131_s7, %s2132_s8  ;;  %p2138_p12 = scmp.lt.s32.totalorder %s2131_s7, %s2764_s3 }
  0x25   : > { %p2139_p13 = scmp.lt.s32.totalorder %s2137_s21, %s2132_s8 }
  0x26   : > { %p2135_p9 = pnand %p2133_p6, %p2104_p11 }
  0x27   : > { %p2140_p0 = por %p2139_p13, %p2138_p12 }
  0x28   : > { %p2136_p10 = pneg %p2135_p9 }
  0x2a   : > { %p2141_p1 = pnand %p2140_p0, %p2136_p10 }
  0x2c   : > { %2144 = shalt.err (!%p2141_p1)
}
  0x2d   : > { %1933 = dma.hbm_to_vmem [thread:$0]  (!%p2284_p8), %s217_s14, 32, %s219_s13, %s207_s15  }
  0x2e   : > { %227 = sbr.rel (%p2308_p5) target bundleno = 5172 (0x1434), region = 36  ;;  %s229_s26 = sand.u32 (!%p2308_p5), 1, %s2190_s16  }
  0x2f   : > { %s1797_s27 = sshll.u32 (!%p2308_p5), %s229_s26, 6  ;;  %s230_s28 = scalar_lea.sflag (!%p2308_p5), [#allocation6], %s229_s26 }
  0x30   : > { %s2330_s29 = scalar_lea.vmem (!%p2308_p5), [#allocation5], %s1797_s27 }
  0x33   : > { %2177 = dma.done.wait (%p2270_p7), %s230_s28, 1024  }
  0x34   : > { %2179 = vsyncadd (%p2270_p7), %s230_s28, 4294966272  ;;  %s1798_s5 = sshll.u32 %s229_s26, 1  ;;  %s240_s6 = scalar_lea.sflag [#allocation8], %s229_s26 }
  0x35   : > { %s2336_s9 = scalar_lea.vmem [#allocation7], %s1798_s5 }
  0x36   : > { %2181 = dma.done.wait (%p2270_p7), %s240_s6, 32  }
  0x37   : > { %2183 = vsyncadd (%p2270_p7), %s240_s6, 4294967264  ;;  %p284_p8 = scmp.lt.s32.totalorder %s2249_s19, 2  ;;  %v1865_v5 = vld [vmem:[%s2330_s29 + $0x30] sm:$0xf]  ;;  %v1922_v6 = vld [vmem:[%s2330_s29 + $0x34] sm:$0xf0] }
  0x38   : > { %v2359_v8 = vor.u32 %v1922_v6, %v1865_v5  ;;  %v1857_v14 = vld [vmem:[%s2330_s29 + $0x20] sm:$0xf]  ;;  %v1920_v15 = vld [vmem:[%s2330_s29 + $0x24] sm:$0xf0]  ;;  %v1849_v22 = vld [vmem:[%s2330_s29 + $0x10] sm:$0xf] }
  0x39   : > { %s2775_s19 = smov (!%p284_p8, %s2249_s19), 2  ;;  %v2368_v17 = vor.u32 %v1920_v15, %v1857_v14  ;;  %v1918_v23 = vld [vmem:[%s2330_s29 + $0x14] sm:$0xf0]  ;;  %v1921_v24 = vld [vmem:[%s2330_s29 + $0x34] sm:$0xf]  ;;  %v2202_v55 = vmov 0  }
  0x3a   : > { %s1905_s30 = sshll.u32 %s2775_s19, 6  ;;  %s1904_s25 = sshll.u32 %s2775_s19, 4  ;;  %517 = vmatpush.bf16.msra.mxu2 %v2359_v8  ;;  %v1867_v25 = vld [vmem:[%s2330_s29 + $0x38] sm:$0xf0]  ;;  %v2390_v31 = vor.u32 %v1918_v23, %v1849_v22  ;;  %v1841_v42 = vld [vmem:[%s2330_s29] sm:$0xf] }
  0x3b   : > { %s2350_s13 = scalar_lea.vmem %s2762_s1, %s1905_s30  ;;  %s2381_s7 = scalar_lea.vmem %s2761_s0, %s1904_s25  ;;  %v2385_v27 = vor.u32 %v1921_v24, %v1867_v25  ;;  %v1916_v43 = vld [vmem:[%s2330_s29 + $0x4] sm:$0xf0]  ;;  %v1919_v46 = vld [vmem:[%s2330_s29 + $0x24] sm:$0xf]  ;;  %v1859_v47 = vld [vmem:[%s2330_s29 + $0x28] sm:$0xf0] }
  0x3c   : > { %v1831_v0 = vld [vmem:[%s2350_s13 + $0x30] sm:$0xf]  ;;  %v1914_v1 = vld [vmem:[%s2350_s13 + $0x34] sm:$0xf0]  ;;  %v1913_v2 = vld [vmem:[%s2350_s13 + $0x34] sm:$0xf]  ;;  %v2405_v45 = vor.u32 %v1916_v43, %v1841_v42  ;;  %v2409_v48 = vor.u32 %v1919_v46, %v1859_v47  ;;  %s2716_s22 = scalar_lea.vmem %s2765_s4, %s1904_s25 }
  0x3d   : > { %v1832_v3 = vor.u32 %v1914_v1, %v1831_v0  ;;  %v1833_v4 = vld [vmem:[%s2350_s13 + $0x38] sm:$0xf0]  ;;  %v1823_v9 = vld [vmem:[%s2350_s13 + $0x20] sm:$0xf]  ;;  %v1912_v10 = vld [vmem:[%s2350_s13 + $0x24] sm:$0xf0]  ;;  %530 = vmatpush.bf16.msra.mxu3 %v2385_v27 }
  0x3e   : > { %v1836_v7 = vor.u32 %v1913_v2, %v1833_v4  ;;  %v1911_v11 = vld [vmem:[%s2350_s13 + $0x24] sm:$0xf]  ;;  %v1824_v12 = vor.u32 %v1912_v10, %v1823_v9  ;;  %v1825_v13 = vld [vmem:[%s2350_s13 + $0x28] sm:$0xf0]  ;;  %v1815_v18 = vld [vmem:[%s2350_s13 + $0x10] sm:$0xf]  ;;  %518 = vmatpush.bf16.msra.mxu2 %v2368_v17 }
  0x3f   : > { %398 = vmatpush.bf16.msra.mxu0 %v1832_v3  ;;  %v1828_v16 = vor.u32 %v1911_v11, %v1825_v13  ;;  %v1910_v19 = vld [vmem:[%s2350_s13 + $0x14] sm:$0xf0]  ;;  %v1909_v20 = vld [vmem:[%s2350_s13 + $0x14] sm:$0xf]  ;;  %v1817_v21 = vld [vmem:[%s2350_s13 + $0x18] sm:$0xf0] }
  0x40   : > { %412 = vmatpush.bf16.msra.mxu1 %v1836_v7  ;;  %v1816_v26 = vor.u32 %v1910_v19, %v1815_v18  ;;  %v1807_v28 = vld [vmem:[%s2350_s13] sm:$0xf]  ;;  %v1908_v29 = vld [vmem:[%s2350_s13 + $0x4] sm:$0xf0]  ;;  %v1820_v30 = vor.u32 %v1909_v20, %v1817_v21  ;;  %v1907_v32 = vld [vmem:[%s2350_s13 + $0x4] sm:$0xf] }
  0x41   : > { %v300_v33 = vld [vmem:[%s2381_s7] sm:$0x3]  ;;  %v301_v34 = vld [vmem:[%s2381_s7 + $0x2] sm:$0x3]  ;;  %v1809_v35 = vld [vmem:[%s2350_s13 + $0x8] sm:$0xf0]  ;;  %v1808_v40 = vor.u32 %v1908_v29, %v1807_v28  ;;  %531 = vmatpush.bf16.msra.mxu3 %v2409_v48 }
  0x42   : > { %v302_v36 = vld [vmem:[%s2381_s7 + $0x4] sm:$0x3]  ;;  %v303_v37 = vld [vmem:[%s2381_s7 + $0x6] sm:$0x3]  ;;  %v304_v38 = vld [vmem:[%s2381_s7 + $0x8] sm:$0x3]  ;;  %519 = vmatpush.bf16.msra.mxu2 %v2390_v31  ;;  %v1812_v44 = vor.u32 %v1907_v32, %v1809_v35 }
  0x43   : > { %399 = vmatpush.bf16.msra.mxu0 %v1824_v12  ;;  %v305_v39 = vld [vmem:[%s2381_s7 + $0xa] sm:$0x3]  ;;  %316 = vst [vmem:[#allocation1] ss:$4 sm:$0xff] %v300_v33  ;;  %v306_v41 = vld [vmem:[%s2381_s7 + $0xc] sm:$0x3] }
  0x44   : > { %413 = vmatpush.bf16.msra.mxu1 %v1828_v16  ;;  %318 = vst [vmem:[#allocation1 + $0x1] ss:$4 sm:$0xff] %v301_v34  ;;  %v1917_v49 = vld [vmem:[%s2330_s29 + $0x14] sm:$0xf]  ;;  %v1851_v50 = vld [vmem:[%s2330_s29 + $0x18] sm:$0xf0] }
  0x45   : > { %320 = vst [vmem:[#allocation1 + $0x2] ss:$4 sm:$0xff] %v302_v36  ;;  %v307_v51 = vld [vmem:[%s2381_s7 + $0xe] sm:$0x3]  ;;  %v2415_v52 = vor.u32 %v1917_v49, %v1851_v50  ;;  %v1843_v54 = vld [vmem:[%s2330_s29 + $0x8] sm:$0xf0] }
  0x46   : > { %322 = vst [vmem:[#allocation1 + $0x3] ss:$4 sm:$0xff] %v303_v37  ;;  %520 = vmatpush.bf16.msra.mxu2 %v2405_v45  ;;  %v1915_v53 = vld [vmem:[%s2330_s29 + $0x4] sm:$0xf]  ;;  %vm390_vm0 = vcmask 523264   ;;  %vm428_vm1 = vcmask 1041408  }
  0x47   : > { %400 = vmatpush.bf16.msra.mxu0 %v1816_v26  ;;  %324 = vst [vmem:[#allocation1 + $0x20] ss:$4 sm:$0xff] %v304_v38  ;;  %532 = vmatpush.bf16.msra.mxu3 %v2415_v52  ;;  %v2424_v56 = vor.u32 %v1915_v53, %v1843_v54  ;;  %v344_v60 = vld [vmem:[%s2336_s9] sm:$0x3]  ;;  %vm430_vm2 = vcmask 1043458   ;;  %vm433_vm3 = vcmask 1045508  }
  0x48   : > { %414 = vmatpush.bf16.msra.mxu1 %v1820_v30  ;;  %326 = vst [vmem:[#allocation1 + $0x21] ss:$4 sm:$0xff] %v305_v39  ;;  %v346_v61 = vperm.slane %v344_v60, 0  ;;  %v347_v62 = vperm.slane %v344_v60, 1  ;;  %vm436_vm4 = vcmask 1045504   ;;  %s2203_s8 = smov 64  }
  0x49   : > { %328 = vst [vmem:[#allocation1 + $0x22] ss:$4 sm:$0xff] %v306_v41  ;;  %521 = vmatmul.bf16.vlgmr.msra.gmra.mxu2 %v2202_v55  ;;  %s2204_s18 = smov 32   ;;  %vm647_vm13 = vcmask 261120  }
  0x4a   : > { %330 = vst [vmem:[#allocation1 + $0x23] ss:$4 sm:$0xff] %v307_v51  ;;  %797 = vmatpush.bf16.msrb.mxu2 %v2359_v8 }
  0x4b   : > { %401 = vmatpush.bf16.msra.mxu0 %v1808_v40  ;;  %533 = vmatpush.bf16.msra.mxu3 %v2424_v56 }
  0x4c   : > { %415 = vmatpush.bf16.msra.mxu1 %v1812_v44 }
  0x4d   : > { %v331_v57 = vld.sshfl [vmem:[#allocation1] sm:$0xff pattern:$0x73625140] }
  0x4e   : > { %798 = vmatpush.bf16.msrb.mxu2 %v2368_v17  ;;  %534 = vmatmul.bf16.vlgmr.msra.gmra.mxu3 %v2202_v55 }
  0x4f   : > { %657 = vmatpush.bf16.msrb.mxu0 %v2359_v8  ;;  %810 = vmatpush.bf16.msrb.mxu3 %v2385_v27 }
  0x50   : > { %670 = vmatpush.bf16.msrb.mxu1 %v2385_v27 }
  0x51   : > { %v332_v58 = vld.sshfl [vmem:[#allocation1 + $0x20] sm:$0xff pattern:$0x73625140] }
  0x52   : > { %v335_v59 = vpack.c.bf16 %v332_v58, %v331_v57  ;;  %799 = vmatpush.bf16.msrb.mxu2 %v2390_v31 }
  0x53   : > { %658 = vmatpush.bf16.msrb.mxu0 %v2368_v17  ;;  %811 = vmatpush.bf16.msrb.mxu3 %v2409_v48 }
  0x54   : > { %671 = vmatpush.bf16.msrb.mxu1 %v2409_v48  ;;  %1837 = vmatmul.msk.bf16.vlgmr.msra.gmra.mxu0 %vm390_vm0, %v335_v59 }
  0x55   : > { %1838 = vmatmul.msk.bf16.vlgmr.msra.gmra.mxu1 %vm390_vm0, %v335_v59 }
  0x56   : > { %800 = vmatpush.bf16.msrb.mxu2 %v2405_v45 }
  0x57   : > { %659 = vmatpush.bf16.msrb.mxu0 %v2390_v31  ;;  %812 = vmatpush.bf16.msrb.mxu3 %v2415_v52 }
  0x58   : > { %672 = vmatpush.bf16.msrb.mxu1 %v2415_v52 }
  0x5a   : > { %1077 = vmatpush.bf16.msra.mxu2 %v2359_v8 }
  0x5b   : > { %660 = vmatpush.bf16.msrb.mxu0 %v2405_v45  ;;  %813 = vmatpush.bf16.msrb.mxu3 %v2424_v56 }
  0x5c   : > { %673 = vmatpush.bf16.msrb.mxu1 %v2424_v56 }
  0x5e   : > { %1078 = vmatpush.bf16.msra.mxu2 %v2368_v17 }
  0x5f   : > { %937 = vmatpush.bf16.msra.mxu0 %v2359_v8  ;;  %1090 = vmatpush.bf16.msra.mxu3 %v2385_v27 }
  0x60   : > { %950 = vmatpush.bf16.msra.mxu1 %v2385_v27 }
  0x62   : > { %1079 = vmatpush.bf16.msra.mxu2 %v2390_v31 }
  0x63   : > { %938 = vmatpush.bf16.msra.mxu0 %v2368_v17  ;;  %1091 = vmatpush.bf16.msra.mxu3 %v2409_v48 }
  0x64   : > { %951 = vmatpush.bf16.msra.mxu1 %v2409_v48 }
  0x66   : > { %1080 = vmatpush.bf16.msra.mxu2 %v2405_v45 }
  0x67   : > { %939 = vmatpush.bf16.msra.mxu0 %v2390_v31  ;;  %1092 = vmatpush.bf16.msra.mxu3 %v2415_v52 }
  0x68   : > { %952 = vmatpush.bf16.msra.mxu1 %v2415_v52 }
  0x6b   : > { %940 = vmatpush.bf16.msra.mxu0 %v2405_v45  ;;  %1093 = vmatpush.bf16.msra.mxu3 %v2424_v56 }
  0x6c   : > { %953 = vmatpush.bf16.msra.mxu1 %v2424_v56 }
  0xcc   : > { %v522_v63 = vpop.f32.mrf.mxu2 }
  0xd1   : > { %v403_v0 = vpop.f32.mrf.mxu0  ;;  %v535_v10 = vpop.f32.mrf.mxu3 }
  0xd2   : > { %v417_v1 = vpop.f32.mrf.mxu1  ;;  %v404_v2 = vadd.f32 %v403_v0, %v346_v61 }
  0xd3   : > { %v418_v3 = vadd.f32 %v417_v1, %v347_v62 }
  0xd4   : > { %v524_v14 = vpop.f32.mrf.mxu2 }
  0xd5   : > { %v426_v4 = vrot.slane %v418_v3, 6 }
  0xd7   : > { %v429_v5 = vsel %vm428_vm1, %v404_v2, %v426_v4  ;;  %v431_v6 = vsel %vm430_vm2, %v404_v2, %v426_v4  ;;  %v434_v7 = vsel %vm433_vm3, %v404_v2, %v426_v4  ;;  %v437_v9 = vsel %vm436_vm4, %v426_v4, %v404_v2 }
  0xd8   : > { %v432_v11 = vrot.slane %v431_v6, 2  ;;  %v435_v12 = vrot.slane %v434_v7, 4  ;;  %v438_v13 = vrot.slane %v437_v9, 6  ;;  %454 = vst [vmem:[#allocation2] sm:$0xf] %v429_v5 }
  0xd9   : > { %v405_v15 = vpop.f32.mrf.mxu0  ;;  %v537_v26 = vpop.f32.mrf.mxu3 }
  0xda   : > { %455 = vst [vmem:[#allocation2 + $0x4] sm:$0xf] %v432_v11  ;;  %v419_v16 = vpop.f32.mrf.mxu1  ;;  %v406_v19 = vadd.f32 %v405_v15, %v346_v61 }
  0xdb   : > { %456 = vst [vmem:[#allocation2 + $0x8] sm:$0xf] %v435_v12  ;;  %v420_v18 = vadd.f32 %v419_v16, %v347_v62 }
  0xdc   : > { %457 = vst [vmem:[#allocation2 + $0xc] sm:$0xf] %v438_v13 }
  0xdd   : > { %v427_v20 = vrot.slane %v420_v18, 6 }
  0xdf   : > { %v439_v21 = vsel %vm428_vm1, %v406_v19, %v427_v20  ;;  %v440_v22 = vsel %vm430_vm2, %v406_v19, %v427_v20  ;;  %v442_v23 = vsel %vm433_vm3, %v406_v19, %v427_v20  ;;  %v444_v24 = vsel %vm436_vm4, %v427_v20, %v406_v19  ;;  %v539_v25 = vld [vmem:[#allocation2] sm:$0xf] }
  0xe0   : > { %v441_v28 = vrot.slane %v440_v22, 2  ;;  %v443_v29 = vrot.slane %v442_v23, 4  ;;  %v445_v30 = vrot.slane %v444_v24, 6  ;;  %458 = vst [vmem:[#allocation2 + $0x10] sm:$0xf] %v439_v21  ;;  %v540_v32 = vadd.f32 %v539_v25, %v522_v63 }
  0xe2   : > { %459 = vst [vmem:[#allocation2 + $0x14] sm:$0xf] %v441_v28  ;;  %1972 = vtanh.f32 %v540_v32  ;;  %v1871_v38 = vmul.f32 -1.442695, %v540_v32 }
  0xe3   : > { %460 = vst [vmem:[#allocation2 + $0x18] sm:$0xf] %v443_v29 }
  0xe4   : > { %461 = vst [vmem:[#allocation2 + $0x1c] sm:$0xf] %v445_v30 }
  0xe8   : > { %v1973_v33 = vpop.eup %1972 }
  0xe9   : > { %569 = vrot.lane.b32.xlu0 %v1973_v33, %s2203_s8 }
  0xea   : > { %v683_v32 = vld [vmem:[#allocation2 + $0x18] sm:$0xf] }
  0xeb   : > { %v542_v34 = vld [vmem:[#allocation2 + $0x1c] sm:$0xf]  ;;  %v685_v33 = vrot.slane %v683_v32, 2 }
  0xec   : > { %v544_v35 = vrot.slane %v542_v34, 2 }
  0xee   : > { %v546_v36 = vadd.f32 %v544_v35, %v535_v10  ;;  %v680_v35 = vld [vmem:[#allocation2 + $0x4] sm:$0xf] }
  0xf0   : > { %1974 = vtanh.f32 %v546_v36  ;;  %v1872_v41 = vmul.f32 -1.442695, %v546_v36 }
  0xf1   : > { %1976 = vpow2.f32 %v1871_v38 }
  0xf6   : > { %v1975_v37 = vpop.eup %1974 }
  0xf7   : > { %606 = vrot.lane.b32.xlu0 %v1975_v37, %s2203_s8  ;;  %v1977_v39 = vpop.eup %1976 }
  0xf8   : > { %v550_v40 = vadd.f32 1.0, %v1977_v39 }
  0xfa   : > { %1978 = vrcp.f32 %v550_v40  ;;  %v562_v53 = vand.u32 2147483648, %v550_v40  ;;  %vm556_vm6 = vweird.f32 %v550_v40  ;;  %v560_v54 = vand.u32 2147483647, %v550_v40 }
  0xfb   : > { %1980 = vpow2.f32 %v1872_v41 }
  0xfc   : > { %v563_v58 = vor.u32 1.1754944e-38, %v562_v53  ;;  %vm561_vm8 = vcmp.eq.f32.partialorder %v560_v54, 8.507059e+37 }
 0x100   : > { %v1979_v42 = vpop.eup %1978 }
 0x101   : > { %v1981_v43 = vpop.eup %1980  ;;  %v552_v44 = vmul.f32 %v1979_v42, %v550_v40  ;;  %vm557_vm5 = vweird.f32 %v1979_v42 }
 0x102   : > { %v587_v46 = vadd.f32 1.0, %v1981_v43  ;;  %vm558_vm7 = vmor %vm556_vm6, %vm557_vm5 }
 0x103   : > { %v553_v47 = vsub.f32 1.0, %v552_v44 }
 0x104   : > { %1982 = vrcp.f32 %v587_v46  ;;  %v599_v1 = vand.u32 2147483648, %v587_v46  ;;  %vm593_vm10 = vweird.f32 %v587_v46  ;;  %v597_v2 = vand.u32 2147483647, %v587_v46 }
 0x105   : > { %v554_v49 = vmul.f32 %v1979_v42, %v553_v47 }
 0x106   : > { %v600_v4 = vor.u32 1.1754944e-38, %v599_v1  ;;  %vm598_vm12 = vcmp.eq.f32.partialorder %v597_v2, 8.507059e+37 }
 0x107   : > { %v555_v51 = vadd.f32 %v1979_v42, %v554_v49 }
 0x109   : > { %v559_v57 = vsel %vm558_vm7, %v1979_v42, %v555_v51 }
 0x10a   : > { %v1983_v50 = vpop.eup %1982  ;;  %v564_v61 = vsel %vm561_vm8, %v563_v58, %v559_v57 }
 0x10b   : > { %v589_v55 = vmul.f32 %v1983_v50, %v587_v46  ;;  %vm594_vm9 = vweird.f32 %v1983_v50  ;;  %v567_v9 = vmul.f32 0.0, %v564_v61 }
 0x10c   : > { %vm595_vm11 = vmor %vm593_vm10, %vm594_vm9 }
 0x10d   : > { %v590_v59 = vsub.f32 1.0, %v589_v55 }
 0x10f   : > { %v591_v63 = vmul.f32 %v1983_v50, %v590_v59 }
 0x111   : > { %v592_v0 = vadd.f32 %v1983_v50, %v591_v63 }
 0x113   : > { %v596_v3 = vsel %vm595_vm11, %v1983_v50, %v592_v0 }
 0x114   : > { %v601_v5 = vsel %vm598_vm12, %v600_v4, %v596_v3 }
 0x115   : > { %v604_v13 = vmul.f32 0.0, %v601_v5 }
 0x15b   : > { %v570_v60 = vpop.permute.xlu0 %569 }
 0x15c   : > { %v572_v62 = vmul.f32 %v570_v60, %v564_v61 }
 0x15e   : > { %574 = vrot.lane.b32.xlu1 %v572_v62, %s2204_s18 }
 0x169   : > { %v607_v6 = vpop.permute.xlu0 %606 }
 0x16a   : > { %v609_v7 = vmul.f32 %v607_v6, %v601_v5 }
 0x16c   : > { %611 = vrot.lane.b32.xlu1 %v609_v7, %s2204_s18 }
 0x1d0   : > { %v575_v10 = vpop.permute.xlu1 %574 }
 0x1d1   : > { %v2471_v11 = vadd.f32 %v575_v10, %v567_v9 }
 0x1d3   : > { %1984 = vtanh.f32 %v2471_v11 }
 0x1d9   : > { %v1985_v12 = vpop.eup %1984 }
 0x1da   : > { %580 = vrot.lane.b32.xlu2 %v1985_v12, %s2203_s8 }
 0x1de   : > { %v612_v14 = vpop.permute.xlu1 %611 }
 0x1df   : > { %v2475_v15 = vadd.f32 %v612_v14, %v604_v13 }
 0x1e1   : > { %1986 = vtanh.f32 %v2475_v15 }
 0x1e7   : > { %v1987_v16 = vpop.eup %1986 }
 0x1e8   : > { %617 = vrot.lane.b32.xlu2 %v1987_v16, %s2203_s8 }
 0x234   : > { %v581_v18 = vpop.permute.xlu2 %580 }
 0x235   : > { %v583_v19 = vmul.f32 %v581_v18, %v564_v61 }
 0x237   : > { %622 = vst [vmem:[#allocation1] ss:$4 sm:$0xff] %v583_v19 }
 0x23e   : > { %v2479_v22 = vld.sshfl [vmem:[#allocation1] sm:$0xff pattern:$0x73625140] }
 0x242   : > { %v618_v20 = vpop.permute.xlu2 %617 }
 0x243   : > { %v620_v21 = vmul.f32 %v618_v20, %v601_v5 }
 0x245   : > { %630 = vst [vmem:[#allocation1] ss:$4 sm:$0xff] %v620_v21 }
 0x24c   : > { %v2481_v23 = vld.sshfl [vmem:[#allocation1] sm:$0xff pattern:$0x73625140] }
 0x24d   : > { %637 = vst [vmem:[#allocation1] ss:$4 sm:$0xff] %v583_v19 }
 0x254   : > { %v638_v24 = vld.sshfl [vmem:[#allocation1] sm:$0xff pattern:$0x73625140] }
 0x255   : > { %642 = vst [vmem:[#allocation1] ss:$4 sm:$0xff] %v620_v21  ;;  %639 = vrot.lane.b32.xlu0 %v638_v24, %s2204_s18 }
 0x25c   : > { %v643_v25 = vld.sshfl [vmem:[#allocation1] sm:$0xff pattern:$0x73625140] }
 0x25d   : > { %644 = vrot.lane.b32.xlu1 %v643_v25, %s2203_s8 }
 0x2c7   : > { %v640_v26 = vpop.permute.xlu0 %639 }
 0x2cf   : > { %v645_v28 = vpop.permute.xlu1 %644 }
 0x2d0   : > { %v648_v29 = vsel %vm647_vm13, %v640_v26, %v645_v28 }
 0x2d1   : > { %v649_v30 = vpack.c.bf16 %v648_v29, %v648_v29 }
 0x2d3   : > { %1873 = vmatmul.msk.bf16.vlgmr.msrb.gmra.mxu0 %vm390_vm0, %v649_v30  ;;  %1874 = vmatmul.msk.bf16.vlgmr.msrb.gmra.mxu1 %vm390_vm0, %v649_v30 }
 0x2d4   : > { %1215 = vmatpush.bf16.msrb.mxu0 %v2359_v8  ;;  %1228 = vmatpush.bf16.msrb.mxu1 %v2385_v27 }
 0x2d8   : > { %1216 = vmatpush.bf16.msrb.mxu0 %v2368_v17  ;;  %1229 = vmatpush.bf16.msrb.mxu1 %v2409_v48 }
 0x2dc   : > { %1217 = vmatpush.bf16.msrb.mxu0 %v2390_v31  ;;  %1230 = vmatpush.bf16.msrb.mxu1 %v2415_v52 }
 0x2e0   : > { %1218 = vmatpush.bf16.msrb.mxu0 %v2405_v45  ;;  %1231 = vmatpush.bf16.msrb.mxu1 %v2424_v56 }
 0x350   : > { %v662_v34 = vpop.f32.mrf.mxu0  ;;  %v675_v36 = vpop.f32.mrf.mxu1 }
 0x351   : > { %v681_v37 = vadd.f32 %v680_v35, %v662_v34  ;;  %v687_v38 = vadd.f32 %v685_v33, %v675_v36 }
 0x353   : > { %1988 = vtanh.f32 %v681_v37  ;;  %v1875_v43 = vmul.f32 -1.442695, %v681_v37  ;;  %v1876_v49 = vmul.f32 -1.442695, %v687_v38 }
 0x354   : > { %1990 = vtanh.f32 %v687_v38 }
 0x355   : > { %1992 = vpow2.f32 %v1875_v43 }
 0x358   : > { %v664_v39 = vpop.f32.mrf.mxu0  ;;  %v677_v40 = vpop.f32.mrf.mxu1 }
 0x359   : > { %v1989_v41 = vpop.eup %1988  ;;  %v823_v39 = vld [vmem:[#allocation2 + $0x14] sm:$0xf] }
 0x35a   : > { %v1991_v42 = vpop.eup %1990  ;;  %710 = vrot.lane.b32.xlu2 %v1989_v41, %s2203_s8  ;;  %v825_v40 = vrot.slane %v823_v39, 2 }
 0x35b   : > { %747 = vrot.lane.b32.xlu0 %v1991_v42, %s2203_s8  ;;  %v1993_v44 = vpop.eup %1992  ;;  %v820_v42 = vld [vmem:[#allocation2 + $0x8] sm:$0xf] }
 0x35c   : > { %v691_v46 = vadd.f32 1.0, %v1993_v44 }
 0x35e   : > { %1994 = vrcp.f32 %v691_v46  ;;  %v703_v58 = vand.u32 2147483648, %v691_v46  ;;  %vm697_vm15 = vweird.f32 %v691_v46  ;;  %v701_v59 = vand.u32 2147483647, %v691_v46 }
 0x35f   : > { %1996 = vpow2.f32 %v1876_v49 }
 0x360   : > { %v704_v61 = vor.u32 1.1754944e-38, %v703_v58  ;;  %vm702_vm2 = vcmp.eq.f32.partialorder %v701_v59, 8.507059e+37 }
 0x364   : > { %v1995_v47 = vpop.eup %1994 }
 0x365   : > { %v693_v50 = vmul.f32 %v1995_v47, %v691_v46  ;;  %v1997_v54 = vpop.eup %1996  ;;  %vm698_vm14 = vweird.f32 %v1995_v47 }
 0x366   : > { %v728_v55 = vadd.f32 1.0, %v1997_v54  ;;  %vm699_vm1 = vmor %vm697_vm15, %vm698_vm14 }
 0x367   : > { %v694_v51 = vsub.f32 1.0, %v693_v50 }
 0x368   : > { %1998 = vrcp.f32 %v728_v55  ;;  %v740_v6 = vand.u32 2147483648, %v728_v55  ;;  %vm734_vm4 = vweird.f32 %v728_v55  ;;  %v738_v7 = vand.u32 2147483647, %v728_v55 }
 0x369   : > { %v695_v53 = vmul.f32 %v1995_v47, %v694_v51 }
 0x36a   : > { %v741_v10 = vor.u32 1.1754944e-38, %v740_v6  ;;  %vm739_vm6 = vcmp.eq.f32.partialorder %v738_v7, 8.507059e+37 }
 0x36b   : > { %v696_v57 = vadd.f32 %v1995_v47, %v695_v53 }
 0x36d   : > { %v700_v60 = vsel %vm699_vm1, %v1995_v47, %v696_v57 }
 0x36e   : > { %v705_v63 = vsel %vm702_vm2, %v704_v61, %v700_v60  ;;  %v1999_v1 = vpop.eup %1998 }
 0x36f   : > { %v730_v2 = vmul.f32 %v1999_v1, %v728_v55  ;;  %vm735_vm3 = vweird.f32 %v1999_v1  ;;  %v708_v16 = vmul.f32 %v705_v63, %v2471_v11 }
 0x370   : > { %vm736_vm5 = vmor %vm734_vm4, %vm735_vm3 }
 0x371   : > { %v731_v3 = vsub.f32 1.0, %v730_v2 }
 0x373   : > { %v732_v4 = vmul.f32 %v1999_v1, %v731_v3 }
 0x375   : > { %v733_v5 = vadd.f32 %v1999_v1, %v732_v4 }
 0x377   : > { %v737_v9 = vsel %vm736_vm5, %v1999_v1, %v733_v5 }
 0x378   : > { %v742_v13 = vsel %vm739_vm6, %v741_v10, %v737_v9 }
 0x379   : > { %v745_v18 = vmul.f32 %v742_v13, %v2475_v15 }
 0x3b4   : > { %v711_v62 = vpop.permute.xlu2 %710 }
 0x3b5   : > { %v713_v0 = vmul.f32 %v711_v62, %v705_v63 }
 0x3b7   : > { %715 = vrot.lane.b32.xlu1 %v713_v0, %s2204_s18 }
 0x3cd   : > { %v748_v12 = vpop.permute.xlu0 %747 }
 0x3ce   : > { %v750_v14 = vmul.f32 %v748_v12, %v742_v13 }
 0x3d0   : > { %752 = vrot.lane.b32.xlu2 %v750_v14, %s2204_s18 }
 0x429   : > { %v716_v19 = vpop.permute.xlu1 %715 }
 0x42a   : > { %v753_v20 = vpop.permute.xlu2 %752  ;;  %v2502_v21 = vadd.f32 %v716_v19, %v708_v16 }
 0x42b   : > { %v2504_v24 = vadd.f32 %v753_v20, %v745_v18 }
 0x42c   : > { %2000 = vtanh.f32 %v2502_v21 }
 0x42d   : > { %2002 = vtanh.f32 %v2504_v24 }
 0x432   : > { %v2001_v25 = vpop.eup %2000 }
 0x433   : > { %v2003_v26 = vpop.eup %2002  ;;  %721 = vrot.lane.b32.xlu0 %v2001_v25, %s2203_s8 }
 0x434   : > { %758 = vrot.lane.b32.xlu1 %v2003_v26, %s2203_s8 }
 0x4a5   : > { %v722_v28 = vpop.permute.xlu0 %721 }
 0x4a6   : > { %v724_v11 = vmul.f32 %v722_v28, %v705_v63  ;;  %v759_v15 = vpop.permute.xlu1 %758 }
 0x4a7   : > { %v761_v29 = vmul.f32 %v759_v15, %v742_v13 }
 0x4a8   : > { %763 = vst [vmem:[#allocation1] ss:$4 sm:$0xff] %v724_v11 }
 0x4af   : > { %v2510_v30 = vld.sshfl [vmem:[#allocation1] sm:$0xff pattern:$0x73625140] }
 0x4b0   : > { %771 = vst [vmem:[#allocation1] ss:$4 sm:$0xff] %v761_v29 }
 0x4b7   : > { %v2512_v32 = vld.sshfl [vmem:[#allocation1] sm:$0xff pattern:$0x73625140] }
 0x4b8   : > { %778 = vst [vmem:[#allocation1] ss:$4 sm:$0xff] %v724_v11 }
 0x4bf   : > { %v779_v33 = vld.sshfl [vmem:[#allocation1] sm:$0xff pattern:$0x73625140] }
 0x4c0   : > { %783 = vst [vmem:[#allocation1] ss:$4 sm:$0xff] %v761_v29  ;;  %780 = vrot.lane.b32.xlu2 %v779_v33, %s2204_s18 }
 0x4c7   : > { %v784_v34 = vld.sshfl [vmem:[#allocation1] sm:$0xff pattern:$0x73625140] }
 0x4c8   : > { %785 = vrot.lane.b32.xlu0 %v784_v34, %s2203_s8 }
 0x51a   : > { %v781_v35 = vpop.permute.xlu2 %780 }
 0x53a   : > { %v786_v36 = vpop.permute.xlu0 %785 }
 0x53b   : > { %v788_v37 = vsel %vm647_vm13, %v781_v35, %v786_v36 }
 0x53c   : > { %v789_v38 = vpack.c.bf16 %v788_v37, %v788_v37 }
 0x53e   : > { %1877 = vmatmul.msk.bf16.vlgmr.msrb.gmra.mxu2 %vm390_vm0, %v789_v38  ;;  %1878 = vmatmul.msk.bf16.vlgmr.msrb.gmra.mxu3 %vm390_vm0, %v789_v38 }
 0x53f   : > { %1353 = vmatpush.bf16.msrb.mxu2 %v2359_v8  ;;  %1366 = vmatpush.bf16.msrb.mxu3 %v2385_v27 }
 0x543   : > { %1354 = vmatpush.bf16.msrb.mxu2 %v2368_v17  ;;  %1367 = vmatpush.bf16.msrb.mxu3 %v2409_v48 }
 0x547   : > { %1355 = vmatpush.bf16.msrb.mxu2 %v2390_v31  ;;  %1368 = vmatpush.bf16.msrb.mxu3 %v2415_v52 }
 0x54b   : > { %1356 = vmatpush.bf16.msrb.mxu2 %v2405_v45  ;;  %1369 = vmatpush.bf16.msrb.mxu3 %v2424_v56 }
 0x5c1   : > { %v802_v41 = vpop.f32.mrf.mxu2  ;;  %v815_v43 = vpop.f32.mrf.mxu3 }
 0x5c2   : > { %v821_v44 = vadd.f32 %v820_v42, %v802_v41  ;;  %v827_v46 = vadd.f32 %v825_v40, %v815_v43 }
 0x5c4   : > { %2004 = vtanh.f32 %v821_v44  ;;  %v1880_v53 = vmul.f32 -1.442695, %v827_v46  ;;  %v1879_v58 = vmul.f32 -1.442695, %v821_v44 }
 0x5c5   : > { %2006 = vtanh.f32 %v827_v46 }
 0x5c6   : > { %2008 = vpow2.f32 %v1880_v53 }
 0x5c9   : > { %v804_v47 = vpop.f32.mrf.mxu2  ;;  %v817_v49 = vpop.f32.mrf.mxu3 }
 0x5ca   : > { %v2005_v50 = vpop.eup %2004 }
 0x5cb   : > { %v2007_v51 = vpop.eup %2006  ;;  %850 = vrot.lane.b32.xlu1 %v2005_v50, %s2203_s8  ;;  %v963_v50 = vld [vmem:[#allocation2 + $0x10] sm:$0xf] }
 0x5cc   : > { %887 = vrot.lane.b32.xlu2 %v2007_v51, %s2203_s8  ;;  %v2009_v54 = vpop.eup %2008  ;;  %v965_v51 = vrot.slane %v963_v50, 2 }
 0x5cd   : > { %v868_v55 = vadd.f32 1.0, %v2009_v54  ;;  %v960_v54 = vld [vmem:[#allocation2 + $0xc] sm:$0xf] }
 0x5cf   : > { %2010 = vrcp.f32 %v868_v55  ;;  %v880_v1 = vand.u32 2147483648, %v868_v55  ;;  %vm874_vm8 = vweird.f32 %v868_v55  ;;  %v878_v2 = vand.u32 2147483647, %v868_v55 }
 0x5d0   : > { %2012 = vpow2.f32 %v1879_v58 }
 0x5d1   : > { %v881_v4 = vor.u32 1.1754944e-38, %v880_v1  ;;  %vm879_vm10 = vcmp.eq.f32.partialorder %v878_v2, 8.507059e+37 }
 0x5d5   : > { %v2011_v57 = vpop.eup %2010 }
 0x5d6   : > { %v870_v59 = vmul.f32 %v2011_v57, %v868_v55  ;;  %v2013_v61 = vpop.eup %2012  ;;  %vm875_vm7 = vweird.f32 %v2011_v57 }
 0x5d7   : > { %v831_v63 = vadd.f32 1.0, %v2013_v61  ;;  %vm876_vm9 = vmor %vm874_vm8, %vm875_vm7 }
 0x5d8   : > { %v871_v60 = vsub.f32 1.0, %v870_v59 }
 0x5d9   : > { %2014 = vrcp.f32 %v831_v63  ;;  %v843_v16 = vand.u32 2147483648, %v831_v63  ;;  %vm837_vm12 = vweird.f32 %v831_v63  ;;  %v841_v18 = vand.u32 2147483647, %v831_v63 }
 0x5da   : > { %v872_v62 = vmul.f32 %v2011_v57, %v871_v60 }
 0x5db   : > { %v844_v20 = vor.u32 1.1754944e-38, %v843_v16  ;;  %vm842_vm15 = vcmp.eq.f32.partialorder %v841_v18, 8.507059e+37 }
 0x5dc   : > { %v873_v0 = vadd.f32 %v2011_v57, %v872_v62 }
 0x5de   : > { %v877_v3 = vsel %vm876_vm9, %v2011_v57, %v873_v0 }
 0x5df   : > { %v882_v6 = vsel %vm879_vm10, %v881_v4, %v877_v3  ;;  %v2015_v7 = vpop.eup %2014 }
 0x5e0   : > { %v833_v10 = vmul.f32 %v2015_v7, %v831_v63  ;;  %vm838_vm11 = vweird.f32 %v2015_v7  ;;  %v885_v11 = vmul.f32 %v882_v6, %v2504_v24 }
 0x5e1   : > { %vm839_vm14 = vmor %vm837_vm12, %vm838_vm11 }
 0x5e2   : > { %v834_v12 = vsub.f32 1.0, %v833_v10 }
 0x5e4   : > { %v835_v13 = vmul.f32 %v2015_v7, %v834_v12 }
 0x5e6   : > { %v836_v14 = vadd.f32 %v2015_v7, %v835_v13 }
 0x5e8   : > { %v840_v19 = vsel %vm839_vm14, %v2015_v7, %v836_v14 }
 0x5e9   : > { %v845_v26 = vsel %vm842_vm15, %v844_v20, %v840_v19 }
 0x5ea   : > { %v848_v34 = vmul.f32 %v845_v26, %v2502_v21 }
 0x626   : > { %v888_v5 = vpop.permute.xlu2 %887 }
 0x627   : > { %v890_v9 = vmul.f32 %v888_v5, %v882_v6 }
 0x629   : > { %892 = vrot.lane.b32.xlu1 %v890_v9, %s2204_s18 }
 0x63d   : > { %v851_v25 = vpop.permute.xlu1 %850 }
 0x63e   : > { %v853_v28 = vmul.f32 %v851_v25, %v845_v26 }
 0x640   : > { %855 = vrot.lane.b32.xlu0 %v853_v28, %s2204_s18 }
 0x69b   : > { %v893_v15 = vpop.permute.xlu1 %892 }
 0x69c   : > { %v2532_v29 = vadd.f32 %v893_v15, %v885_v11 }
 0x69e   : > { %2016 = vtanh.f32 %v2532_v29 }
 0x6a4   : > { %v2017_v33 = vpop.eup %2016 }
 0x6a5   : > { %898 = vrot.lane.b32.xlu0 %v2017_v33, %s2203_s8 }
 0x6b2   : > { %v856_v35 = vpop.permute.xlu0 %855 }
 0x6b3   : > { %v2537_v36 = vadd.f32 %v856_v35, %v848_v34 }
 0x6b5   : > { %2018 = vtanh.f32 %v2537_v36 }
 0x6bb   : > { %v2019_v37 = vpop.eup %2018 }
 0x6bc   : > { %861 = vrot.lane.b32.xlu2 %v2019_v37, %s2203_s8 }
 0x716   : > { %v862_v38 = vpop.permute.xlu2 %861 }
 0x717   : > { %v864_v24 = vmul.f32 %v862_v38, %v845_v26  ;;  %v899_v39 = vpop.permute.xlu0 %898 }
 0x718   : > { %v901_v40 = vmul.f32 %v899_v39, %v882_v6 }
 0x719   : > { %903 = vst [vmem:[#allocation1] ss:$4 sm:$0xff] %v864_v24 }
 0x720   : > { %v2541_v41 = vld.sshfl [vmem:[#allocation1] sm:$0xff pattern:$0x73625140] }
 0x721   : > { %911 = vst [vmem:[#allocation1] ss:$4 sm:$0xff] %v901_v40 }
 0x728   : > { %v2543_v42 = vld.sshfl [vmem:[#allocation1] sm:$0xff pattern:$0x73625140] }
 0x729   : > { %918 = vst [vmem:[#allocation1] ss:$4 sm:$0xff] %v864_v24 }
 0x730   : > { %v919_v21 = vld.sshfl [vmem:[#allocation1] sm:$0xff pattern:$0x73625140] }
 0x731   : > { %920 = vrot.lane.b32.xlu1 %v919_v21, %s2204_s18  ;;  %923 = vst [vmem:[#allocation1] ss:$4 sm:$0xff] %v901_v40 }
 0x738   : > { %v924_v43 = vld.sshfl [vmem:[#allocation1] sm:$0xff pattern:$0x73625140] }
 0x739   : > { %925 = vrot.lane.b32.xlu2 %v924_v43, %s2203_s8 }
 0x793   : > { %v926_v44 = vpop.permute.xlu2 %925 }
 0x7a3   : > { %v921_v46 = vpop.permute.xlu1 %920 }
 0x7a4   : > { %v928_v47 = vsel %vm647_vm13, %v921_v46, %v926_v44 }
 0x7a5   : > { %v929_v49 = vpack.c.bf16 %v928_v47, %v928_v47 }
 0x7a7   : > { %1881 = vmatmul.msk.bf16.vlgmr.msra.gmra.mxu0 %vm390_vm0, %v929_v49  ;;  %1882 = vmatmul.msk.bf16.vlgmr.msra.gmra.mxu1 %vm390_vm0, %v929_v49 }
 0x7a8   : > { %1491 = vmatpush.bf16.msra.mxu0 %v2359_v8  ;;  %1504 = vmatpush.bf16.msra.mxu1 %v2385_v27 }
 0x7ac   : > { %1492 = vmatpush.bf16.msra.mxu0 %v2368_v17  ;;  %1505 = vmatpush.bf16.msra.mxu1 %v2409_v48 }
 0x7b0   : > { %1493 = vmatpush.bf16.msra.mxu0 %v2390_v31  ;;  %1506 = vmatpush.bf16.msra.mxu1 %v2415_v52 }
 0x7b4   : > { %1494 = vmatpush.bf16.msra.mxu0 %v2405_v45  ;;  %1507 = vmatpush.bf16.msra.mxu1 %v2424_v56 }
 0x824   : > { %v942_v53 = vpop.f32.mrf.mxu0  ;;  %v955_v55 = vpop.f32.mrf.mxu1 }
 0x825   : > { %v961_v8 = vadd.f32 %v960_v54, %v942_v53  ;;  %v967_v57 = vadd.f32 %v965_v51, %v955_v55  ;;  %v1101_v54 = vld [vmem:[#allocation2 + $0xc] sm:$0xf] }
 0x826   : > { %v1103_v55 = vrot.slane %v1101_v54, 2 }
 0x827   : > { %2020 = vtanh.f32 %v961_v8  ;;  %v1883_v31 = vmul.f32 -1.442695, %v961_v8  ;;  %v1884_v45 = vmul.f32 -1.442695, %v967_v57 }
 0x828   : > { %2022 = vtanh.f32 %v967_v57  ;;  %v1099_v57 = vld [vmem:[#allocation2 + $0x10] sm:$0xf] }
 0x829   : > { %2024 = vpow2.f32 %v1883_v31 }
 0x82a   : > { %2026 = vpow2.f32 %v1884_v45 }
 0x82c   : > { %v944_v17 = vpop.f32.mrf.mxu0  ;;  %v957_v27 = vpop.f32.mrf.mxu1 }
 0x82d   : > { %v2021_v48 = vpop.eup %2020 }
 0x82e   : > { %v2023_v58 = vpop.eup %2022  ;;  %990 = vrot.lane.b32.xlu0 %v2021_v48, %s2203_s8 }
 0x82f   : > { %1027 = vrot.lane.b32.xlu1 %v2023_v58, %s2203_s8  ;;  %v2025_v52 = vpop.eup %2024 }
 0x830   : > { %v2027_v56 = vpop.eup %2026  ;;  %v971_v59 = vadd.f32 1.0, %v2025_v52 }
 0x831   : > { %v1008_v60 = vadd.f32 1.0, %v2027_v56 }
 0x832   : > { %2028 = vrcp.f32 %v971_v59  ;;  %v983_v7 = vand.u32 2147483648, %v971_v59  ;;  %vm977_vm3 = vweird.f32 %v971_v59  ;;  %v981_v10 = vand.u32 2147483647, %v971_v59 }
 0x833   : > { %2030 = vrcp.f32 %v1008_v60  ;;  %v1020_v9 = vand.u32 2147483648, %v1008_v60  ;;  %vm1014_vm4 = vweird.f32 %v1008_v60  ;;  %v1018_v12 = vand.u32 2147483647, %v1008_v60 }
 0x834   : > { %v984_v16 = vor.u32 1.1754944e-38, %v983_v7  ;;  %vm982_vm7 = vcmp.eq.f32.partialorder %v981_v10, 8.507059e+37 }
 0x835   : > { %v1021_v18 = vor.u32 1.1754944e-38, %v1020_v9  ;;  %vm1019_vm8 = vcmp.eq.f32.partialorder %v1018_v12, 8.507059e+37 }
 0x838   : > { %v2029_v61 = vpop.eup %2028 }
 0x839   : > { %v2031_v62 = vpop.eup %2030  ;;  %v973_v63 = vmul.f32 %v2029_v61, %v971_v59  ;;  %vm978_vm1 = vweird.f32 %v2029_v61 }
 0x83a   : > { %v1010_v0 = vmul.f32 %v2031_v62, %v1008_v60  ;;  %vm1015_vm2 = vweird.f32 %v2031_v62  ;;  %vm979_vm5 = vmor %vm977_vm3, %vm978_vm1 }
 0x83b   : > { %v974_v1 = vsub.f32 1.0, %v973_v63  ;;  %vm1016_vm6 = vmor %vm1014_vm4, %vm1015_vm2 }
 0x83c   : > { %v1011_v2 = vsub.f32 1.0, %v1010_v0 }
 0x83d   : > { %v975_v3 = vmul.f32 %v2029_v61, %v974_v1 }
 0x83e   : > { %v1012_v4 = vmul.f32 %v2031_v62, %v1011_v2 }
 0x83f   : > { %v976_v5 = vadd.f32 %v2029_v61, %v975_v3 }
 0x840   : > { %v1013_v6 = vadd.f32 %v2031_v62, %v1012_v4 }
 0x841   : > { %v980_v13 = vsel %vm979_vm5, %v2029_v61, %v976_v5 }
 0x842   : > { %v1017_v14 = vsel %vm1016_vm6, %v2031_v62, %v1013_v6  ;;  %v985_v20 = vsel %vm982_vm7, %v984_v16, %v980_v13 }
 0x843   : > { %v1022_v26 = vsel %vm1019_vm8, %v1021_v18, %v1017_v14  ;;  %v988_v15 = vmul.f32 %v985_v20, %v2537_v36 }
 0x844   : > { %v1025_v37 = vmul.f32 %v1022_v26, %v2532_v29 }
 0x8a0   : > { %v991_v19 = vpop.permute.xlu0 %990 }
 0x8a1   : > { %v1028_v25 = vpop.permute.xlu1 %1027  ;;  %v993_v28 = vmul.f32 %v991_v19, %v985_v20 }
 0x8a2   : > { %v1030_v11 = vmul.f32 %v1028_v25, %v1022_v26 }
 0x8a3   : > { %995 = vrot.lane.b32.xlu2 %v993_v28, %s2204_s18 }
 0x8a4   : > { %1032 = vrot.lane.b32.xlu0 %v1030_v11, %s2204_s18 }
 0x8fd   : > { %v996_v33 = vpop.permute.xlu2 %995 }
 0x8fe   : > { %v2563_v34 = vadd.f32 %v996_v33, %v988_v15 }
 0x900   : > { %2032 = vtanh.f32 %v2563_v34 }
 0x906   : > { %v2033_v35 = vpop.eup %2032 }
 0x907   : > { %1001 = vrot.lane.b32.xlu1 %v2033_v35, %s2203_s8 }
 0x916   : > { %v1033_v38 = vpop.permute.xlu0 %1032 }
 0x917   : > { %v2568_v24 = vadd.f32 %v1033_v38, %v1025_v37 }
 0x919   : > { %2034 = vtanh.f32 %v2568_v24 }
 0x91f   : > { %v2035_v39 = vpop.eup %2034 }
 0x920   : > { %1038 = vrot.lane.b32.xlu2 %v2035_v39, %s2203_s8 }
 0x979   : > { %v1002_v40 = vpop.permute.xlu1 %1001 }
 0x97a   : > { %v1004_v36 = vmul.f32 %v1002_v40, %v985_v20  ;;  %v1039_v21 = vpop.permute.xlu2 %1038 }
 0x97b   : > { %v1041_v43 = vmul.f32 %v1039_v21, %v1022_v26 }
 0x97c   : > { %1043 = vst [vmem:[#allocation1] ss:$4 sm:$0xff] %v1004_v36 }
 0x983   : > { %v2572_v44 = vld.sshfl [vmem:[#allocation1] sm:$0xff pattern:$0x73625140] }
 0x984   : > { %1051 = vst [vmem:[#allocation1] ss:$4 sm:$0xff] %v1041_v43 }
 0x98b   : > { %v2574_v46 = vld.sshfl [vmem:[#allocation1] sm:$0xff pattern:$0x73625140] }
 0x98c   : > { %1058 = vst [vmem:[#allocation1] ss:$4 sm:$0xff] %v1004_v36 }
 0x993   : > { %v1059_v29 = vld.sshfl [vmem:[#allocation1] sm:$0xff pattern:$0x73625140] }
 0x994   : > { %1060 = vrot.lane.b32.xlu0 %v1059_v29, %s2204_s18  ;;  %1063 = vst [vmem:[#allocation1] ss:$4 sm:$0xff] %v1041_v43 }
 0x99b   : > { %v1064_v47 = vld.sshfl [vmem:[#allocation1] sm:$0xff pattern:$0x73625140] }
 0x99c   : > { %1065 = vrot.lane.b32.xlu1 %v1064_v47, %s2203_s8 }
 0xa06   : > { %v1061_v49 = vpop.permute.xlu0 %1060 }
 0xa0e   : > { %v1066_v50 = vpop.permute.xlu1 %1065 }
 0xa0f   : > { %v1068_v51 = vsel %vm647_vm13, %v1061_v49, %v1066_v50 }
 0xa10   : > { %v1069_v53 = vpack.c.bf16 %v1068_v51, %v1068_v51 }
 0xa12   : > { %1885 = vmatmul.msk.bf16.vlgmr.msra.gmra.mxu2 %vm390_vm0, %v1069_v53  ;;  %1886 = vmatmul.msk.bf16.vlgmr.msra.gmra.mxu3 %vm390_vm0, %v1069_v53 }
 0xa95   : > { %v1082_v8 = vpop.f32.mrf.mxu2  ;;  %v1095_v17 = vpop.f32.mrf.mxu3 }
 0xa96   : > { %v1100_v27 = vadd.f32 %v1099_v57, %v1082_v8  ;;  %v1105_v48 = vadd.f32 %v1103_v55, %v1095_v17 }
 0xa98   : > { %2036 = vtanh.f32 %v1100_v27  ;;  %v1887_v56 = vmul.f32 -1.442695, %v1100_v27  ;;  %v1888_v62 = vmul.f32 -1.442695, %v1105_v48  ;;  %v1239_v27 = vld [vmem:[#allocation2 + $0x8] sm:$0xf] }
 0xa99   : > { %2038 = vtanh.f32 %v1105_v48  ;;  %v1241_v48 = vrot.slane %v1239_v27, 2 }
 0xa9a   : > { %2040 = vpow2.f32 %v1887_v56 }
 0xa9d   : > { %v1084_v58 = vpop.f32.mrf.mxu2  ;;  %v1097_v31 = vpop.f32.mrf.mxu3 }
 0xa9e   : > { %v2037_v45 = vpop.eup %2036  ;;  %v1237_v31 = vld [vmem:[#allocation2 + $0x14] sm:$0xf] }
 0xa9f   : > { %v2039_v52 = vpop.eup %2038  ;;  %1128 = vrot.lane.b32.xlu2 %v2037_v45, %s2203_s8 }
 0xaa0   : > { %1165 = vrot.lane.b32.xlu0 %v2039_v52, %s2203_s8  ;;  %v2041_v59 = vpop.eup %2040 }
 0xaa1   : > { %v1109_v60 = vadd.f32 1.0, %v2041_v59 }
 0xaa3   : > { %2042 = vrcp.f32 %v1109_v60  ;;  %v1121_v5 = vand.u32 2147483648, %v1109_v60  ;;  %vm1115_vm10 = vweird.f32 %v1109_v60  ;;  %v1119_v6 = vand.u32 2147483647, %v1109_v60 }
 0xaa4   : > { %2044 = vpow2.f32 %v1888_v62 }
 0xaa5   : > { %v1122_v9 = vor.u32 1.1754944e-38, %v1121_v5  ;;  %vm1120_vm12 = vcmp.eq.f32.partialorder %v1119_v6, 8.507059e+37 }
 0xaa9   : > { %v2043_v61 = vpop.eup %2042 }
 0xaaa   : > { %v1111_v63 = vmul.f32 %v2043_v61, %v1109_v60  ;;  %v2045_v2 = vpop.eup %2044  ;;  %vm1116_vm9 = vweird.f32 %v2043_v61 }
 0xaab   : > { %v1146_v3 = vadd.f32 1.0, %v2045_v2  ;;  %vm1117_vm11 = vmor %vm1115_vm10, %vm1116_vm9 }
 0xaac   : > { %v1112_v0 = vsub.f32 1.0, %v1111_v63 }
 0xaad   : > { %2046 = vrcp.f32 %v1146_v3  ;;  %v1158_v25 = vand.u32 2147483648, %v1146_v3  ;;  %vm1152_vm15 = vweird.f32 %v1146_v3  ;;  %v1156_v26 = vand.u32 2147483647, %v1146_v3 }
 0xaae   : > { %v1113_v1 = vmul.f32 %v2043_v61, %v1112_v0 }
 0xaaf   : > { %v1159_v11 = vor.u32 1.1754944e-38, %v1158_v25  ;;  %vm1157_vm2 = vcmp.eq.f32.partialorder %v1156_v26, 8.507059e+37 }
 0xab0   : > { %v1114_v4 = vadd.f32 %v2043_v61, %v1113_v1 }
 0xab2   : > { %v1118_v7 = vsel %vm1117_vm11, %v2043_v61, %v1114_v4 }
 0xab3   : > { %v1123_v12 = vsel %vm1120_vm12, %v1122_v9, %v1118_v7  ;;  %v2047_v14 = vpop.eup %2046 }
 0xab4   : > { %v1148_v16 = vmul.f32 %v2047_v14, %v1146_v3  ;;  %vm1153_vm14 = vweird.f32 %v2047_v14  ;;  %v1126_v37 = vmul.f32 %v1123_v12, %v2563_v34 }
 0xab5   : > { %vm1154_vm1 = vmor %vm1152_vm15, %vm1153_vm14 }
 0xab6   : > { %v1149_v18 = vsub.f32 1.0, %v1148_v16 }
 0xab8   : > { %v1150_v19 = vmul.f32 %v2047_v14, %v1149_v18 }
 0xaba   : > { %v1151_v20 = vadd.f32 %v2047_v14, %v1150_v19 }
 0xabc   : > { %v1155_v28 = vsel %vm1154_vm1, %v2047_v14, %v1151_v20 }
 0xabd   : > { %v1160_v33 = vsel %vm1157_vm2, %v1159_v11, %v1155_v28 }
 0xabe   : > { %v1163_v38 = vmul.f32 %v1160_v33, %v2568_v24 }
 0xaf9   : > { %v1129_v10 = vpop.permute.xlu2 %1128 }
 0xafa   : > { %v1131_v13 = vmul.f32 %v1129_v10, %v1123_v12 }
 0xafc   : > { %1133 = vrot.lane.b32.xlu1 %v1131_v13, %s2204_s18 }
 0xb12   : > { %v1166_v15 = vpop.permute.xlu0 %1165 }
 0xb13   : > { %v1168_v35 = vmul.f32 %v1166_v15, %v1160_v33 }
 0xb15   : > { %1170 = vrot.lane.b32.xlu2 %v1168_v35, %s2204_s18 }
 0xb6e   : > { %v1134_v39 = vpop.permute.xlu1 %1133 }
 0xb6f   : > { %v1171_v40 = vpop.permute.xlu2 %1170  ;;  %v2587_v36 = vadd.f32 %v1134_v39, %v1126_v37 }
 0xb70   : > { %v2589_v21 = vadd.f32 %v1171_v40, %v1163_v38 }
 0xb71   : > { %2048 = vtanh.f32 %v2587_v36 }
 0xb72   : > { %2050 = vtanh.f32 %v2589_v21 }
 0xb77   : > { %v2049_v43 = vpop.eup %2048 }
 0xb78   : > { %v2051_v29 = vpop.eup %2050  ;;  %1139 = vrot.lane.b32.xlu0 %v2049_v43, %s2203_s8 }
 0xb79   : > { %1176 = vrot.lane.b32.xlu1 %v2051_v29, %s2203_s8 }
 0xbea   : > { %v1140_v47 = vpop.permute.xlu0 %1139 }
 0xbeb   : > { %v1142_v34 = vmul.f32 %v1140_v47, %v1123_v12  ;;  %v1177_v24 = vpop.permute.xlu1 %1176 }
 0xbec   : > { %v1179_v49 = vmul.f32 %v1177_v24, %v1160_v33 }
 0xbed   : > { %1181 = vst [vmem:[#allocation1] ss:$4 sm:$0xff] %v1142_v34 }
 0xbf4   : > { %v2595_v50 = vld.sshfl [vmem:[#allocation1] sm:$0xff pattern:$0x73625140] }
 0xbf5   : > { %1189 = vst [vmem:[#allocation1] ss:$4 sm:$0xff] %v1179_v49 }
 0xbfc   : > { %v2597_v51 = vld.sshfl [vmem:[#allocation1] sm:$0xff pattern:$0x73625140] }
 0xbfd   : > { %1196 = vst [vmem:[#allocation1] ss:$4 sm:$0xff] %v1142_v34 }
 0xc04   : > { %v1197_v53 = vld.sshfl [vmem:[#allocation1] sm:$0xff pattern:$0x73625140] }
 0xc05   : > { %1198 = vrot.lane.b32.xlu2 %v1197_v53, %s2204_s18  ;;  %1201 = vst [vmem:[#allocation1] ss:$4 sm:$0xff] %v1179_v49 }
 0xc0c   : > { %v1202_v54 = vld.sshfl [vmem:[#allocation1] sm:$0xff pattern:$0x73625140] }
 0xc0d   : > { %1203 = vrot.lane.b32.xlu0 %v1202_v54, %s2203_s8 }
 0xc5f   : > { %v1199_v55 = vpop.permute.xlu2 %1198 }
 0xc7f   : > { %v1204_v8 = vpop.permute.xlu0 %1203 }
 0xc80   : > { %v1206_v57 = vsel %vm647_vm13, %v1199_v55, %v1204_v8 }
 0xc81   : > { %v1207_v17 = vpack.c.bf16 %v1206_v57, %v1206_v57 }
 0xc83   : > { %1889 = vmatmul.msk.bf16.vlgmr.msrb.gmra.mxu0 %vm390_vm0, %v1207_v17  ;;  %1890 = vmatmul.msk.bf16.vlgmr.msrb.gmra.mxu1 %vm390_vm0, %v1207_v17 }
 0xd00   : > { %v1220_v58 = vpop.f32.mrf.mxu0  ;;  %v1233_v45 = vpop.f32.mrf.mxu1 }
 0xd01   : > { %v1238_v52 = vadd.f32 %v1237_v31, %v1220_v58  ;;  %v1243_v56 = vadd.f32 %v1241_v48, %v1233_v45 }
 0xd03   : > { %2052 = vtanh.f32 %v1238_v52  ;;  %v1892_v63 = vmul.f32 -1.442695, %v1243_v56  ;;  %v1891_v3 = vmul.f32 -1.442695, %v1238_v52 }
 0xd04   : > { %2054 = vtanh.f32 %v1243_v56 }
 0xd05   : > { %2056 = vpow2.f32 %v1892_v63 }
 0xd08   : > { %v1222_v59 = vpop.f32.mrf.mxu0  ;;  %v1235_v60 = vpop.f32.mrf.mxu1 }
 0xd09   : > { %v2053_v61 = vpop.eup %2052  ;;  %v1377_v59 = vld [vmem:[#allocation2 + $0x4] sm:$0xf] }
 0xd0a   : > { %v2055_v62 = vpop.eup %2054  ;;  %1266 = vrot.lane.b32.xlu1 %v2053_v61, %s2203_s8  ;;  %v1379_v60 = vrot.slane %v1377_v59, 2 }
 0xd0b   : > { %1303 = vrot.lane.b32.xlu2 %v2055_v62, %s2203_s8  ;;  %v2057_v0 = vpop.eup %2056  ;;  %v1375_v62 = vld [vmem:[#allocation2 + $0x18] sm:$0xf] }
 0xd0c   : > { %v1284_v1 = vadd.f32 1.0, %v2057_v0 }
 0xd0e   : > { %2058 = vrcp.f32 %v1284_v1  ;;  %v1296_v12 = vand.u32 2147483648, %v1284_v1  ;;  %vm1290_vm4 = vweird.f32 %v1284_v1  ;;  %v1294_v13 = vand.u32 2147483647, %v1284_v1 }
 0xd0f   : > { %2060 = vpow2.f32 %v1891_v3 }
 0xd10   : > { %v1297_v16 = vor.u32 1.1754944e-38, %v1296_v12  ;;  %vm1295_vm6 = vcmp.eq.f32.partialorder %v1294_v13, 8.507059e+37 }
 0xd14   : > { %v2059_v2 = vpop.eup %2058 }
 0xd15   : > { %v1286_v4 = vmul.f32 %v2059_v2, %v1284_v1  ;;  %v2061_v6 = vpop.eup %2060  ;;  %vm1291_vm3 = vweird.f32 %v2059_v2 }
 0xd16   : > { %v1247_v9 = vadd.f32 1.0, %v2061_v6  ;;  %vm1292_vm5 = vmor %vm1290_vm4, %vm1291_vm3 }
 0xd17   : > { %v1287_v5 = vsub.f32 1.0, %v1286_v4 }
 0xd18   : > { %2062 = vrcp.f32 %v1247_v9  ;;  %v1259_v33 = vand.u32 2147483648, %v1247_v9  ;;  %vm1253_vm8 = vweird.f32 %v1247_v9  ;;  %v1257_v35 = vand.u32 2147483647, %v1247_v9 }
 0xd19   : > { %v1288_v7 = vmul.f32 %v2059_v2, %v1287_v5 }
 0xd1a   : > { %v1260_v38 = vor.u32 1.1754944e-38, %v1259_v33  ;;  %vm1258_vm10 = vcmp.eq.f32.partialorder %v1257_v35, 8.507059e+37 }
 0xd1b   : > { %v1289_v10 = vadd.f32 %v2059_v2, %v1288_v7 }
 0xd1d   : > { %v1293_v14 = vsel %vm1292_vm5, %v2059_v2, %v1289_v10 }
 0xd1e   : > { %v1298_v19 = vsel %vm1295_vm6, %v1297_v16, %v1293_v14  ;;  %v2063_v20 = vpop.eup %2062 }
 0xd1f   : > { %v1249_v26 = vmul.f32 %v2063_v20, %v1247_v9  ;;  %vm1254_vm7 = vweird.f32 %v2063_v20  ;;  %v1301_v29 = vmul.f32 %v1298_v19, %v2589_v21 }
 0xd20   : > { %vm1255_vm9 = vmor %vm1253_vm8, %vm1254_vm7 }
 0xd21   : > { %v1250_v28 = vsub.f32 1.0, %v1249_v26 }
 0xd23   : > { %v1251_v11 = vmul.f32 %v2063_v20, %v1250_v28 }
 0xd25   : > { %v1252_v15 = vadd.f32 %v2063_v20, %v1251_v11 }
 0xd27   : > { %v1256_v37 = vsel %vm1255_vm9, %v2063_v20, %v1252_v15 }
 0xd28   : > { %v1261_v40 = vsel %vm1258_vm10, %v1260_v38, %v1256_v37 }
 0xd29   : > { %v1264_v49 = vmul.f32 %v1261_v40, %v2587_v36 }
 0xd65   : > { %v1304_v18 = vpop.permute.xlu2 %1303 }
 0xd66   : > { %v1306_v25 = vmul.f32 %v1304_v18, %v1298_v19 }
 0xd68   : > { %1308 = vrot.lane.b32.xlu1 %v1306_v25, %s2204_s18 }
 0xd7c   : > { %v1267_v39 = vpop.permute.xlu1 %1266 }
 0xd7d   : > { %v1269_v43 = vmul.f32 %v1267_v39, %v1261_v40 }
 0xd7f   : > { %1271 = vrot.lane.b32.xlu0 %v1269_v43, %s2204_s18 }
 0xdda   : > { %v1309_v47 = vpop.permute.xlu1 %1308 }
 0xddb   : > { %v2609_v34 = vadd.f32 %v1309_v47, %v1301_v29 }
 0xddd   : > { %2064 = vtanh.f32 %v2609_v34 }
 0xde3   : > { %v2065_v24 = vpop.eup %2064 }
 0xde4   : > { %1314 = vrot.lane.b32.xlu0 %v2065_v24, %s2203_s8 }
 0xdf1   : > { %v1272_v53 = vpop.permute.xlu0 %1271 }
 0xdf2   : > { %v2614_v54 = vadd.f32 %v1272_v53, %v1264_v49 }
 0xdf4   : > { %2066 = vtanh.f32 %v2614_v54 }
 0xdfa   : > { %v2067_v55 = vpop.eup %2066 }
 0xdfb   : > { %1277 = vrot.lane.b32.xlu2 %v2067_v55, %s2203_s8 }
 0xe55   : > { %v1278_v8 = vpop.permute.xlu2 %1277 }
 0xe56   : > { %v1280_v21 = vmul.f32 %v1278_v8, %v1261_v40  ;;  %v1315_v57 = vpop.permute.xlu0 %1314 }
 0xe57   : > { %v1317_v17 = vmul.f32 %v1315_v57, %v1298_v19 }
 0xe58   : > { %1319 = vst [vmem:[#allocation1] ss:$4 sm:$0xff] %v1280_v21 }
 0xe5f   : > { %v2618_v27 = vld.sshfl [vmem:[#allocation1] sm:$0xff pattern:$0x73625140] }
 0xe60   : > { %1327 = vst [vmem:[#allocation1] ss:$4 sm:$0xff] %v1317_v17 }
 0xe67   : > { %v2620_v48 = vld.sshfl [vmem:[#allocation1] sm:$0xff pattern:$0x73625140] }
 0xe68   : > { %1334 = vst [vmem:[#allocation1] ss:$4 sm:$0xff] %v1280_v21 }
 0xe6f   : > { %v1335_v36 = vld.sshfl [vmem:[#allocation1] sm:$0xff pattern:$0x73625140] }
 0xe70   : > { %1336 = vrot.lane.b32.xlu1 %v1335_v36, %s2204_s18  ;;  %1339 = vst [vmem:[#allocation1] ss:$4 sm:$0xff] %v1317_v17 }
 0xe77   : > { %v1340_v58 = vld.sshfl [vmem:[#allocation1] sm:$0xff pattern:$0x73625140] }
 0xe78   : > { %1341 = vrot.lane.b32.xlu2 %v1340_v58, %s2203_s8 }
 0xed2   : > { %v1342_v31 = vpop.permute.xlu2 %1341 }
 0xee2   : > { %v1337_v45 = vpop.permute.xlu1 %1336 }
 0xee3   : > { %v1344_v52 = vsel %vm647_vm13, %v1337_v45, %v1342_v31 }
 0xee4   : > { %v1345_v56 = vpack.c.bf16 %v1344_v52, %v1344_v52 }
 0xee6   : > { %1893 = vmatmul.msk.bf16.vlgmr.msrb.gmra.mxu2 %vm390_vm0, %v1345_v56  ;;  %1894 = vmatmul.msk.bf16.vlgmr.msrb.gmra.mxu3 %vm390_vm0, %v1345_v56 }
 0xf69   : > { %v1358_v61 = vpop.f32.mrf.mxu2  ;;  %v1371_v63 = vpop.f32.mrf.mxu3 }
 0xf6a   : > { %v1376_v0 = vadd.f32 %v1375_v62, %v1358_v61  ;;  %v1381_v1 = vadd.f32 %v1379_v60, %v1371_v63 }
 0xf6c   : > { %2068 = vtanh.f32 %v1376_v0  ;;  %v1895_v6 = vmul.f32 -1.442695, %v1376_v0  ;;  %v1896_v7 = vmul.f32 -1.442695, %v1381_v1 }
 0xf6d   : > { %2070 = vtanh.f32 %v1381_v1 }
 0xf6e   : > { %2072 = vpow2.f32 %v1895_v6 }
 0xf6f   : > { %2074 = vpow2.f32 %v1896_v7  ;;  %v1513_v7 = vld [vmem:[#allocation2 + $0x1c] sm:$0xf] }
 0xf71   : > { %v1360_v2 = vpop.f32.mrf.mxu2  ;;  %v1373_v3 = vpop.f32.mrf.mxu3 }
 0xf72   : > { %v2069_v4 = vpop.eup %2068 }
 0xf73   : > { %v2071_v5 = vpop.eup %2070  ;;  %1404 = vrot.lane.b32.xlu0 %v2069_v4, %s2203_s8  ;;  %v1515_v4 = vld [vmem:[#allocation2] sm:$0xf] }
 0xf74   : > { %1441 = vrot.lane.b32.xlu1 %v2071_v5, %s2203_s8  ;;  %v2073_v9 = vpop.eup %2072  ;;  %v1517_v5 = vrot.slane %v1515_v4, 2 }
 0xf75   : > { %v2075_v10 = vpop.eup %2074  ;;  %v1385_v12 = vadd.f32 1.0, %v2073_v9 }
 0xf76   : > { %v1422_v13 = vadd.f32 1.0, %v2075_v10 }
 0xf77   : > { %2076 = vrcp.f32 %v1385_v12  ;;  %v1397_v33 = vand.u32 2147483648, %v1385_v12  ;;  %vm1391_vm14 = vweird.f32 %v1385_v12  ;;  %v1395_v37 = vand.u32 2147483647, %v1385_v12 }
 0xf78   : > { %2078 = vrcp.f32 %v1422_v13  ;;  %v1434_v35 = vand.u32 2147483648, %v1422_v13  ;;  %vm1428_vm15 = vweird.f32 %v1422_v13  ;;  %v1432_v38 = vand.u32 2147483647, %v1422_v13 }
 0xf79   : > { %v1398_v43 = vor.u32 1.1754944e-38, %v1397_v33  ;;  %vm1396_vm3 = vcmp.eq.f32.partialorder %v1395_v37, 8.507059e+37 }
 0xf7a   : > { %v1435_v29 = vor.u32 1.1754944e-38, %v1434_v35  ;;  %vm1433_vm4 = vcmp.eq.f32.partialorder %v1432_v38, 8.507059e+37 }
 0xf7d   : > { %v2077_v14 = vpop.eup %2076 }
 0xf7e   : > { %v2079_v16 = vpop.eup %2078  ;;  %v1387_v18 = vmul.f32 %v2077_v14, %v1385_v12  ;;  %vm1392_vm11 = vweird.f32 %v2077_v14 }
 0xf7f   : > { %v1424_v19 = vmul.f32 %v2079_v16, %v1422_v13  ;;  %vm1429_vm12 = vweird.f32 %v2079_v16  ;;  %vm1393_vm1 = vmor %vm1391_vm14, %vm1392_vm11  ;;  %vm1665_vm14 = vcmask 517120  }
 0xf80   : > { %v1388_v20 = vsub.f32 1.0, %v1387_v18  ;;  %vm1430_vm2 = vmor %vm1428_vm15, %vm1429_vm12  ;;  %vm627_vm12 = vcmask 254976  }
 0xf81   : > { %v1425_v25 = vsub.f32 1.0, %v1424_v19 }
 0xf82   : > { %v1389_v26 = vmul.f32 %v2077_v14, %v1388_v20 }
 0xf83   : > { %v1426_v28 = vmul.f32 %v2079_v16, %v1425_v25 }
 0xf84   : > { %v1390_v11 = vadd.f32 %v2077_v14, %v1389_v26 }
 0xf85   : > { %v1427_v15 = vadd.f32 %v2079_v16, %v1426_v28 }
 0xf86   : > { %v1394_v39 = vsel %vm1393_vm1, %v2077_v14, %v1390_v11 }
 0xf87   : > { %v1431_v40 = vsel %vm1430_vm2, %v2079_v16, %v1427_v15  ;;  %v1399_v24 = vsel %vm1396_vm3, %v1398_v43, %v1394_v39 }
 0xf88   : > { %v1436_v53 = vsel %vm1433_vm4, %v1435_v29, %v1431_v40  ;;  %v1402_v21 = vmul.f32 %v1399_v24, %v2614_v54 }
 0xf89   : > { %v1439_v58 = vmul.f32 %v1436_v53, %v2609_v34 }
 0xfe5   : > { %v1405_v47 = vpop.permute.xlu0 %1404 }
 0xfe6   : > { %v1442_v49 = vpop.permute.xlu1 %1441  ;;  %v1407_v55 = vmul.f32 %v1405_v47, %v1399_v24 }
 0xfe7   : > { %v1444_v8 = vmul.f32 %v1442_v49, %v1436_v53 }
 0xfe8   : > { %1409 = vrot.lane.b32.xlu2 %v1407_v55, %s2204_s18 }
 0xfe9   : > { %1446 = vrot.lane.b32.xlu0 %v1444_v8, %s2204_s18 }
0x1042   : > { %v1410_v57 = vpop.permute.xlu2 %1409 }
0x1043   : > { %v2632_v17 = vadd.f32 %v1410_v57, %v1402_v21 }
0x1045   : > { %2080 = vtanh.f32 %v2632_v17 }
0x104b   : > { %v2081_v36 = vpop.eup %2080 }
0x104c   : > { %1415 = vrot.lane.b32.xlu1 %v2081_v36, %s2203_s8 }
0x105b   : > { %v1447_v31 = vpop.permute.xlu0 %1446 }
0x105c   : > { %v2637_v45 = vadd.f32 %v1447_v31, %v1439_v58 }
0x105e   : > { %2082 = vtanh.f32 %v2637_v45 }
0x1064   : > { %v2083_v52 = vpop.eup %2082 }
0x1065   : > { %1452 = vrot.lane.b32.xlu2 %v2083_v52, %s2203_s8 }
0x10be   : > { %v1416_v56 = vpop.permute.xlu1 %1415 }
0x10bf   : > { %v1418_v54 = vmul.f32 %v1416_v56, %v1399_v24  ;;  %v1453_v59 = vpop.permute.xlu2 %1452 }
0x10c0   : > { %v1455_v60 = vmul.f32 %v1453_v59, %v1436_v53 }
0x10c1   : > { %1457 = vst [vmem:[#allocation1] ss:$4 sm:$0xff] %v1418_v54 }
0x10c8   : > { %v2641_v61 = vld.sshfl [vmem:[#allocation1] sm:$0xff pattern:$0x73625140] }
0x10c9   : > { %1465 = vst [vmem:[#allocation1] ss:$4 sm:$0xff] %v1455_v60 }
0x10d0   : > { %v2643_v62 = vld.sshfl [vmem:[#allocation1] sm:$0xff pattern:$0x73625140] }
0x10d1   : > { %1472 = vst [vmem:[#allocation1] ss:$4 sm:$0xff] %v1418_v54 }
0x10d8   : > { %v1473_v34 = vld.sshfl [vmem:[#allocation1] sm:$0xff pattern:$0x73625140] }
0x10d9   : > { %1474 = vrot.lane.b32.xlu0 %v1473_v34, %s2204_s18  ;;  %1477 = vst [vmem:[#allocation1] ss:$4 sm:$0xff] %v1455_v60 }
0x10e0   : > { %v1478_v63 = vld.sshfl [vmem:[#allocation1] sm:$0xff pattern:$0x73625140] }
0x10e1   : > { %1479 = vrot.lane.b32.xlu1 %v1478_v63, %s2203_s8 }
0x114b   : > { %v1475_v0 = vpop.permute.xlu0 %1474 }
0x1153   : > { %v1480_v1 = vpop.permute.xlu1 %1479 }
0x1154   : > { %v1482_v2 = vsel %vm647_vm13, %v1475_v0, %v1480_v1 }
0x1155   : > { %v1483_v3 = vpack.c.bf16 %v1482_v2, %v1482_v2 }
0x1157   : > { %1897 = vmatmul.msk.bf16.vlgmr.msra.gmra.mxu0 %vm390_vm0, %v1483_v3  ;;  %1898 = vmatmul.msk.bf16.vlgmr.msra.gmra.mxu1 %vm390_vm0, %v1483_v3 }
0x11d4   : > { %v1496_v6 = vpop.f32.mrf.mxu0  ;;  %v1509_v9 = vpop.f32.mrf.mxu1 }
0x11d5   : > { %v1514_v10 = vadd.f32 %v1513_v7, %v1496_v6  ;;  %v1519_v12 = vadd.f32 %v1517_v5, %v1509_v9 }
0x11d7   : > { %2084 = vtanh.f32 %v1514_v10  ;;  %v1899_v19 = vmul.f32 -1.442695, %v1514_v10  ;;  %v1900_v28 = vmul.f32 -1.442695, %v1519_v12 }
0x11d8   : > { %2086 = vtanh.f32 %v1519_v12 }
0x11d9   : > { %2088 = vpow2.f32 %v1899_v19 }
0x11dc   : > { %v1498_v13 = vpop.f32.mrf.mxu0  ;;  %v1511_v14 = vpop.f32.mrf.mxu1 }
0x11dd   : > { %v2085_v16 = vpop.eup %2084 }
0x11de   : > { %v2087_v18 = vpop.eup %2086  ;;  %1542 = vrot.lane.b32.xlu2 %v2085_v16, %s2203_s8 }
0x11df   : > { %1579 = vrot.lane.b32.xlu0 %v2087_v18, %s2203_s8  ;;  %v2089_v20 = vpop.eup %2088 }
0x11e0   : > { %v1523_v25 = vadd.f32 1.0, %v2089_v20 }
0x11e2   : > { %2090 = vrcp.f32 %v1523_v25  ;;  %v1535_v39 = vand.u32 2147483648, %v1523_v25  ;;  %vm1529_vm5 = vweird.f32 %v1523_v25  ;;  %v1533_v40 = vand.u32 2147483647, %v1523_v25 }
0x11e3   : > { %2092 = vpow2.f32 %v1900_v28 }
0x11e4   : > { %v1536_v29 = vor.u32 1.1754944e-38, %v1535_v39  ;;  %vm1534_vm7 = vcmp.eq.f32.partialorder %v1533_v40, 8.507059e+37 }
0x11e8   : > { %v2091_v26 = vpop.eup %2090 }
0x11e9   : > { %v1525_v11 = vmul.f32 %v2091_v26, %v1523_v25  ;;  %v2093_v35 = vpop.eup %2092  ;;  %vm1530_vm0 = vweird.f32 %v2091_v26 }
0x11ea   : > { %v1560_v37 = vadd.f32 1.0, %v2093_v35  ;;  %vm1531_vm6 = vmor %vm1529_vm5, %vm1530_vm0 }
0x11eb   : > { %v1526_v15 = vsub.f32 1.0, %v1525_v11 }
0x11ec   : > { %2094 = vrcp.f32 %v1560_v37  ;;  %v1572_v36 = vand.u32 2147483648, %v1560_v37  ;;  %vm1566_vm9 = vweird.f32 %v1560_v37  ;;  %v1570_v58 = vand.u32 2147483647, %v1560_v37 }
0x11ed   : > { %v1527_v33 = vmul.f32 %v2091_v26, %v1526_v15 }
0x11ee   : > { %v1573_v52 = vor.u32 1.1754944e-38, %v1572_v36  ;;  %vm1571_vm11 = vcmp.eq.f32.partialorder %v1570_v58, 8.507059e+37 }
0x11ef   : > { %v1528_v38 = vadd.f32 %v2091_v26, %v1527_v33 }
0x11f1   : > { %v1532_v43 = vsel %vm1531_vm6, %v2091_v26, %v1528_v38 }
0x11f2   : > { %v2652_v24 = vsel %vm1534_vm7, %v1536_v29, %v1532_v43  ;;  %v2095_v53 = vpop.eup %2094 }
0x11f3   : > { %v1562_v55 = vmul.f32 %v2095_v53, %v1560_v37  ;;  %vm1567_vm8 = vweird.f32 %v2095_v53  ;;  %v1540_v60 = vmul.f32 %v2652_v24, %v2632_v17 }
0x11f4   : > { %vm1568_vm10 = vmor %vm1566_vm9, %vm1567_vm8 }
0x11f5   : > { %v1563_v8 = vsub.f32 1.0, %v1562_v55 }
0x11f7   : > { %v1564_v21 = vmul.f32 %v2095_v53, %v1563_v8 }
0x11f9   : > { %v1565_v57 = vadd.f32 %v2095_v53, %v1564_v21 }
0x11fb   : > { %v1569_v31 = vsel %vm1568_vm10, %v2095_v53, %v1565_v57 }
0x11fc   : > { %v1574_v54 = vsel %vm1571_vm11, %v1573_v52, %v1569_v31 }
0x11fd   : > { %v1577_v34 = vmul.f32 %v1574_v54, %v2637_v45 }
0x1238   : > { %v1543_v47 = vpop.permute.xlu2 %1542 }
0x1239   : > { %v1545_v49 = vmul.f32 %v1543_v47, %v2652_v24 }
0x123b   : > { %1547 = vrot.lane.b32.xlu1 %v1545_v49, %s2204_s18 }
0x1251   : > { %v1580_v56 = vpop.permute.xlu0 %1579 }
0x1252   : > { %v1582_v59 = vmul.f32 %v1580_v56, %v1574_v54 }
0x1254   : > { %1584 = vrot.lane.b32.xlu2 %v1582_v59, %s2204_s18 }
0x125c   : > { %632 = vrot.lane.b32.xlu2 %v2481_v23, %s2204_s18 }
0x1264   : > { %1053 = vrot.lane.b32.xlu2 %v2574_v46, %s2204_s18 }
0x126c   : > { %1467 = vrot.lane.b32.xlu2 %v2643_v62, %s2204_s18 }
0x1274   : > { %765 = vrot.lane.b32.xlu2 %v2510_v30, %s2204_s18 }
0x127c   : > { %1183 = vrot.lane.b32.xlu2 %v2595_v50, %s2204_s18 }
0x12ad   : > { %v1548_v63 = vpop.permute.xlu1 %1547 }
0x12ae   : > { %v1585_v0 = vpop.permute.xlu2 %1584  ;;  %v1550_v23 = vadd.f32 %v1548_v63, %v1540_v60 }
0x12af   : > { %v1587_v1 = vadd.f32 %v1585_v0, %v1577_v34 }
0x12b0   : > { %2096 = vtanh.f32 %v1550_v23 }
0x12b1   : > { %2098 = vtanh.f32 %v1587_v1 }
0x12b6   : > { %v2097_v46 = vpop.eup %2096  ;;  %v633_v62 = vpop.permute.xlu2 %632 }
0x12b7   : > { %v2099_v2 = vpop.eup %2098  ;;  %636 = vst.msk [vmem:[#allocation4 + $0xe] sm:$0x3] %vm627_vm12, %v633_v62  ;;  %1553 = vrot.lane.b32.xlu0 %v2097_v46, %s2203_s8 }
0x12b8   : > { %1590 = vrot.lane.b32.xlu1 %v2099_v2, %s2203_s8 }
0x12be   : > { %v1054_v30 = vpop.permute.xlu2 %1053 }
0x12bf   : > { %1057 = vst.msk [vmem:[#allocation4 + $0x8] sm:$0x3] %vm627_vm12, %v1054_v30  ;;  %773 = vrot.lane.b32.xlu0 %v2512_v32, %s2204_s18 }
0x12c0   : > { %913 = vrot.lane.b32.xlu1 %v2543_v42, %s2204_s18 }
0x12c6   : > { %v1468_v50 = vpop.permute.xlu2 %1467  ;;  %v1621_v42 = vld [vmem:[#allocation4 + $0x8] sm:$0x3] }
0x12c7   : > { %1471 = vst.msk [vmem:[#allocation4 + $0x2] sm:$0x3] %vm627_vm12, %v1468_v50  ;;  %1191 = vrot.lane.b32.xlu0 %v2597_v51, %s2204_s18  ;;  %v1624_v51 = vld [vmem:[#allocation4 + $0xe] sm:$0x3] }
0x12c8   : > { %1329 = vrot.lane.b32.xlu1 %v2620_v48, %s2204_s18 }
0x12ce   : > { %v766_v17 = vpop.permute.xlu2 %765  ;;  %v1618_v32 = vld [vmem:[#allocation4 + $0x2] sm:$0x3] }
0x12cf   : > { %769 = vst.msk [vmem:[#allocation3 + $0x2] sm:$0x3] %vm627_vm12, %v766_v17 }
0x12d0   : > { %624 = vrot.lane.b32.xlu1 %v2479_v22, %s2204_s18 }
0x12d6   : > { %v1184_v45 = vpop.permute.xlu2 %1183 }
0x12d7   : > { %1187 = vst.msk [vmem:[#allocation3 + $0x8] sm:$0x3] %vm627_vm12, %v1184_v45 }
0x12d8   : > { %1045 = vrot.lane.b32.xlu1 %v2572_v44, %s2204_s18 }
0x12de   : > { %v1613_v20 = vld [vmem:[#allocation3 + $0x8] sm:$0x3] }
0x12e0   : > { %1459 = vrot.lane.b32.xlu1 %v2641_v61, %s2204_s18 }
0x12e8   : > { %1635 = vrot.lane.b32.xlu1 %v1618_v32, %s2204_s18 }
0x12f0   : > { %1641 = vrot.lane.b32.xlu1 %v1621_v42, %s2204_s18 }
0x12f8   : > { %1647 = vrot.lane.b32.xlu1 %v1624_v51, %s2204_s18 }
0x1329   : > { %v1554_v48 = vpop.permute.xlu0 %1553 }
0x132a   : > { %v1591_v22 = vpop.permute.xlu1 %1590  ;;  %v1556_v3 = vmul.f32 %v1554_v48, %v2652_v24 }
0x132b   : > { %v1593_v5 = vmul.f32 %v1591_v22, %v1574_v54 }
0x132c   : > { %1595 = vst [vmem:[#allocation1] ss:$4 sm:$0xff] %v1556_v3 }
0x1331   : > { %v774_v4 = vpop.permute.xlu0 %773 }
0x1332   : > { %v914_v44 = vpop.permute.xlu1 %913  ;;  %777 = vst.msk [vmem:[#allocation4 + $0xc] sm:$0x3] %vm627_vm12, %v774_v4 }
0x1333   : > { %917 = vst.msk [vmem:[#allocation4 + $0xa] sm:$0x3] %vm627_vm12, %v914_v44  ;;  %v1596_v61 = vld.sshfl [vmem:[#allocation1] sm:$0xff pattern:$0x73625140] }
0x1334   : > { %1597 = vrot.lane.b32.xlu2 %v1596_v61, %s2204_s18  ;;  %1603 = vst [vmem:[#allocation1] ss:$4 sm:$0xff] %v1593_v5 }
0x1339   : > { %v1192_v6 = vpop.permute.xlu0 %1191  ;;  %v1623_v29 = vld [vmem:[#allocation4 + $0xc] sm:$0x3] }
0x133a   : > { %v1330_v7 = vpop.permute.xlu1 %1329  ;;  %1195 = vst.msk [vmem:[#allocation4 + $0x6] sm:$0x3] %vm627_vm12, %v1192_v6  ;;  %v1622_v14 = vld [vmem:[#allocation4 + $0xa] sm:$0x3] }
0x133b   : > { %1333 = vst.msk [vmem:[#allocation4 + $0x4] sm:$0x3] %vm627_vm12, %v1330_v7  ;;  %v1604_v9 = vld.sshfl [vmem:[#allocation1] sm:$0xff pattern:$0x73625140] }
0x133c   : > { %1605 = vrot.lane.b32.xlu0 %v1604_v9, %s2204_s18 }
0x1341   : > { %v1620_v18 = vld [vmem:[#allocation4 + $0x6] sm:$0x3] }
0x1342   : > { %v625_v10 = vpop.permute.xlu1 %624  ;;  %v1619_v12 = vld [vmem:[#allocation4 + $0x4] sm:$0x3] }
0x1343   : > { %628 = vst.msk [vmem:[#allocation3] sm:$0x3] %vm627_vm12, %v625_v10  ;;  %1637 = vrot.lane.b32.xlu2 %v1619_v12, %s2204_s18 }
0x1344   : > { %905 = vrot.lane.b32.xlu0 %v2541_v41, %s2204_s18  ;;  %v1610_v41 = vld [vmem:[#allocation3 + $0x2] sm:$0x3] }
0x134a   : > { %v1046_v13 = vpop.permute.xlu1 %1045  ;;  %v1609_v57 = vld [vmem:[#allocation3] sm:$0x3] }
0x134b   : > { %1049 = vst.msk [vmem:[#allocation3 + $0x6] sm:$0x3] %vm627_vm12, %v1046_v13  ;;  %1643 = vrot.lane.b32.xlu2 %v1622_v14, %s2204_s18 }
0x134c   : > { %1321 = vrot.lane.b32.xlu0 %v2618_v27, %s2204_s18 }
0x1352   : > { %v1460_v16 = vpop.permute.xlu1 %1459  ;;  %v1612_v53 = vld [vmem:[#allocation3 + $0x6] sm:$0x3] }
0x1353   : > { %1463 = vst.msk [vmem:[#allocation3 + $0xc] sm:$0x3] %vm627_vm12, %v1460_v16 }
0x1354   : > { %1639 = vrot.lane.b32.xlu0 %v1620_v18, %s2204_s18 }
0x135a   : > { %v1636_v19 = vpop.permute.xlu1 %1635  ;;  %v1615_v31 = vld [vmem:[#allocation3 + $0xc] sm:$0x3] }
0x135b   : > { %v1658_v27 = vsel %vm647_vm13, %v1610_v41, %v1636_v19 }
0x135c   : > { %1667 = vst.msk [vmem:[%s2716_s22 + $0x2] sm:$0x3] %vm1665_vm14, %v1658_v27 }
0x1362   : > { %v1642_v25 = vpop.permute.xlu1 %1641 }
0x1363   : > { %v1661_v26 = vsel %vm647_vm13, %v1613_v20, %v1642_v25 }
0x1364   : > { %1670 = vst.msk [vmem:[%s2716_s22 + $0x8] sm:$0x3] %vm1665_vm14, %v1661_v26 }
0x136a   : > { %v1648_v11 = vpop.permute.xlu1 %1647 }
0x138e   : > { %v1598_v28 = vpop.permute.xlu2 %1597 }
0x138f   : > { %1601 = vst.msk [vmem:[#allocation3 + $0xe] sm:$0x3] %vm627_vm12, %v1598_v28 }
0x1396   : > { %v1616_v15 = vld [vmem:[#allocation3 + $0xe] sm:$0x3] }
0x1397   : > { %v1664_v33 = vsel %vm647_vm13, %v1616_v15, %v1648_v11 }
0x1398   : > { %1673 = vst.msk [vmem:[%s2716_s22 + $0xe] sm:$0x3] %vm1665_vm14, %v1664_v33 }
0x139d   : > { %v1638_v39 = vpop.permute.xlu2 %1637 }
0x13a5   : > { %v1644_v24 = vpop.permute.xlu2 %1643 }
0x13ae   : > { %v1606_v35 = vpop.permute.xlu0 %1605 }
0x13af   : > { %1608 = vst.msk [vmem:[#allocation4] sm:$0x3] %vm627_vm12, %v1606_v35 }
0x13b6   : > { %v906_v37 = vpop.permute.xlu0 %905  ;;  %v1617_v38 = vld [vmem:[#allocation4] sm:$0x3] }
0x13b7   : > { %909 = vst.msk [vmem:[#allocation3 + $0x4] sm:$0x3] %vm627_vm12, %v906_v37  ;;  %1633 = vrot.lane.b32.xlu0 %v1617_v38, %s2204_s18 }
0x13be   : > { %v1611_v40 = vld [vmem:[#allocation3 + $0x4] sm:$0x3]  ;;  %v1322_v43 = vpop.permute.xlu0 %1321 }
0x13bf   : > { %v1659_v47 = vsel %vm647_vm13, %v1611_v40, %v1638_v39  ;;  %1325 = vst.msk [vmem:[#allocation3 + $0xa] sm:$0x3] %vm627_vm12, %v1322_v43  ;;  %1645 = vrot.lane.b32.xlu0 %v1623_v29, %s2204_s18 }
0x13c0   : > { %1668 = vst.msk [vmem:[%s2716_s22 + $0x4] sm:$0x3] %vm1665_vm14, %v1659_v47 }
0x13c6   : > { %v1614_v49 = vld [vmem:[#allocation3 + $0xa] sm:$0x3]  ;;  %v1640_v55 = vpop.permute.xlu0 %1639 }
0x13c7   : > { %v1662_v8 = vsel %vm647_vm13, %v1614_v49, %v1644_v24  ;;  %v1660_v21 = vsel %vm647_vm13, %v1612_v53, %v1640_v55 }
0x13c8   : > { %1671 = vst.msk [vmem:[%s2716_s22 + $0xa] sm:$0x3] %vm1665_vm14, %v1662_v8 }
0x13c9   : > { %1669 = vst.msk [vmem:[%s2716_s22 + $0x6] sm:$0x3] %vm1665_vm14, %v1660_v21 }
0x1429   : > { %v1634_v36 = vpop.permute.xlu0 %1633 }
0x142a   : > { %v1657_v58 = vsel %vm647_vm13, %v1609_v57, %v1634_v36 }
0x142b   : > { %1666 = vst.msk [vmem:[%s2716_s22] sm:$0x3] %vm1665_vm14, %v1657_v58 }
0x1431   : > { %v1646_v52 = vpop.permute.xlu0 %1645 }
0x1432   : > { %v1663_v56 = vsel %vm647_vm13, %v1615_v31, %v1646_v52 }
0x1433   : > { %1672 = vst.msk [vmem:[%s2716_s22 + $0xc] sm:$0x3] %vm1665_vm14, %v1663_v56 }
0x1434 PF: > { %p17_p7 = scmp.ge.s32.totalorder %s2252_s20, 5   ;;  %s2770_s15 = smov %s2190_s16 }
0x1435   : > { %s2771_s16 = smov %s2194_s17  ;;  %s2772_s17 = smov %s2262_s23 }
0x1436   : > { %s2773_s18 = smov %s2252_s20  ;;  %19 = sbr.rel (!%p17_p7) target bundleno = 5 (0x5), region = 123 }
0x143b   :  { %1695 = vsyncpa [#allocation6], 1 }
0x143c   :  { %1697 = vsyncpa [#allocation6 + $0x1], 1 }
0x143d   :  { %1698 = vsyncpa [#allocation8], 1 }
0x143e   :  { %1700 = vsyncpa [#allocation8 + $0x1], 1 }

</bundles_post_ra>
